<compile_context>
chip_gen: v6e
topology: v6e:2x2x1
jax: 0.10.0
libtpu: 0.0.40
codegen_flags: <defaults>
</compile_context>

<pallas_src>
import math
import jax
import jax.numpy as jnp
from jax import lax
from jax.experimental import pallas as pl
from jax.experimental.pallas import tpu as pltpu


# ----------------------------- Pallas kernels ------------------------------ #

def _deconv_igdn_kernel(p_ref, w_ref, b_ref, gT_ref, beta_ref, o_ref):
    # transposed conv (all s*s phases) as one matmul: (TM, K) bf16 @ (K, N) bf16 -> f32
    y = jnp.dot(p_ref[...], w_ref[...], preferred_element_type=jnp.float32)
    y = y + b_ref[...]                                  # (TM, N) + (1, N)
    # fused inverse GDN: norm = beta + gamma @ y^2 (block-diag gamma per phase).
    # bf16 operands on the MXU (f32 accumulate): well within the stated tolerance and
    # avoids f32 multi-pass MXU emulation.
    norm = jnp.dot((y * y).astype(jnp.bfloat16), gT_ref[...],
                   preferred_element_type=jnp.float32)
    # compressai GDN keeps beta/gamma non-negative, so norm >= 0 in exact arithmetic; the
    # clamp only guards against tiny negative rounding and does not change semantics.
    norm = jnp.maximum(norm + beta_ref[...], 0.0)
    o_ref[...] = (y * jnp.sqrt(norm)).astype(o_ref.dtype)


def _deconv_kernel(p_ref, w_ref, b_ref, o_ref):
    y = jnp.dot(p_ref[...], w_ref[...], preferred_element_type=jnp.float32)
    o_ref[...] = (y + b_ref[...]).astype(o_ref.dtype)


_COMPILER_PARAMS = pltpu.CompilerParams(
    dimension_semantics=("parallel",),
    vmem_limit_bytes=32 * 1024 * 1024,
)


# ------------------------------ helpers ------------------------------------ #

def _round_up(x, m):
    return ((x + m - 1) // m) * m


def _choose_tm(M, cap=512):
    """Tile rows: multiple of 16 (bf16 sublane pack), >= 2 grid steps when possible."""
    tm = min(cap, _round_up(-(-M // 2), 16))
    return max(tm, 16)


def im2col(x_nhwc, kh, kw, stride, pad):
    """x_nhwc: (B, H, W, C) -> patches (B*Ho*Wo, kh*kw*C), Ho, Wo  (channel-minor)."""
    B, H, W, C = x_nhwc.shape
    xp = jnp.pad(x_nhwc, ((0, 0), (pad, pad), (pad, pad), (0, 0)))
    Ho = (H + 2 * pad - kh) // stride + 1
    Wo = (W + 2 * pad - kw) // stride + 1
    cols = []
    for i in range(kh):
        for j in range(kw):
            cols.append(xp[:, i:i + Ho * stride:stride, j:j + Wo * stride:stride, :])
    p = jnp.stack(cols, axis=3)                      # (B, Ho, Wo, kh*kw, C)
    return p.reshape(B * Ho * Wo, kh * kw * C), Ho, Wo


def deconv_to_matmul(w, s):
    """PyTorch ConvTranspose2d weight (C_in, C_out, k, k) -> (kp*kp*C_in, s*s*C_out).

    Row ordering matches im2col patches (tap-row-major, channel-minor); column ordering
    is (phase_y, phase_x, C_out) for the subsequent depth-to-space.
    """
    C_in, C_out, k, _ = w.shape
    kp = -(-k // s)                                   # ceil(k / s)
    pad = kp * s - k
    wp = jnp.pad(w, ((0, 0), (0, 0), (0, pad), (0, pad)))
    wp = wp.reshape(C_in, C_out, kp, s, kp, s)        # [ci, co, jt_y, ry, jt_x, rx]
    wp = wp[:, :, ::-1, :, ::-1, :]                   # tap index jt -> patch index i = kp-1-jt
    wm = jnp.transpose(wp, (2, 4, 0, 3, 5, 1))        # (i, j, ci, ry, rx, co)
    return wm.reshape(kp * kp * C_in, s * s * C_out)


def _pixel_shuffle(y, B, H, W, s, C_out):
    """(B*H*W, s*s*C_out) -> (B, H*s, W*s, C_out)."""
    y = y.reshape(B, H, W, s, s, C_out)
    y = jnp.transpose(y, (0, 1, 3, 2, 4, 5))
    return y.reshape(B, H * s, W * s, C_out)


# --------------------------- pallas layer wrappers -------------------------- #

def _prep_patches(x_nhwc, k, s, p):
    """Shared im2col prep for ConvTranspose2d(k, s, padding=p, output_padding=s-1)."""
    kp = -(-k // s)
    assert p % s == 0 and kp == 3 and (kp - 1 - p // s) == p // s == 1, \
        "layer config must be (k=5,s=2,p=2,op=1) or (k=9,s=4,p=4,op=3)"
    patches, Ho, Wo = im2col(x_nhwc.astype(jnp.bfloat16), kp, kp, 1, 1)
    return patches, Ho, Wo


def deconv_igdn_layer(x_nhwc, w, b, gamma, beta, *, k, s, p):
    B, H, W, C_in = x_nhwc.shape
    C_out = w.shape[1]
    patches, Ho, Wo = _prep_patches(x_nhwc, k, s, p)
    M, K = patches.shape                              # K left unpadded: full-dim block is legal
    N = s * s * C_out
    Np = _round_up(N, 128)                            # lane-dense weight columns / output stores

    tm = _choose_tm(M)
    Mp = _round_up(M, tm)
    if Mp != M:                                       # rare: only when M is not a tile multiple
        patches = jnp.pad(patches, ((0, Mp - M), (0, 0)))

    w_mat = jnp.pad(deconv_to_matmul(w, s), ((0, 0), (0, Np - N))).astype(jnp.bfloat16)
    bias_row = jnp.pad(jnp.tile(b, s * s), (0, Np - N)).reshape(1, Np)
    # block-diagonal gamma^T (one gamma block per sub-pixel phase), bf16 for the MXU
    gT_bd = jnp.kron(jnp.eye(s * s, dtype=jnp.float32), gamma.T)
    gT_bd = jnp.pad(gT_bd, ((0, Np - N), (0, Np - N))).astype(jnp.bfloat16)
    beta_row = jnp.pad(jnp.tile(beta, s * s), (0, Np - N)).reshape(1, Np)

    cost = pl.CostEstimate(
        flops=int(2 * Mp * K * Np + 2 * Mp * Np * Np + 4 * Mp * Np),
        transcendentals=int(Mp * Np),
        bytes_accessed=int(Mp * K * 2 + K * Np * 2 + Np * Np * 2 + 2 * Np * 4 + Mp * Np * 2),
    )

    y = pl.pallas_call(
        _deconv_igdn_kernel,
        # bf16 output: this layer feeds the next layer's bf16 im2col, so storing bf16 halves
        # the output HBM writes + pixel-shuffle copy with no end-to-end numeric change.
        out_shape=jax.ShapeDtypeStruct((Mp, Np), jnp.bfloat16),
        grid=(Mp // tm,),
        in_specs=[
            pl.BlockSpec((tm, K), lambda i: (i, 0)),     # streamed patch tiles (bf16)
            pl.BlockSpec((K, Np), lambda i: (0, 0)),     # resident conv weight (bf16)
            pl.BlockSpec((1, Np), lambda i: (0, 0)),     # resident bias row (f32)
            pl.BlockSpec((Np, Np), lambda i: (0, 0)),    # resident block-diag gamma^T (bf16)
            pl.BlockSpec((1, Np), lambda i: (0, 0)),     # resident beta row (f32)
        ],
        out_specs=pl.BlockSpec((tm, Np), lambda i: (i, 0)),
        compiler_params=_COMPILER_PARAMS,
        cost_estimate=cost,
    )(patches, w_mat, bias_row, gT_bd, beta_row)

    y = y[:M, :N]
    return _pixel_shuffle(y, B, Ho, Wo, s, C_out)


def deconv_layer(x_nhwc, w, b, *, k, s, p):
    B, H, W, C_in = x_nhwc.shape
    C_out = w.shape[1]
    patches, Ho, Wo = _prep_patches(x_nhwc, k, s, p)
    M, K = patches.shape
    N = s * s * C_out
    Np = _round_up(N, 128)

    tm = _choose_tm(M)
    Mp = _round_up(M, tm)
    if Mp != M:
        patches = jnp.pad(patches, ((0, Mp - M), (0, 0)))

    w_mat = jnp.pad(deconv_to_matmul(w, s), ((0, 0), (0, Np - N))).astype(jnp.bfloat16)
    bias_row = jnp.pad(jnp.tile(b, s * s), (0, Np - N)).reshape(1, Np)

    cost = pl.CostEstimate(
        flops=int(2 * Mp * K * Np + Mp * Np),
        transcendentals=0,
        bytes_accessed=int(Mp * K * 2 + K * Np * 2 + Np * 4 + Mp * Np * 4),
    )

    y = pl.pallas_call(
        _deconv_kernel,
        out_shape=jax.ShapeDtypeStruct((Mp, Np), jnp.float32),   # final layer: keep f32
        grid=(Mp // tm,),
        in_specs=[
            pl.BlockSpec((tm, K), lambda i: (i, 0)),
            pl.BlockSpec((K, Np), lambda i: (0, 0)),
            pl.BlockSpec((1, Np), lambda i: (0, 0)),
        ],
        out_specs=pl.BlockSpec((tm, Np), lambda i: (i, 0)),
        compiler_params=_COMPILER_PARAMS,
        cost_estimate=cost,
    )(patches, w_mat, bias_row)

    y = y[:M, :N]
    return _pixel_shuffle(y, B, Ho, Wo, s, C_out)


# ------------------------------ forward pass -------------------------------- #

def synthesis_net_17_forward(x_nchw, params):
    """Forward matching Synthesis_net_17: deconv1 -> IGDN1 -> deconv2 -> IGDN2 -> deconv3."""
    x = jnp.transpose(x_nchw, (0, 2, 3, 1)).astype(jnp.float32)       # NHWC
    x = deconv_igdn_layer(x, params["w1"], params["b1"], params["gamma1"], params["beta1"],
                          k=5, s=2, p=2)
    x = deconv_igdn_layer(x, params["w2"], params["b2"], params["gamma2"], params["beta2"],
                          k=5, s=2, p=2)
    x = deconv_layer(x, params["w3"], params["b3"], k=9, s=4, p=4)
    return jnp.transpose(x, (0, 3, 1, 2))                             # NCHW


# --------------------------------- params ----------------------------------- #

def xavier_normal(key, shape, gain):
    # torch semantics for 4-D weights: fan_in = shape[1]*kh*kw, fan_out = shape[0]*kh*kw
    d0, d1, kh, kw = shape
    fan_in, fan_out = d1 * kh * kw, d0 * kh * kw
    std = gain * math.sqrt(2.0 / (fan_in + fan_out))
    return std * jax.random.normal(key, shape, dtype=jnp.float32)


def make_params(key, out_channel_N=32):
    ks = jax.random.split(key, 5)
    n = out_channel_N
    g = math.sqrt(2.0)
    # ConvTranspose2d weight layout: (C_in, C_out, kh, kw)
    w1 = xavier_normal(ks[0], (n, n, 5, 5), g)
    w2 = xavier_normal(ks[1], (n, n, 5, 5), g)
    w3 = xavier_normal(ks[2], (n, 3, 9, 9), g)
    b1 = jnp.full((n,), 0.01, jnp.float32)
    b2 = jnp.full((n,), 0.01, jnp.float32)
    b3 = jnp.full((3,), 0.01, jnp.float32)
    # inverse-GDN params (compressai default init beta=1, gamma=0.1*I) + small non-negative
    # perturbation so the gamma matmul is fully exercised.
    beta1 = jnp.ones((n,), jnp.float32)
    beta2 = jnp.ones((n,), jnp.float32)
    gamma1 = 0.1 * jnp.eye(n, dtype=jnp.float32) + 1e-3 * jnp.abs(
        jax.random.normal(ks[3], (n, n), dtype=jnp.float32))
    gamma2 = 0.1 * jnp.eye(n, dtype=jnp.float32) + 1e-3 * jnp.abs(
        jax.random.normal(ks[4], (n, n), dtype=jnp.float32))
    return dict(w1=w1, b1=b1, w2=w2, b2=b2, w3=w3, b3=b3,
                beta1=beta1, gamma1=gamma1, beta2=beta2, gamma2=gamma2)


# --------------------------- pure-JAX reference ------------------------------ #

def _ref_deconv(x, w, b, s, p, op):
    # ConvTranspose2d == conv over lhs-dilated input with flipped, channel-swapped kernel.
    k = w.shape[2]
    w_conv = jnp.transpose(w, (1, 0, 2, 3))[:, :, ::-1, ::-1]     # (C_out, C_in, k, k)
    y = lax.conv_general_dilated(
        x, w_conv, window_strides=(1, 1),
        padding=[(k - 1 - p, k - 1 - p + op), (k - 1 - p, k - 1 - p + op)],
        lhs_dilation=(s, s),
        dimension_numbers=("NCHW", "OIHW", "NCHW"))
    return y + b[None, :, None, None]


def _ref_igdn(x, beta, gamma):
    norm = jnp.einsum("cj,bjhw->bchw", gamma, x * x) + beta[None, :, None, None]
    return x * jnp.sqrt(norm)


def ref_forward(x, p):
    y = _ref_igdn(_ref_deconv(x, p["w1"], p["b1"], 2, 2, 1), p["beta1"], p["gamma1"])
    y = _ref_igdn(_ref_deconv(y, p["w2"], p["b2"], 2, 2, 1), p["beta2"], p["gamma2"])
    y = _ref_deconv(y, p["w3"], p["b3"], 4, 4, 3)
    return y


# ----------------------------------- main ------------------------------------ #

if __name__ == "__main__":
    key = jax.random.PRNGKey(0)
    k_x, k_p = jax.random.split(key)

    out_channel_N = 32                        # small synthetic width (module default is 192)
    x = jax.random.normal(k_x, (2, out_channel_N, 8, 8), dtype=jnp.float32)   # NCHW latent
    params = make_params(k_p, out_channel_N)

    out = jax.block_until_ready(jax.jit(synthesis_net_17_forward)(x, params))
    ref = jax.block_until_ready(ref_forward(x, params))

    assert out.shape == ref.shape == (2, 3, 128, 128), out.shape
    err = float(jnp.max(jnp.abs(out - ref)))
    scale = float(jnp.max(jnp.abs(ref)))
    assert err <= 5e-2 * scale + 5e-3, (err, scale)

    print("KERNEL_OK")
</pallas_src>

<mosaic_0001>
module attributes {stable_mosaic.version = 11 : i64} {
  func.func @_deconv_igdn_kernel(%arg0: i32, %arg1: memref<64x288xbf16, #tpu.memory_space<vmem>>, %arg2: memref<288x128xbf16, #tpu.memory_space<vmem>>, %arg3: memref<1x128xf32, #tpu.memory_space<vmem>>, %arg4: memref<128x128xbf16, #tpu.memory_space<vmem>>, %arg5: memref<1x128xf32, #tpu.memory_space<vmem>>, %arg6: memref<64x128xbf16, #tpu.memory_space<vmem>>) attributes {dimension_semantics = [#tpu.dimension_semantics<parallel>], iteration_bounds = array<i64: 2>, scalar_prefetch = 0 : i64, scratch_operands = 0 : i64, tpu.core_type = #tpu.core_type<tc>, window_params = [{transform_indices = @transform_0, window_bounds = array<i64: 64, 288>}, {pipeline_mode = #tpu.pipeline_mode<synchronous>, transform_indices = @transform_1, window_bounds = array<i64: 288, 128>}, {pipeline_mode = #tpu.pipeline_mode<synchronous>, transform_indices = @transform_2, window_bounds = array<i64: 1, 128>}, {pipeline_mode = #tpu.pipeline_mode<synchronous>, transform_indices = @transform_3, window_bounds = array<i64: 128, 128>}, {pipeline_mode = #tpu.pipeline_mode<synchronous>, transform_indices = @transform_4, window_bounds = array<i64: 1, 128>}, {transform_indices = @transform_5, window_bounds = array<i64: 64, 128>}]} {
    %c0 = arith.constant 0 : index
    %c0_0 = arith.constant 0 : index
    %0 = vector.load %arg1[%c0, %c0_0] : memref<64x288xbf16, #tpu.memory_space<vmem>>, vector<64x288xbf16>
    %c0_1 = arith.constant 0 : index
    %c0_2 = arith.constant 0 : index
    %1 = vector.load %arg2[%c0_1, %c0_2] : memref<288x128xbf16, #tpu.memory_space<vmem>>, vector<288x128xbf16>
    %cst = arith.constant dense<0.000000e+00> : vector<64x128xf32>
    %2 = tpu.matmul %0, %1, %cst {dimension_numbers = #tpu.dot_dimension_numbers<[1], [0], [0], [1], [0, 0, 1, 1], [], []>} : vector<64x288xbf16>, vector<288x128xbf16>, vector<64x128xf32> -> vector<64x128xf32>
    %c0_3 = arith.constant 0 : index
    %c0_4 = arith.constant 0 : index
    %3 = vector.load %arg3[%c0_3, %c0_4] : memref<1x128xf32, #tpu.memory_space<vmem>>, vector<1x128xf32>
    %4 = vector.broadcast %3 : vector<1x128xf32> to vector<64x128xf32>
    %5 = arith.addf %2, %4 : vector<64x128xf32>
    %6 = arith.mulf %5, %5 : vector<64x128xf32>
    %7 = arith.truncf %6 : vector<64x128xf32> to vector<64x128xbf16>
    %c0_5 = arith.constant 0 : index
    %c0_6 = arith.constant 0 : index
    %8 = vector.load %arg4[%c0_5, %c0_6] : memref<128x128xbf16, #tpu.memory_space<vmem>>, vector<128x128xbf16>
    %cst_7 = arith.constant dense<0.000000e+00> : vector<64x128xf32>
    %9 = tpu.matmul %7, %8, %cst_7 {dimension_numbers = #tpu.dot_dimension_numbers<[1], [0], [0], [1], [0, 0, 1, 1], [], []>} : vector<64x128xbf16>, vector<128x128xbf16>, vector<64x128xf32> -> vector<64x128xf32>
    %c0_8 = arith.constant 0 : index
    %c0_9 = arith.constant 0 : index
    %10 = vector.load %arg5[%c0_8, %c0_9] : memref<1x128xf32, #tpu.memory_space<vmem>>, vector<1x128xf32>
    %11 = vector.broadcast %10 : vector<1x128xf32> to vector<64x128xf32>
    %12 = arith.addf %9, %11 : vector<64x128xf32>
    %cst_10 = arith.constant 0.000000e+00 : f32
    %13 = vector.broadcast %cst_10 : f32 to vector<64x128xf32>
    %14 = arith.maximumf %12, %13 : vector<64x128xf32>
    %15 = math.sqrt %14 : vector<64x128xf32>
    %16 = arith.mulf %5, %15 : vector<64x128xf32>
    %17 = arith.truncf %16 : vector<64x128xf32> to vector<64x128xbf16>
    %c0_11 = arith.constant 0 : index
    %c0_12 = arith.constant 0 : index
    %18 = vector.load %arg6[%c0_11, %c0_12] : memref<64x128xbf16, #tpu.memory_space<vmem>>, vector<64x128xbf16>
    tpu.vector_store %arg6[%c0_11, %c0_12], %17 {strides = array<i32>} : memref<64x128xbf16, #tpu.memory_space<vmem>>, vector<64x128xbf16>,
    return
  }
  func.func @transform_0(%arg0: i32) -> (i32, i32) {
    %c0_i32 = arith.constant 0 : i32
    %c0_i32_0 = arith.constant 0 : i32
    return %arg0, %c0_i32 : i32, i32
  }
  func.func @transform_1(%arg0: i32) -> (i32, i32) {
    %c0_i32 = arith.constant 0 : i32
    %c0_i32_0 = arith.constant 0 : i32
    %c0_i32_1 = arith.constant 0 : i32
    return %c0_i32, %c0_i32_0 : i32, i32
  }
  func.func @transform_2(%arg0: i32) -> (i32, i32) {
    %c0_i32 = arith.constant 0 : i32
    %c0_i32_0 = arith.constant 0 : i32
    %c0_i32_1 = arith.constant 0 : i32
    return %c0_i32, %c0_i32_0 : i32, i32
  }
  func.func @transform_3(%arg0: i32) -> (i32, i32) {
    %c0_i32 = arith.constant 0 : i32
    %c0_i32_0 = arith.constant 0 : i32
    %c0_i32_1 = arith.constant 0 : i32
    return %c0_i32, %c0_i32_0 : i32, i32
  }
  func.func @transform_4(%arg0: i32) -> (i32, i32) {
    %c0_i32 = arith.constant 0 : i32
    %c0_i32_0 = arith.constant 0 : i32
    %c0_i32_1 = arith.constant 0 : i32
    return %c0_i32, %c0_i32_0 : i32, i32
  }
  func.func @transform_5(%arg0: i32) -> (i32, i32) {
    %c0_i32 = arith.constant 0 : i32
    %c0_i32_0 = arith.constant 0 : i32
    return %arg0, %c0_i32 : i32, i32
  }
}

module attributes {stable_mosaic.version = 11 : i64} {
  func.func @_deconv_igdn_kernel(%arg0: i32, %arg1: memref<256x288xbf16, #tpu.memory_space<vmem>>, %arg2: memref<288x128xbf16, #tpu.memory_space<vmem>>, %arg3: memref<1x128xf32, #tpu.memory_space<vmem>>, %arg4: memref<128x128xbf16, #tpu.memory_space<vmem>>, %arg5: memref<1x128xf32, #tpu.memory_space<vmem>>, %arg6: memref<256x128xbf16, #tpu.memory_space<vmem>>) attributes {dimension_semantics = [#tpu.dimension_semantics<parallel>], iteration_bounds = array<i64: 2>, scalar_prefetch = 0 : i64, scratch_operands = 0 : i64, tpu.core_type = #tpu.core_type<tc>, window_params = [{transform_indices = @transform_0, window_bounds = array<i64: 256, 288>}, {pipeline_mode = #tpu.pipeline_mode<synchronous>, transform_indices = @transform_1, window_bounds = array<i64: 288, 128>}, {pipeline_mode = #tpu.pipeline_mode<synchronous>, transform_indices = @transform_2, window_bounds = array<i64: 1, 128>}, {pipeline_mode = #tpu.pipeline_mode<synchronous>, transform_indices = @transform_3, window_bounds = array<i64: 128, 128>}, {pipeline_mode = #tpu.pipeline_mode<synchronous>, transform_indices = @transform_4, window_bounds = array<i64: 1, 128>}, {transform_indices = @transform_5, window_bounds = array<i64: 256, 128>}]} {
    %c0 = arith.constant 0 : index
    %c0_0 = arith.constant 0 : index
    %0 = vector.load %arg1[%c0, %c0_0] : memref<256x288xbf16, #tpu.memory_space<vmem>>, vector<256x288xbf16>
    %c0_1 = arith.constant 0 : index
    %c0_2 = arith.constant 0 : index
    %1 = vector.load %arg2[%c0_1, %c0_2] : memref<288x128xbf16, #tpu.memory_space<vmem>>, vector<288x128xbf16>
    %cst = arith.constant dense<0.000000e+00> : vector<256x128xf32>
    %2 = tpu.matmul %0, %1, %cst {dimension_numbers = #tpu.dot_dimension_numbers<[1], [0], [0], [1], [0, 0, 1, 1], [], []>} : vector<256x288xbf16>, vector<288x128xbf16>, vector<256x128xf32> -> vector<256x128xf32>
    %c0_3 = arith.constant 0 : index
    %c0_4 = arith.constant 0 : index
    %3 = vector.load %arg3[%c0_3, %c0_4] : memref<1x128xf32, #tpu.memory_space<vmem>>, vector<1x128xf32>
    %4 = vector.broadcast %3 : vector<1x128xf32> to vector<256x128xf32>
    %5 = arith.addf %2, %4 : vector<256x128xf32>
    %6 = arith.mulf %5, %5 : vector<256x128xf32>
    %7 = arith.truncf %6 : vector<256x128xf32> to vector<256x128xbf16>
    %c0_5 = arith.constant 0 : index
    %c0_6 = arith.constant 0 : index
    %8 = vector.load %arg4[%c0_5, %c0_6] : memref<128x128xbf16, #tpu.memory_space<vmem>>, vector<128x128xbf16>
    %cst_7 = arith.constant dense<0.000000e+00> : vector<256x128xf32>
    %9 = tpu.matmul %7, %8, %cst_7 {dimension_numbers = #tpu.dot_dimension_numbers<[1], [0], [0], [1], [0, 0, 1, 1], [], []>} : vector<256x128xbf16>, vector<128x128xbf16>, vector<256x128xf32> -> vector<256x128xf32>
    %c0_8 = arith.constant 0 : index
    %c0_9 = arith.constant 0 : index
    %10 = vector.load %arg5[%c0_8, %c0_9] : memref<1x128xf32, #tpu.memory_space<vmem>>, vector<1x128xf32>
    %11 = vector.broadcast %10 : vector<1x128xf32> to vector<256x128xf32>
    %12 = arith.addf %9, %11 : vector<256x128xf32>
    %cst_10 = arith.constant 0.000000e+00 : f32
    %13 = vector.broadcast %cst_10 : f32 to vector<256x128xf32>
    %14 = arith.maximumf %12, %13 : vector<256x128xf32>
    %15 = math.sqrt %14 : vector<256x128xf32>
    %16 = arith.mulf %5, %15 : vector<256x128xf32>
    %17 = arith.truncf %16 : vector<256x128xf32> to vector<256x128xbf16>
    %c0_11 = arith.constant 0 : index
    %c0_12 = arith.constant 0 : index
    %18 = vector.load %arg6[%c0_11, %c0_12] : memref<256x128xbf16, #tpu.memory_space<vmem>>, vector<256x128xbf16>
    tpu.vector_store %arg6[%c0_11, %c0_12], %17 {strides = array<i32>} : memref<256x128xbf16, #tpu.memory_space<vmem>>, vector<256x128xbf16>,
    return
  }
  func.func @transform_0(%arg0: i32) -> (i32, i32) {
    %c0_i32 = arith.constant 0 : i32
    %c0_i32_0 = arith.constant 0 : i32
    return %arg0, %c0_i32 : i32, i32
  }
  func.func @transform_1(%arg0: i32) -> (i32, i32) {
    %c0_i32 = arith.constant 0 : i32
    %c0_i32_0 = arith.constant 0 : i32
    %c0_i32_1 = arith.constant 0 : i32
    return %c0_i32, %c0_i32_0 : i32, i32
  }
  func.func @transform_2(%arg0: i32) -> (i32, i32) {
    %c0_i32 = arith.constant 0 : i32
    %c0_i32_0 = arith.constant 0 : i32
    %c0_i32_1 = arith.constant 0 : i32
    return %c0_i32, %c0_i32_0 : i32, i32
  }
  func.func @transform_3(%arg0: i32) -> (i32, i32) {
    %c0_i32 = arith.constant 0 : i32
    %c0_i32_0 = arith.constant 0 : i32
    %c0_i32_1 = arith.constant 0 : i32
    return %c0_i32, %c0_i32_0 : i32, i32
  }
  func.func @transform_4(%arg0: i32) -> (i32, i32) {
    %c0_i32 = arith.constant 0 : i32
    %c0_i32_0 = arith.constant 0 : i32
    %c0_i32_1 = arith.constant 0 : i32
    return %c0_i32, %c0_i32_0 : i32, i32
  }
  func.func @transform_5(%arg0: i32) -> (i32, i32) {
    %c0_i32 = arith.constant 0 : i32
    %c0_i32_0 = arith.constant 0 : i32
    return %arg0, %c0_i32 : i32, i32
  }
}

module attributes {stable_mosaic.version = 11 : i64} {
  func.func @_deconv_kernel(%arg0: i32, %arg1: memref<512x288xbf16, #tpu.memory_space<vmem>>, %arg2: memref<288x128xbf16, #tpu.memory_space<vmem>>, %arg3: memref<1x128xf32, #tpu.memory_space<vmem>>, %arg4: memref<512x128xf32, #tpu.memory_space<vmem>>) attributes {dimension_semantics = [#tpu.dimension_semantics<parallel>], iteration_bounds = array<i64: 4>, scalar_prefetch = 0 : i64, scratch_operands = 0 : i64, tpu.core_type = #tpu.core_type<tc>, window_params = [{transform_indices = @transform_0, window_bounds = array<i64: 512, 288>}, {pipeline_mode = #tpu.pipeline_mode<synchronous>, transform_indices = @transform_1, window_bounds = array<i64: 288, 128>}, {pipeline_mode = #tpu.pipeline_mode<synchronous>, transform_indices = @transform_2, window_bounds = array<i64: 1, 128>}, {transform_indices = @transform_3, window_bounds = array<i64: 512, 128>}]} {
    %c0 = arith.constant 0 : index
    %c0_0 = arith.constant 0 : index
    %0 = vector.load %arg1[%c0, %c0_0] : memref<512x288xbf16, #tpu.memory_space<vmem>>, vector<512x288xbf16>
    %c0_1 = arith.constant 0 : index
    %c0_2 = arith.constant 0 : index
    %1 = vector.load %arg2[%c0_1, %c0_2] : memref<288x128xbf16, #tpu.memory_space<vmem>>, vector<288x128xbf16>
    %cst = arith.constant dense<0.000000e+00> : vector<512x128xf32>
    %2 = tpu.matmul %0, %1, %cst {dimension_numbers = #tpu.dot_dimension_numbers<[1], [0], [0], [1], [0, 0, 1, 1], [], []>} : vector<512x288xbf16>, vector<288x128xbf16>, vector<512x128xf32> -> vector<512x128xf32>
    %c0_3 = arith.constant 0 : index
    %c0_4 = arith.constant 0 : index
    %3 = vector.load %arg3[%c0_3, %c0_4] : memref<1x128xf32, #tpu.memory_space<vmem>>, vector<1x128xf32>
    %4 = vector.broadcast %3 : vector<1x128xf32> to vector<512x128xf32>
    %5 = arith.addf %2, %4 : vector<512x128xf32>
    %c0_5 = arith.constant 0 : index
    %c0_6 = arith.constant 0 : index
    %6 = vector.load %arg4[%c0_5, %c0_6] : memref<512x128xf32, #tpu.memory_space<vmem>>, vector<512x128xf32>
    tpu.vector_store %arg4[%c0_5, %c0_6], %5 {strides = array<i32>} : memref<512x128xf32, #tpu.memory_space<vmem>>, vector<512x128xf32>,
    return
  }
  func.func @transform_0(%arg0: i32) -> (i32, i32) {
    %c0_i32 = arith.constant 0 : i32
    %c0_i32_0 = arith.constant 0 : i32
    return %arg0, %c0_i32 : i32, i32
  }
  func.func @transform_1(%arg0: i32) -> (i32, i32) {
    %c0_i32 = arith.constant 0 : i32
    %c0_i32_0 = arith.constant 0 : i32
    %c0_i32_1 = arith.constant 0 : i32
    return %c0_i32, %c0_i32_0 : i32, i32
  }
  func.func @transform_2(%arg0: i32) -> (i32, i32) {
    %c0_i32 = arith.constant 0 : i32
    %c0_i32_0 = arith.constant 0 : i32
    %c0_i32_1 = arith.constant 0 : i32
    return %c0_i32, %c0_i32_0 : i32, i32
  }
  func.func @transform_3(%arg0: i32) -> (i32, i32) {
    %c0_i32 = arith.constant 0 : i32
    %c0_i32_0 = arith.constant 0 : i32
    return %arg0, %c0_i32 : i32, i32
  }
}

</mosaic_0001>

<bundles_post_ra>
// kernel: tile.48
= control target key start
LH: loop header
LB: loop body
LE: loop exit
PB: predicated region body
PF: predicated region fallthrough
CT: control target
= control target key end

     0   :  { %2 = vsyncpa [#allocation1], 0  ;;  %s45_s6 = smov [#allocation0]   ;;  %s65_s0 = inlined_call_operand.hbm [shape: f32[3], index: 0, kind: input, shape index: {}]   ;;  %s66_s1 = inlined_call_operand.vmem [shape: f32[16,3], index: 1, kind: output, shape index: {}]  }
   0x1   :  { %s9_s7 = sshll.u32 %s45_s6, 4  ;;  %s10_s7 = int_to_ptr.vmem [resolvable:$true] %s9_s7 }
   0x2   :  { %s31_s8 = scalar_lea.vmem %s10_s7, 16  ;;  %s35_s9 = scalar_lea.vmem %s10_s7, 32 }
   0x3   :  { %p32_p0 = scmp.ne.s32.totalorder %s10_s7, %s31_s8  ;;  %p36_p1 = scmp.lt.s32.totalorder %s10_s7, %s10_s7 }
   0x4   :  { %p37_p2 = scmp.lt.s32.totalorder %s35_s9, %s31_s8 }
   0x6   :  { %p38_p3 = por %p37_p2, %p36_p1 }
   0x8   :  { %p39_p4 = pnand %p38_p3, %p32_p0 }
   0xa   :  { %42 = shalt.err (!%p39_p4)
}
   0xb   :  { %12 = dma.hbm_to_vmem [thread:$0]  %s65_s0, 16, %s10_s7, [#allocation1]  }
   0xc   :  { %43 = dma.done.wait [#allocation1], 16  }
   0xd   :  { %44 = vsyncadd [#allocation1], 4294967280  ;;  %v16_v0 = vld [vmem:[#allocation0] ss:$0 sm:$0xff] }
   0xe   :  { %17 = vst [vmem:[%s66_s1] sm:$0xff] %v16_v0  ;;  %21 = vst [vmem:[%s66_s1 + $0x8] sm:$0xff] %v16_v0 }
   0xf   :  { %20 = vsyncpa [#allocation1], 1 }

// kernel: tile.28
= control target key start
LH: loop header
LB: loop body
LE: loop exit
PB: predicated region body
PF: predicated region fallthrough
CT: control target
= control target key end

     0   :  { %2 = vsyncpa [#allocation1], 0  ;;  %s42_s6 = smov [#allocation0]   ;;  %s59_s0 = inlined_call_operand.hbm [shape: f32[32], index: 0, kind: input, shape index: {}]   ;;  %s60_s1 = inlined_call_operand.vmem [shape: f32[4,32], index: 1, kind: output, shape index: {}]  }
   0x1   :  { %s9_s7 = sshll.u32 %s42_s6, 4  ;;  %s10_s7 = int_to_ptr.vmem [resolvable:$true] %s9_s7 }
   0x2   :  { %s28_s8 = scalar_lea.vmem %s10_s7, 16  ;;  %s32_s9 = scalar_lea.vmem %s10_s7, 32 }
   0x3   :  { %p29_p0 = scmp.ne.s32.totalorder %s10_s7, %s28_s8  ;;  %p33_p1 = scmp.lt.s32.totalorder %s10_s7, %s10_s7 }
   0x4   :  { %p34_p2 = scmp.lt.s32.totalorder %s32_s9, %s28_s8 }
   0x6   :  { %p35_p3 = por %p34_p2, %p33_p1 }
   0x8   :  { %p36_p4 = pnand %p35_p3, %p29_p0 }
   0xa   :  { %39 = shalt.err (!%p36_p4)
}
   0xb   :  { %12 = dma.hbm_to_vmem [thread:$0]  %s59_s0, 16, %s10_s7, [#allocation1]  }
   0xc   :  { %40 = dma.done.wait [#allocation1], 16  }
   0xd   :  { %41 = vsyncadd [#allocation1], 4294967280  ;;  %v16_v0 = vld [vmem:[#allocation0] ss:$0 sm:$0xff] }
   0xe   :  { %17 = vst [vmem:[%s60_s1] sm:$0xf] %v16_v0 }
   0xf   :  { %18 = vsyncpa [#allocation1], 1 }

// kernel: tile.49
= control target key start
LH: loop header
LB: loop body
LE: loop exit
PB: predicated region body
PF: predicated region fallthrough
CT: control target
= control target key end

     0   :  { %s133_s10 = smov 45   ;;  %s134_s11 = smov 39   ;;  %vm3_vm0 = vcmask 23552   ;;  %vm9_vm1 = vcmask 392552   ;;  %vm15_vm2 = vcmask 367952   ;;  %vm21_vm3 = vcmask 343352   ;;  %s209_s0 = inlined_call_operand.vmem [shape: f32[16,3], index: 0, kind: input, shape index: {}]   ;;  %s210_s1 = inlined_call_operand.vmem [shape: f32[48], index: 1, kind: output, shape index: {}]  }
   0x1   :  { %v103_v0 = vld [vmem:[%s209_s0 + $0xf] sm:$0x1]   ;;  %v105_v1 = vld [vmem:[%s209_s0 + $0xd] sm:$0x1]   ;;  %v104_v2 = vld [vmem:[%s209_s0 + $0xe] sm:$0x1]  }
   0x2   :  { %7 = vrot.lane.b32.xlu0 %v103_v0, %s133_s10  ;;  %19 = vrot.lane.b32.xlu1 %v105_v1, %s134_s11  ;;  %v106_v3 = vld [vmem:[%s209_s0 + $0xc] sm:$0x1]   ;;  %s135_s16 = smov 42   ;;  %s136_s17 = smov 36   ;;  %v107_v4 = vld [vmem:[%s209_s0 + $0xb] sm:$0x1]  }
   0x3   :  { %v108_v5 = vld [vmem:[%s209_s0 + $0xa] sm:$0x1]   ;;  %v2_v6 = vld [vmem:[%s209_s0] sm:$0x1]   ;;  %s137_s24 = smov 33   ;;  %s138_s25 = smov 30  }
   0x4   :  { %4 = vst.msk [vmem:[#allocation0] sm:$0x1] %vm3_vm0, %v2_v6   ;;  %v109_v7 = vld [vmem:[%s209_s0 + $0x9] sm:$0x1]   ;;  %v110_v8 = vld [vmem:[%s209_s0 + $0x8] sm:$0x1]  }
   0x5   :  { %s139_s30 = smov 27   ;;  %s140_s2 = smov 24   ;;  %v111_v9 = vld [vmem:[%s209_s0 + $0x7] sm:$0x1]   ;;  %v112_v10 = vld [vmem:[%s209_s0 + $0x6] sm:$0x1]  }
   0x6   :  { %13 = vrot.lane.b32.xlu0 %v104_v2, %s135_s16  ;;  %25 = vrot.lane.b32.xlu1 %v106_v3, %s136_s17  ;;  %s141_s7 = smov 21   ;;  %s142_s8 = smov 18   ;;  %v113_v11 = vld [vmem:[%s209_s0 + $0x5] sm:$0x1]   ;;  %v114_v12 = vld [vmem:[%s209_s0 + $0x4] sm:$0x1]  }
   0x7   :  { %s143_s13 = smov 15   ;;  %s144_s14 = smov 12   ;;  %v115_v13 = vld [vmem:[%s209_s0 + $0x3] sm:$0x1]   ;;  %v116_v14 = vld [vmem:[%s209_s0 + $0x2] sm:$0x1]  }
   0x8   :  { %s145_s19 = smov 9   ;;  %s146_s20 = smov 6   ;;  %v117_v15 = vld [vmem:[%s209_s0 + $0x1] sm:$0x1]   ;;  %vm27_vm4 = vcmask 318752   ;;  %vm33_vm5 = vcmask 294152  }
   0x9   :  { %s147_s0 = smov 3   ;;  %vm39_vm6 = vcmask 269552   ;;  %vm45_vm7 = vcmask 244952   ;;  %vm51_vm8 = vcmask 220352   ;;  %vm57_vm9 = vcmask 195752  }
   0xa   :  { %31 = vrot.lane.b32.xlu0 %v107_v4, %s137_s24  ;;  %37 = vrot.lane.b32.xlu1 %v108_v5, %s138_s25  ;;  %vm63_vm10 = vcmask 171152   ;;  %vm69_vm11 = vcmask 146552   ;;  %vm75_vm12 = vcmask 121952   ;;  %vm81_vm13 = vcmask 97352  }
   0xb   :  { %vm87_vm14 = vcmask 72752   ;;  %vm93_vm15 = vcmask 48152  }
   0xe   :  { %43 = vrot.lane.b32.xlu0 %v109_v7, %s139_s30  ;;  %49 = vrot.lane.b32.xlu1 %v110_v8, %s140_s2 }
  0x12   :  { %55 = vrot.lane.b32.xlu0 %v111_v9, %s141_s7  ;;  %61 = vrot.lane.b32.xlu1 %v112_v10, %s142_s8 }
  0x16   :  { %67 = vrot.lane.b32.xlu0 %v113_v11, %s143_s13  ;;  %73 = vrot.lane.b32.xlu1 %v114_v12, %s144_s14 }
  0x1a   :  { %79 = vrot.lane.b32.xlu0 %v115_v13, %s145_s19  ;;  %85 = vrot.lane.b32.xlu1 %v116_v14, %s146_s20 }
  0x1e   :  { %91 = vrot.lane.b32.xlu0 %v117_v15, %s147_s0 }
  0x74   :  { %v8_v16 = vpop.permute.xlu0 %7   ;;  %v20_v17 = vpop.permute.xlu1 %19  }
  0x75   :  { %10 = vst.msk [vmem:[#allocation0] sm:$0x1] %vm9_vm1, %v8_v16  }
  0x78   :  { %v14_v18 = vpop.permute.xlu0 %13   ;;  %v26_v19 = vpop.permute.xlu1 %25  }
  0x79   :  { %16 = vst.msk [vmem:[#allocation0] sm:$0x1] %vm15_vm2, %v14_v18  }
  0x7a   :  { %22 = vst.msk [vmem:[#allocation0] sm:$0x1] %vm21_vm3, %v20_v17  }
  0x7b   :  { %28 = vst.msk [vmem:[#allocation0] sm:$0x1] %vm27_vm4, %v26_v19  }
  0x7c   :  { %v32_v20 = vpop.permute.xlu0 %31   ;;  %v38_v21 = vpop.permute.xlu1 %37  }
  0x7d   :  { %34 = vst.msk [vmem:[#allocation0] sm:$0x1] %vm33_vm5, %v32_v20  }
  0x7e   :  { %40 = vst.msk [vmem:[#allocation0] sm:$0x1] %vm39_vm6, %v38_v21  }
  0x80   :  { %v44_v22 = vpop.permute.xlu0 %43   ;;  %v50_v23 = vpop.permute.xlu1 %49  }
  0x81   :  { %46 = vst.msk [vmem:[#allocation0] sm:$0x1] %vm45_vm7, %v44_v22  }
  0x82   :  { %52 = vst.msk [vmem:[#allocation0] sm:$0x1] %vm51_vm8, %v50_v23  }
  0x84   :  { %v56_v24 = vpop.permute.xlu0 %55   ;;  %v62_v25 = vpop.permute.xlu1 %61  }
  0x85   :  { %58 = vst.msk [vmem:[#allocation0] sm:$0x1] %vm57_vm9, %v56_v24  }
  0x86   :  { %64 = vst.msk [vmem:[#allocation0] sm:$0x1] %vm63_vm10, %v62_v25  }
  0x88   :  { %v68_v26 = vpop.permute.xlu0 %67   ;;  %v74_v27 = vpop.permute.xlu1 %73  }
  0x89   :  { %70 = vst.msk [vmem:[#allocation0] sm:$0x1] %vm69_vm11, %v68_v26  }
  0x8a   :  { %76 = vst.msk [vmem:[#allocation0] sm:$0x1] %vm75_vm12, %v74_v27  }
  0x8c   :  { %v80_v28 = vpop.permute.xlu0 %79   ;;  %v86_v29 = vpop.permute.xlu1 %85  }
  0x8d   :  { %82 = vst.msk [vmem:[#allocation0] sm:$0x1] %vm81_vm13, %v80_v28  }
  0x8e   :  { %88 = vst.msk [vmem:[#allocation0] sm:$0x1] %vm87_vm14, %v86_v29  }
  0x90   :  { %v92_v30 = vpop.permute.xlu0 %91  }
  0x91   :  { %94 = vst.msk [vmem:[#allocation0] sm:$0x1] %vm93_vm15, %v92_v30  }
  0x98   :  { %v99_v31 = vld [vmem:[#allocation0] sm:$0x1] }
  0x99   :  { %102 = vst [vmem:[%s210_s1] sm:$0x1] %v99_v31 }

// kernel: synthesis_net_17_forward.3
= control target key start
LH: loop header
LB: loop body
LE: loop exit
PB: predicated region body
PF: predicated region fallthrough
CT: control target
= control target key end

     0   :  { %s1211_s18 = smov 0   ;;  %s1390_s0 = inlined_call_operand.vmem [shape: bf16[128,288], index: 0, kind: input, shape index: {}]   ;;  %s1391_s1 = inlined_call_operand.vmem [shape: bf16[288,128], index: 1, kind: input, shape index: {}]   ;;  %s1392_s2 = inlined_call_operand.vmem [shape: f32[1,128], index: 2, kind: input, shape index: {}]   ;;  %s1393_s3 = inlined_call_operand.vmem [shape: bf16[128,128], index: 3, kind: input, shape index: {}]   ;;  %s1394_s4 = inlined_call_operand.vmem [shape: f32[1,128], index: 4, kind: input, shape index: {}]   ;;  %s1395_s5 = inlined_call_operand.vmem [shape: bf16[128,128], index: 5, kind: output, shape index: {}]  }
   0x1 LB: > { %s918_s19 = sadd.s32 4294967295, %s1179_s18   ;;  %p922_p0 = scmp.ge.s32.totalorder %s1179_s18, 1  ;;  %s1179_s18 = sphi %s1211_s18, %s15_s18  }
   0x2   : > { %p189_p1 = scmp.lt.s32.totalorder %s1179_s18, 3 }
   0x4   : > { %p190_p2 = pnand %p922_p0, %p189_p1 }
   0x5   : > { %s923_s22 = sshll.u32 (!%p190_p2), %s918_s19, 3 }
   0x6   : > { %193 = sbr.rel (%p190_p2) target bundleno = 503 (0x1f7), region = 40  ;;  %p219_p3 = scmp.lt.s32.totalorder (!%p190_p2), %s923_s22, 15 }
   0xb   : > { %v1115_v0 = vld [vmem:[%s1391_s1 + $0x78] sm:$0xff]   ;;  %v1117_v2 = vld [vmem:[%s1391_s1 + $0x70] sm:$0xff]   ;;  %v1119_v4 = vld [vmem:[%s1391_s1 + $0x68] sm:$0xff]   ;;  %s1397_s22 = smov (!%p219_p3, %s923_s22), 15  ;;  %vm459_vm0 = vcmask 261120  }
   0xc   : > { %v1116_v1 = vld [vmem:[%s1391_s1 + $0x38] sm:$0xff]   ;;  %1012 = vmatprep.subr.bf16.mxu0 %v1115_v0  ;;  %v1118_v3 = vld [vmem:[%s1391_s1 + $0x30] sm:$0xff]   ;;  %v1120_v5 = vld [vmem:[%s1391_s1 + $0x28] sm:$0xff]   ;;  %s1106_s12 = smul.u32 12, %s1397_s22  ;;  %s926_s10 = sshll.u32 %s1397_s22, 2 }
   0xd   : > { %1013 = vmatpush3.bf16.msra.mxu0 %v1116_v1  ;;  %v1121_v6 = vld [vmem:[%s1391_s1 + $0x60] sm:$0xff]   ;;  %v1123_v8 = vld [vmem:[%s1391_s1 + $0x58] sm:$0xff]   ;;  %v1130_v10 = vld [vmem:[%s1391_s1 + $0x88] sm:$0xff]   ;;  %s1371_s13 = scalar_lea.vmem %s1395_s5, %s926_s10 }
   0xe   : > { %1014 = vmatprep.subr.bf16.mxu0 %v1117_v2  ;;  %v1122_v7 = vld [vmem:[%s1391_s1 + $0x20] sm:$0xff]   ;;  %v1124_v9 = vld [vmem:[%s1391_s1 + $0x18] sm:$0xff]   ;;  %s1258_s23 = scalar_lea.vmem %s1390_s0, %s1106_s12  ;;  %v1125_v11 = vld [vmem:[%s1391_s1 + $0x50] sm:$0xff]   ;;  %1070 = vmatprep.subr.bf16.mxu1 %v1130_v10 }
   0xf   : > { %v1126_v12 = vld [vmem:[%s1391_s1 + $0x10] sm:$0xff]   ;;  %v1127_v13 = vld [vmem:[%s1391_s1 + $0x48] sm:$0xff]   ;;  %1071 = vmatpush3.bf16.msra.mxu1 %v1130_v10  ;;  %v1135_v15 = vld [vmem:[%s1391_s1 + $0x80] sm:$0xff]  }
  0x10   : > { %v1134_v14 = vld [vmem:[%s1258_s23 + $0x4] ss:$12 sps:$4 sm:$0xff]   ;;  %v1136_v16 = vld [vmem:[%s1258_s23 + $0x8] ss:$12 sps:$4 sm:$0xff]   ;;  %1072 = vmatprep.subr.bf16.mxu1 %v1135_v15  ;;  %v1137_v17 = vld [vmem:[%s1258_s23 + $0x20] ss:$12 sps:$4 sm:$0xff]  }
  0x11   : > { %1015 = vmatpush3.bf16.msra.mxu0 %v1118_v3  ;;  %504 = vmatprep.mubr.bf16.mxu0 %v1134_v14  ;;  %v1128_v18 = vld [vmem:[%s1391_s1 + $0x8] sm:$0xff]   ;;  %v1129_v19 = vld [vmem:[%s1391_s1 + $0x40] sm:$0xff]   ;;  %v1145_v22 = vld [vmem:[%s1258_s23 + $0x50] ss:$12 sps:$4 sm:$0xff]  }
  0x12   : > { %1016 = vmatprep.subr.bf16.mxu0 %v1119_v4  ;;  %1074 = vmatprep.mubr.msk.bf16.mxu1 %vm459_vm0, %v1136_v16  ;;  %v1144_v20 = vld [vmem:[%s1258_s23 + $0x38] ss:$12 sps:$4 sm:$0xff]   ;;  %v1132_v23 = vld [vmem:[%s1258_s23] ss:$12 sps:$4 sm:$0xff]   ;;  %v1138_v25 = vld [vmem:[%s1258_s23 + $0x1c] ss:$12 sps:$4 sm:$0xff]  }
  0x13   : > { %1073 = vmatpush3.bf16.msra.mxu1 %v1135_v15  ;;  %v1131_v21 = vld [vmem:[%s1391_s1] sm:$0xff]   ;;  %v1149_v24 = vld [vmem:[%s1393_s3 + $0x38] sm:$0xff]   ;;  %v1150_v26 = vld [vmem:[%s1393_s3 + $0x30] sm:$0xff]  }
  0x14   : > { %1082 = vmatprep.subr.bf16.mxu1 %v1149_v24  ;;  %v1140_v27 = vld [vmem:[%s1258_s23 + $0x18] ss:$12 sps:$4 sm:$0xff]   ;;  %v1141_v28 = vld [vmem:[%s1258_s23 + $0x34] ss:$12 sps:$4 sm:$0xff]   ;;  %v1143_v29 = vld [vmem:[%s1258_s23 + $0x30] ss:$12 sps:$4 sm:$0xff]  }
  0x15   : > { %1017 = vmatpush3.bf16.msra.mxu0 %v1120_v5  ;;  %v1146_v30 = vld [vmem:[%s1258_s23 + $0x4c] ss:$12 sps:$4 sm:$0xff]   ;;  %v1148_v31 = vld [vmem:[%s1258_s23 + $0x48] ss:$12 sps:$4 sm:$0xff]   ;;  %v1152_v33 = vld [vmem:[%s1393_s3 + $0x20] sm:$0xff]  }
  0x16   : > { %1018 = vmatprep.subr.bf16.mxu0 %v1121_v6  ;;  %1075 = vmatmul.mubr.msk.bf16.vlgmr.msra.gmra.mxu1 %vm459_vm0, %v1137_v17  ;;  %v1151_v32 = vld [vmem:[%s1393_s3 + $0x28] sm:$0xff]   ;;  %v1153_v34 = vld [vmem:[%s1393_s3 + $0x18] sm:$0xff]   ;;  %v1154_v35 = vld [vmem:[%s1393_s3 + $0x10] sm:$0xff]  }
  0x17   : > { %1078 = vmatprep.mubr.msk.bf16.mxu1 %vm459_vm0, %v1144_v20  ;;  %1083 = vmatpush3.bf16.msra.mxu1 %v1149_v24  ;;  %v1155_v36 = vld [vmem:[%s1393_s3 + $0x8] sm:$0xff]   ;;  %v1156_v37 = vld [vmem:[%s1393_s3] sm:$0xff]  }
  0x18   : > { %1084 = vmatprep.subr.bf16.mxu1 %v1150_v26  ;;  %v927_v42 = vld [vmem:[%s1392_s2] ss:$0 sm:$0xff] }
  0x19   : > { %1019 = vmatpush3.bf16.msra.mxu0 %v1122_v7 }
  0x1a   : > { %1020 = vmatprep.subr.bf16.mxu0 %v1123_v8 }
  0x1b   : > { %1085 = vmatpush3.bf16.msra.mxu1 %v1150_v26 }
  0x1c   : > { %1086 = vmatprep.subr.bf16.mxu1 %v1151_v32 }
  0x1d   : > { %1021 = vmatpush3.bf16.msra.mxu0 %v1124_v9 }
  0x1e   : > { %1022 = vmatprep.subr.bf16.mxu0 %v1125_v11  ;;  %1079 = vmatmul.mubr.msk.bf16.gmra.mxu1 %vm459_vm0, %v1145_v22 }
  0x1f   : > { %1087 = vmatpush3.bf16.msra.mxu1 %v1151_v32 }
  0x20   : > { %1088 = vmatprep.subr.bf16.mxu1 %v1152_v33 }
  0x21   : > { %1023 = vmatpush3.bf16.msra.mxu0 %v1126_v12 }
  0x22   : > { %1024 = vmatprep.subr.bf16.mxu0 %v1127_v13 }
  0x23   : > { %1089 = vmatpush3.bf16.msra.mxu1 %v1152_v33 }
  0x24   : > { %1090 = vmatprep.subr.bf16.mxu1 %v1153_v34 }
  0x25   : > { %1025 = vmatpush3.bf16.msra.mxu0 %v1128_v18 }
  0x26   : > { %1026 = vmatprep.subr.bf16.mxu0 %v1129_v19 }
  0x27   : > { %1091 = vmatpush3.bf16.msra.mxu1 %v1153_v34 }
  0x28   : > { %1092 = vmatprep.subr.bf16.mxu1 %v1154_v35 }
  0x29   : > { %1027 = vmatpush3.bf16.msra.mxu0 %v1131_v21 }
  0x2b   : > { %1093 = vmatpush3.bf16.msra.mxu1 %v1154_v35  ;;  %v962_v35 = vld [vmem:[%s1394_s4] ss:$0 sm:$0xff] }
  0x2c   : > { %505 = vmatmul.mubr.bf16.vlgmr.msra.gmra.mxu0 %v1132_v23  ;;  %1094 = vmatprep.subr.bf16.mxu1 %v1155_v36 }
  0x2d   : > { %512 = vmatprep.mubr.bf16.mxu0 %v1138_v25 }
  0x2f   : > { %1095 = vmatpush3.bf16.msra.mxu1 %v1155_v36 }
  0x30   : > { %1096 = vmatprep.subr.bf16.mxu1 %v1156_v37 }
  0x33   : > { %1097 = vmatpush3.bf16.msra.mxu1 %v1156_v37 }
  0x34   : > { %513 = vmatmul.mubr.bf16.gmra.mxu0 %v1140_v27 }
  0x35   : > { %520 = vmatprep.mubr.bf16.mxu0 %v1141_v28 }
  0x3c   : > { %521 = vmatmul.mubr.bf16.gmra.mxu0 %v1143_v29 }
  0x3d   : > { %528 = vmatprep.mubr.bf16.mxu0 %v1146_v30 }
  0x44   : > { %529 = vmatmul.mubr.bf16.gmra.mxu0 %v1148_v31 }
  0xd6   : > { %v1076_v38 = vpop.f32.mrf.mxu1 }
  0xd8   : > { %v571_v40 = vpop.f32.mrf.mxu1 }
  0xda   : > { %v1077_v45 = vpop.f32.mrf.mxu1 }
  0xdc   : > { %v574_v50 = vpop.f32.mrf.mxu1 }
  0xde   : > { %v1080_v57 = vpop.f32.mrf.mxu1 }
  0xe0   : > { %v587_v1 = vpop.f32.mrf.mxu1 }
  0xe2   : > { %v1081_v8 = vpop.f32.mrf.mxu1 }
  0xe4   : > { %v590_v16 = vpop.f32.mrf.mxu1 }
  0xec   : > { %v1028_v39 = vpop.f32.mrf.mxu0 }
  0xee   : > { %v1029_v41 = vpop.f32.mrf.mxu0 }
  0xef   : > { %v1030_v43 = vadd.f32 %v1029_v41, %v1028_v39 }
  0xf0   : > { %v1031_v44 = vpop.f32.mrf.mxu0 }
  0xf1   : > { %v507_v46 = vadd.f32 %v1030_v43, %v927_v42 }
  0xf2   : > { %v1032_v47 = vpop.f32.mrf.mxu0 }
  0xf3   : > { %v1033_v48 = vadd.f32 %v1032_v47, %v1031_v44  ;;  %v1324_v51 = vadd.f32 %v571_v40, %v507_v46 }
  0xf4   : > { %v1034_v49 = vpop.f32.mrf.mxu0 }
  0xf5   : > { %v510_v52 = vadd.f32 %v1033_v48, %v927_v42  ;;  %v602_v58 = vmul.f32 %v1324_v51, %v1324_v51 }
  0xf6   : > { %v1035_v53 = vpop.f32.mrf.mxu0 }
  0xf7   : > { %v1036_v54 = vadd.f32 %v1035_v53, %v1034_v49  ;;  %v1326_v55 = vadd.f32 %v574_v50, %v510_v52 }
  0xf8   : > { %v1037_v56 = vpop.f32.mrf.mxu0 }
  0xf9   : > { %v515_v59 = vadd.f32 %v1036_v54, %v927_v42  ;;  %v603_v60 = vmul.f32 %v1326_v55, %v1326_v55 }
  0xfa   : > { %v1038_v61 = vpop.f32.mrf.mxu0 }
  0xfb   : > { %v1039_v62 = vadd.f32 %v1038_v61, %v1037_v56  ;;  %v610_v63 = vpack.c.bf16 %v603_v60, %v602_v58  ;;  %v1332_v2 = vadd.f32 %v1076_v38, %v515_v59 }
  0xfc   : > { %v1040_v0 = vpop.f32.mrf.mxu0 }
  0xfd   : > { %v518_v3 = vadd.f32 %v1039_v62, %v927_v42  ;;  %1098 = vmatprep.mubr.bf16.mxu1 %v610_v63  ;;  %v604_v9 = vmul.f32 %v1332_v2, %v1332_v2 }
  0xfe   : > { %v1041_v4 = vpop.f32.mrf.mxu0 }
  0xff   : > { %v1334_v5 = vadd.f32 %v1077_v45, %v518_v3  ;;  %v1042_v6 = vadd.f32 %v1041_v4, %v1040_v0 }
 0x100   : > { %v1043_v7 = vpop.f32.mrf.mxu0 }
 0x101   : > { %v605_v10 = vmul.f32 %v1334_v5, %v1334_v5  ;;  %v523_v11 = vadd.f32 %v1042_v6, %v927_v42 }
 0x102   : > { %v1044_v12 = vpop.f32.mrf.mxu0 }
 0x103   : > { %v611_v13 = vpack.c.bf16 %v605_v10, %v604_v9  ;;  %v1045_v14 = vadd.f32 %v1044_v12, %v1043_v7  ;;  %v1340_v17 = vadd.f32 %v587_v1, %v523_v11 }
 0x104   : > { %v1046_v15 = vpop.f32.mrf.mxu0 }
 0x105   : > { %1099 = vmatmul.mubr.bf16.vlgmr.msra.gmra.mxu1 %v611_v13  ;;  %v526_v18 = vadd.f32 %v1045_v14, %v927_v42  ;;  %v606_v23 = vmul.f32 %v1340_v17, %v1340_v17 }
 0x106   : > { %v1047_v19 = vpop.f32.mrf.mxu0 }
 0x107   : > { %v1048_v20 = vadd.f32 %v1047_v19, %v1046_v15  ;;  %v1342_v21 = vadd.f32 %v590_v16, %v526_v18 }
 0x108   : > { %v1049_v22 = vpop.f32.mrf.mxu0 }
 0x109   : > { %v531_v24 = vadd.f32 %v1048_v20, %v927_v42  ;;  %v607_v25 = vmul.f32 %v1342_v21, %v1342_v21 }
 0x10a   : > { %v1050_v26 = vpop.f32.mrf.mxu0 }
 0x10b   : > { %v1051_v27 = vadd.f32 %v1050_v26, %v1049_v22  ;;  %v612_v28 = vpack.c.bf16 %v607_v25, %v606_v23  ;;  %v1348_v29 = vadd.f32 %v1080_v57, %v531_v24 }
 0x10d   : > { %v534_v30 = vadd.f32 %v1051_v27, %v927_v42  ;;  %1102 = vmatprep.mubr.bf16.mxu1 %v612_v28  ;;  %v608_v32 = vmul.f32 %v1348_v29, %v1348_v29 }
 0x10f   : > { %v1350_v31 = vadd.f32 %v1081_v8, %v534_v30 }
 0x111   : > { %v609_v33 = vmul.f32 %v1350_v31, %v1350_v31 }
 0x113   : > { %v613_v34 = vpack.c.bf16 %v609_v33, %v608_v32 }
 0x115   : > { %1103 = vmatmul.mubr.bf16.gmra.mxu1 %v613_v34 }
 0x1c5   : > { %v1100_v36 = vpop.f32.mrf.mxu1 }
 0x1c6   : > { %v728_v37 = vadd.f32 %v1100_v36, %v962_v35 }
 0x1c7   : > { %v719_v38 = vpop.f32.mrf.mxu1 }
 0x1c8   : > { %v752_v39 = vmax.f32 %v728_v37, 0.0  ;;  %v720_v40 = vadd.f32 %v962_v35, %v719_v38 }
 0x1c9   : > { %v1101_v41 = vpop.f32.mrf.mxu1 }
 0x1ca   : > { %1157 = vrsqrt.f32 %v752_v39  ;;  %v750_v42 = vmax.f32 %v720_v40, 0.0  ;;  %v731_v43 = vadd.f32 %v1101_v41, %v962_v35  ;;  %vm774_vm1 = vcmp.eq.f32.partialorder %v752_v39, inf }
 0x1cb   : > { %v722_v44 = vpop.f32.mrf.mxu1  ;;  %vm776_vm2 = vcmp.eq.f32.partialorder %v752_v39, 0.0  ;;  %v777_v59 = vand.u32 2147483648, %v752_v39 }
 0x1cc   : > { %v723_v45 = vadd.f32 %v962_v35, %v722_v44  ;;  %1159 = vrsqrt.f32 %v750_v42  ;;  %v753_v46 = vmax.f32 %v731_v43, 0.0  ;;  %vm760_vm3 = vcmp.eq.f32.partialorder %v750_v42, inf }
 0x1cd   : > { %vm762_vm4 = vcmp.eq.f32.partialorder %v750_v42, 0.0  ;;  %v763_v6 = vand.u32 2147483648, %v750_v42 }
 0x1ce   : > { %v751_v47 = vmax.f32 %v723_v45, 0.0  ;;  %1161 = vrsqrt.f32 %v753_v46  ;;  %vm781_vm5 = vcmp.eq.f32.partialorder %v753_v46, inf  ;;  %vm783_vm6 = vcmp.eq.f32.partialorder %v753_v46, 0.0 }
 0x1cf   : > { %v784_v9 = vand.u32 2147483648, %v753_v46 }
 0x1d0   : > { %1163 = vrsqrt.f32 %v751_v47  ;;  %vm767_vm7 = vcmp.eq.f32.partialorder %v751_v47, inf  ;;  %v770_v16 = vand.u32 2147483648, %v751_v47  ;;  %vm769_vm8 = vcmp.eq.f32.partialorder %v751_v47, 0.0 }
 0x1d5   : > { %v1104_v48 = vpop.f32.mrf.mxu1 }
 0x1d6   : > { %v744_v49 = vadd.f32 %v1104_v48, %v962_v35 }
 0x1d7   : > { %v1158_v50 = vpop.eup %1157  ;;  %v735_v52 = vpop.f32.mrf.mxu1 }
 0x1d8   : > { %v773_v53 = vmul.f32 %v1158_v50, %v752_v39  ;;  %v1359_v54 = vmax.f32 %v744_v49, 0.0  ;;  %v736_v56 = vadd.f32 %v962_v35, %v735_v52 }
 0x1d9   : > { %v1105_v57 = vpop.f32.mrf.mxu1  ;;  %v1160_v58 = vpop.eup %1159 }
 0x1da   : > { %1165 = vrsqrt.f32 %v1359_v54  ;;  %v759_v60 = vmul.f32 %v1160_v58, %v750_v42  ;;  %v754_v61 = vmax.f32 %v736_v56, 0.0  ;;  %v775_v63 = vsel %vm774_vm1, %v752_v39, %v773_v53 }
 0x1db   : > { %v738_v62 = vpop.f32.mrf.mxu1  ;;  %v747_v0 = vadd.f32 %v1105_v57, %v962_v35  ;;  %v1162_v3 = vpop.eup %1161  ;;  %v778_v11 = vsel %vm776_vm2, %v777_v59, %v775_v63  ;;  %vm802_vm9 = vcmp.eq.f32.partialorder %v1359_v54, inf  ;;  %vm804_vm11 = vcmp.eq.f32.partialorder %v1359_v54, 0.0 }
 0x1dc   : > { %v739_v1 = vadd.f32 %v962_v35, %v738_v62  ;;  %v761_v4 = vsel %vm760_vm3, %v750_v42, %v759_v60  ;;  %1167 = vrsqrt.f32 %v754_v61  ;;  %v780_v8 = vmul.f32 %v1162_v3, %v753_v46 }
 0x1dd   : > { %v1164_v7 = vpop.eup %1163  ;;  %v757_v10 = vmax.f32 %v747_v0, 0.0  ;;  %v764_v14 = vsel %vm762_vm4, %v763_v6, %v761_v4  ;;  %v816_v20 = vmul.f32 %v778_v11, %v1332_v2  ;;  %vm788_vm10 = vcmp.eq.f32.partialorder %v754_v61, inf }
 0x1de   : > { %v766_v12 = vmul.f32 %v1164_v7, %v751_v47  ;;  %v755_v13 = vmax.f32 %v739_v1, 0.0  ;;  %v782_v15 = vsel %vm781_vm5, %v753_v46, %v780_v8  ;;  %v814_v24 = vmul.f32 %v764_v14, %v1324_v51 }
 0x1df   : > { %1169 = vrsqrt.f32 %v757_v10  ;;  %v785_v18 = vsel %vm783_vm6, %v784_v9, %v782_v15  ;;  %v805_v33 = vand.u32 2147483648, %v1359_v54  ;;  %vm790_vm12 = vcmp.eq.f32.partialorder %v754_v61, 0.0 }
 0x1e0   : > { %v768_v19 = vsel %vm767_vm7, %v751_v47, %v766_v12  ;;  %1171 = vrsqrt.f32 %v755_v13  ;;  %v817_v22 = vmul.f32 %v785_v18, %v1334_v5  ;;  %v791_v35 = vand.u32 2147483648, %v754_v61 }
 0x1e1   : > { %v771_v23 = vsel %vm769_vm8, %v770_v16, %v768_v19  ;;  %vm809_vm13 = vcmp.eq.f32.partialorder %v757_v10, inf  ;;  %vm811_vm14 = vcmp.eq.f32.partialorder %v757_v10, 0.0  ;;  %v812_v38 = vand.u32 2147483648, %v757_v10 }
 0x1e2   : > { %v815_v25 = vmul.f32 %v771_v23, %v1326_v55  ;;  %v997_v26 = vpack.c.bf16 %v817_v22, %v816_v20  ;;  %vm795_vm15 = vcmp.eq.f32.partialorder %v755_v13, inf  ;;  %v798_v42 = vand.u32 2147483648, %v755_v13 }
 0x1e3   : > { %vm797_vm0 = vcmp.eq.f32.partialorder %v755_v13, 0.0 }
 0x1e4   : > { %v992_v27 = vpack.c.bf16 %v815_v25, %v814_v24  ;;  %1009 = vst [vmem:[%s1371_s13 + $0x8] sm:$0xff] %v997_v26  }
 0x1e6   : > { %993 = vst [vmem:[%s1371_s13] sm:$0xff] %v992_v27  }
 0x1e7   : > { %v1166_v28 = vpop.eup %1165 }
 0x1e8   : > { %v801_v2 = vmul.f32 %v1166_v28, %v1359_v54 }
 0x1e9   : > { %v1168_v5 = vpop.eup %1167 }
 0x1ea   : > { %v787_v51 = vmul.f32 %v1168_v5, %v754_v61  ;;  %v803_v30 = vsel %vm802_vm9, %v1359_v54, %v801_v2 }
 0x1eb   : > { %v806_v37 = vsel %vm804_vm11, %v805_v33, %v803_v30 }
 0x1ec   : > { %v1170_v32 = vpop.eup %1169  ;;  %v789_v55 = vsel %vm788_vm10, %v754_v61, %v787_v51  ;;  %v820_v45 = vmul.f32 %v806_v37, %v1348_v29 }
 0x1ed   : > { %v1172_v34 = vpop.eup %1171  ;;  %v808_v36 = vmul.f32 %v1170_v32, %v757_v10  ;;  %v792_v40 = vsel %vm790_vm12, %v791_v35, %v789_v55 }
 0x1ee   : > { %v794_v39 = vmul.f32 %v1172_v34, %v755_v13  ;;  %v818_v48 = vmul.f32 %v792_v40, %v1340_v17 }
 0x1ef   : > { %v810_v41 = vsel %vm809_vm13, %v757_v10, %v808_v36 }
 0x1f0   : > { %v813_v43 = vsel %vm811_vm14, %v812_v38, %v810_v41  ;;  %v796_v44 = vsel %vm795_vm15, %v755_v13, %v794_v39 }
 0x1f1   : > { %v821_v46 = vmul.f32 %v813_v43, %v1350_v31  ;;  %v799_v47 = vsel %vm797_vm0, %v798_v42, %v796_v44 }
 0x1f2   : > { %v819_v49 = vmul.f32 %v799_v47, %v1342_v21 }
 0x1f3   : > { %v1007_v50 = vpack.c.bf16 %v821_v46, %v820_v45 }
 0x1f4   : > { %v1002_v52 = vpack.c.bf16 %v819_v49, %v818_v48 }
 0x1f5   : > { %1011 = vst [vmem:[%s1371_s13 + $0x18] sm:$0xff] %v1007_v50  }
 0x1f6   : > { %1010 = vst [vmem:[%s1371_s13 + $0x10] sm:$0xff] %v1002_v52  }
 0x1f7 PF: > { %s15_s18 = sadd.s32 1, %s1179_s18  }
 0x1f8   : > { %p12_p4 = scmp.ge.s32.totalorder %s15_s18, 4  }
 0x1fa   :  { %14 = sbr.rel (!%p12_p4) target bundleno = 1 (0x1), region = 70 }

// kernel: synthesis_net_17_forward.4
= control target key start
LH: loop header
LB: loop body
LE: loop exit
PB: predicated region body
PF: predicated region fallthrough
CT: control target
= control target key end

     0   :  { %s2543_s18 = smov 0   ;;  %s3186_s0 = inlined_call_operand.vmem [shape: bf16[512,288], index: 0, kind: input, shape index: {}]   ;;  %s3187_s1 = inlined_call_operand.vmem [shape: bf16[288,128], index: 1, kind: input, shape index: {}]   ;;  %s3188_s2 = inlined_call_operand.vmem [shape: f32[1,128], index: 2, kind: input, shape index: {}]   ;;  %s3189_s3 = inlined_call_operand.vmem [shape: bf16[128,128], index: 3, kind: input, shape index: {}]   ;;  %s3190_s4 = inlined_call_operand.vmem [shape: f32[1,128], index: 4, kind: input, shape index: {}]   ;;  %s3191_s5 = inlined_call_operand.vmem [shape: bf16[512,128], index: 5, kind: output, shape index: {}]  }
   0x1 LB: > { %s1842_s19 = sadd.s32 4294967295, %s2511_s18   ;;  %p1846_p0 = scmp.ge.s32.totalorder %s2511_s18, 1  ;;  %s2511_s18 = sphi %s2543_s18, %s15_s18  }
   0x2   : > { %p189_p1 = scmp.lt.s32.totalorder %s2511_s18, 3 }
   0x4   : > { %p190_p2 = pnand %p1846_p0, %p189_p1 }
   0x5   : > { %s1847_s22 = sshll.u32 (!%p190_p2), %s1842_s19, 5 }
   0x6   : > { %193 = sbr.rel (%p190_p2) target bundleno = 599 (0x257), region = 40  ;;  %p219_p3 = scmp.lt.s32.totalorder (!%p190_p2), %s1847_s22, 63 }
   0xb   : > { %v2351_v0 = vld [vmem:[%s3187_s1 + $0x78] sm:$0xff]   ;;  %v2353_v2 = vld [vmem:[%s3187_s1 + $0x70] sm:$0xff]   ;;  %v2355_v4 = vld [vmem:[%s3187_s1 + $0x68] sm:$0xff]   ;;  %s3193_s22 = smov (!%p219_p3, %s1847_s22), 63  ;;  %vm687_vm0 = vcmask 261120  }
   0xc   : > { %v2352_v1 = vld [vmem:[%s3187_s1 + $0x38] sm:$0xff]   ;;  %2104 = vmatprep.subr.bf16.mxu0 %v2351_v0  ;;  %v2354_v3 = vld [vmem:[%s3187_s1 + $0x30] sm:$0xff]   ;;  %v2356_v5 = vld [vmem:[%s3187_s1 + $0x28] sm:$0xff]   ;;  %s2342_s12 = smul.u32 12, %s3193_s22  ;;  %s1850_s10 = sshll.u32 %s3193_s22, 2 }
   0xd   : > { %2105 = vmatpush3.bf16.msra.mxu0 %v2352_v1  ;;  %v2357_v6 = vld [vmem:[%s3187_s1 + $0x60] sm:$0xff]   ;;  %v2359_v8 = vld [vmem:[%s3187_s1 + $0x58] sm:$0xff]   ;;  %v2366_v10 = vld [vmem:[%s3187_s1 + $0x88] sm:$0xff]   ;;  %s2900_s22 = scalar_lea.vmem %s3191_s5, %s1850_s10 }
   0xe   : > { %2106 = vmatprep.subr.bf16.mxu0 %v2353_v2  ;;  %v2358_v7 = vld [vmem:[%s3187_s1 + $0x20] sm:$0xff]   ;;  %v2360_v9 = vld [vmem:[%s3187_s1 + $0x18] sm:$0xff]   ;;  %s2590_s23 = scalar_lea.vmem %s3186_s0, %s2342_s12  ;;  %v2361_v11 = vld [vmem:[%s3187_s1 + $0x50] sm:$0xff]   ;;  %2258 = vmatprep.subr.bf16.mxu1 %v2366_v10 }
   0xf   : > { %v2362_v12 = vld [vmem:[%s3187_s1 + $0x10] sm:$0xff]   ;;  %v2363_v13 = vld [vmem:[%s3187_s1 + $0x48] sm:$0xff]   ;;  %2259 = vmatpush3.bf16.msra.mxu1 %v2366_v10  ;;  %v2371_v15 = vld [vmem:[%s3187_s1 + $0x80] sm:$0xff]  }
  0x10   : > { %v2370_v14 = vld [vmem:[%s2590_s23 + $0x4] ss:$12 sps:$4 sm:$0xff]   ;;  %v2372_v16 = vld [vmem:[%s2590_s23 + $0x8] ss:$12 sps:$4 sm:$0xff]   ;;  %2260 = vmatprep.subr.bf16.mxu1 %v2371_v15  ;;  %v2373_v17 = vld [vmem:[%s2590_s23 + $0x20] ss:$12 sps:$4 sm:$0xff]  }
  0x11   : > { %2107 = vmatpush3.bf16.msra.mxu0 %v2354_v3  ;;  %768 = vmatprep.mubr.bf16.mxu0 %v2370_v14  ;;  %v2364_v18 = vld [vmem:[%s3187_s1 + $0x8] sm:$0xff]   ;;  %v2365_v19 = vld [vmem:[%s3187_s1 + $0x40] sm:$0xff]   ;;  %v2381_v23 = vld [vmem:[%s2590_s23 + $0x50] ss:$12 sps:$4 sm:$0xff]  }
  0x12   : > { %2108 = vmatprep.subr.bf16.mxu0 %v2355_v4  ;;  %2262 = vmatprep.mubr.msk.bf16.mxu1 %vm687_vm0, %v2372_v16  ;;  %v2380_v20 = vld [vmem:[%s2590_s23 + $0x38] ss:$12 sps:$4 sm:$0xff]   ;;  %v2368_v22 = vld [vmem:[%s2590_s23] ss:$12 sps:$4 sm:$0xff]   ;;  %v2388_v24 = vld [vmem:[%s2590_s23 + $0x68] ss:$12 sps:$4 sm:$0xff]  }
  0x13   : > { %2261 = vmatpush3.bf16.msra.mxu1 %v2371_v15  ;;  %v2367_v21 = vld [vmem:[%s3187_s1] sm:$0xff]   ;;  %v2374_v25 = vld [vmem:[%s2590_s23 + $0x1c] ss:$12 sps:$4 sm:$0xff]   ;;  %v2382_v33 = vld [vmem:[%s2590_s23 + $0x4c] ss:$12 sps:$4 sm:$0xff]  }
  0x14   : > { %v2376_v26 = vld [vmem:[%s2590_s23 + $0x18] ss:$12 sps:$4 sm:$0xff]   ;;  %v2389_v27 = vld [vmem:[%s2590_s23 + $0x80] ss:$12 sps:$4 sm:$0xff]   ;;  %v2379_v30 = vld [vmem:[%s2590_s23 + $0x30] ss:$12 sps:$4 sm:$0xff]  }
  0x15   : > { %2109 = vmatpush3.bf16.msra.mxu0 %v2356_v5  ;;  %v2396_v28 = vld [vmem:[%s2590_s23 + $0x98] ss:$12 sps:$4 sm:$0xff]   ;;  %v2377_v29 = vld [vmem:[%s2590_s23 + $0x34] ss:$12 sps:$4 sm:$0xff]   ;;  %v2397_v31 = vld [vmem:[%s2590_s23 + $0xb0] ss:$12 sps:$4 sm:$0xff]  }
  0x16   : > { %2110 = vmatprep.subr.bf16.mxu0 %v2357_v6  ;;  %2263 = vmatmul.mubr.msk.bf16.vlgmr.msra.gmra.mxu1 %vm687_vm0, %v2373_v17  ;;  %v2404_v32 = vld [vmem:[%s2590_s23 + $0xc8] ss:$12 sps:$4 sm:$0xff]   ;;  %v2405_v35 = vld [vmem:[%s2590_s23 + $0xe0] ss:$12 sps:$4 sm:$0xff]   ;;  %v2412_v36 = vld [vmem:[%s2590_s23 + $0xf8] ss:$12 sps:$4 sm:$0xff]  }
  0x17   : > { %2266 = vmatprep.mubr.msk.bf16.mxu1 %vm687_vm0, %v2380_v20  ;;  %v2384_v34 = vld [vmem:[%s2590_s23 + $0x48] ss:$12 sps:$4 sm:$0xff]   ;;  %v2385_v37 = vld [vmem:[%s2590_s23 + $0x64] ss:$12 sps:$4 sm:$0xff]   ;;  %v2433_v38 = vld [vmem:[%s3189_s3 + $0x38] sm:$0xff]  }
  0x18   : > { %v2434_v39 = vld [vmem:[%s3189_s3 + $0x30] sm:$0xff]   ;;  %2294 = vmatprep.subr.bf16.mxu1 %v2433_v38  ;;  %v2387_v41 = vld [vmem:[%s2590_s23 + $0x60] ss:$12 sps:$4 sm:$0xff]   ;;  %v2390_v43 = vld [vmem:[%s2590_s23 + $0x7c] ss:$12 sps:$4 sm:$0xff]  }
  0x19   : > { %2111 = vmatpush3.bf16.msra.mxu0 %v2358_v7  ;;  %2295 = vmatpush3.bf16.msra.mxu1 %v2433_v38  ;;  %v2413_v40 = vld [vmem:[%s2590_s23 + $0x110] ss:$12 sps:$4 sm:$0xff]   ;;  %v2420_v42 = vld [vmem:[%s2590_s23 + $0x128] ss:$12 sps:$4 sm:$0xff]   ;;  %v2421_v44 = vld [vmem:[%s2590_s23 + $0x140] ss:$12 sps:$4 sm:$0xff]  }
  0x1a   : > { %2112 = vmatprep.subr.bf16.mxu0 %v2359_v8  ;;  %2296 = vmatprep.subr.bf16.mxu1 %v2434_v39  ;;  %v2392_v45 = vld [vmem:[%s2590_s23 + $0x78] ss:$12 sps:$4 sm:$0xff]   ;;  %v2393_v47 = vld [vmem:[%s2590_s23 + $0x94] ss:$12 sps:$4 sm:$0xff]   ;;  %v2429_v48 = vld [vmem:[%s2590_s23 + $0x170] ss:$12 sps:$4 sm:$0xff]  }
  0x1b   : > { %v2428_v46 = vld [vmem:[%s2590_s23 + $0x158] ss:$12 sps:$4 sm:$0xff]   ;;  %v2395_v49 = vld [vmem:[%s2590_s23 + $0x90] ss:$12 sps:$4 sm:$0xff]   ;;  %v2400_v51 = vld [vmem:[%s2590_s23 + $0xa8] ss:$12 sps:$4 sm:$0xff]  }
  0x1c   : > { %v2398_v50 = vld [vmem:[%s2590_s23 + $0xac] ss:$12 sps:$4 sm:$0xff]   ;;  %v2401_v52 = vld [vmem:[%s2590_s23 + $0xc4] ss:$12 sps:$4 sm:$0xff]   ;;  %v2406_v54 = vld [vmem:[%s2590_s23 + $0xdc] ss:$12 sps:$4 sm:$0xff]  }
  0x1d   : > { %2113 = vmatpush3.bf16.msra.mxu0 %v2360_v9  ;;  %2297 = vmatpush3.bf16.msra.mxu1 %v2434_v39  ;;  %v2403_v53 = vld [vmem:[%s2590_s23 + $0xc0] ss:$12 sps:$4 sm:$0xff]   ;;  %v2408_v57 = vld [vmem:[%s2590_s23 + $0xd8] ss:$12 sps:$4 sm:$0xff]   ;;  %v2438_v60 = vld [vmem:[%s3189_s3 + $0x10] sm:$0xff]  }
  0x1e   : > { %2114 = vmatprep.subr.bf16.mxu0 %v2361_v11  ;;  %2267 = vmatmul.mubr.msk.bf16.gmra.mxu1 %vm687_vm0, %v2381_v23  ;;  %v2435_v55 = vld [vmem:[%s3189_s3 + $0x28] sm:$0xff]   ;;  %v2436_v56 = vld [vmem:[%s3189_s3 + $0x20] sm:$0xff]   ;;  %v2437_v59 = vld [vmem:[%s3189_s3 + $0x18] sm:$0xff]  }
  0x1f   : > { %2270 = vmatprep.mubr.msk.bf16.mxu1 %vm687_vm0, %v2388_v24  ;;  %2298 = vmatprep.subr.bf16.mxu1 %v2435_v55  ;;  %v2409_v58 = vld [vmem:[%s2590_s23 + $0xf4] ss:$12 sps:$4 sm:$0xff]   ;;  %v2411_v61 = vld [vmem:[%s2590_s23 + $0xf0] ss:$12 sps:$4 sm:$0xff]   ;;  %v2414_v62 = vld [vmem:[%s2590_s23 + $0x10c] ss:$12 sps:$4 sm:$0xff]  }
  0x20   : > { %v2439_v63 = vld [vmem:[%s3189_s3 + $0x8] sm:$0xff]   ;;  %v2440_v0 = vld [vmem:[%s3189_s3] sm:$0xff]   ;;  %v2427_v7 = vld [vmem:[%s2590_s23 + $0x150] ss:$12 sps:$4 sm:$0xff]  }
  0x21   : > { %2115 = vmatpush3.bf16.msra.mxu0 %v2362_v12  ;;  %2299 = vmatpush3.bf16.msra.mxu1 %v2435_v55  ;;  %v2416_v1 = vld [vmem:[%s2590_s23 + $0x108] ss:$12 sps:$4 sm:$0xff]   ;;  %v2417_v2 = vld [vmem:[%s2590_s23 + $0x124] ss:$12 sps:$4 sm:$0xff]   ;;  %v2419_v3 = vld [vmem:[%s2590_s23 + $0x120] ss:$12 sps:$4 sm:$0xff]  }
  0x22   : > { %2116 = vmatprep.subr.bf16.mxu0 %v2363_v13  ;;  %2300 = vmatprep.subr.bf16.mxu1 %v2436_v56  ;;  %v2422_v4 = vld [vmem:[%s2590_s23 + $0x13c] ss:$12 sps:$4 sm:$0xff]   ;;  %v2424_v5 = vld [vmem:[%s2590_s23 + $0x138] ss:$12 sps:$4 sm:$0xff]   ;;  %v2425_v6 = vld [vmem:[%s2590_s23 + $0x154] ss:$12 sps:$4 sm:$0xff]  }
  0x23   : > { %v2430_v8 = vld [vmem:[%s2590_s23 + $0x16c] ss:$12 sps:$4 sm:$0xff]   ;;  %v2432_v9 = vld [vmem:[%s2590_s23 + $0x168] ss:$12 sps:$4 sm:$0xff]   ;;  %v2704_v14 = vld [vmem:[%s3188_s2] ss:$0 sm:$0xff] }
  0x25   : > { %2117 = vmatpush3.bf16.msra.mxu0 %v2364_v18  ;;  %2301 = vmatpush3.bf16.msra.mxu1 %v2436_v56 }
  0x26   : > { %2118 = vmatprep.subr.bf16.mxu0 %v2365_v19  ;;  %2271 = vmatmul.mubr.msk.bf16.gmra.mxu1 %vm687_vm0, %v2389_v27 }
  0x27   : > { %2274 = vmatprep.mubr.msk.bf16.mxu1 %vm687_vm0, %v2396_v28  ;;  %2302 = vmatprep.subr.bf16.mxu1 %v2437_v59 }
  0x29   : > { %2119 = vmatpush3.bf16.msra.mxu0 %v2367_v21  ;;  %2303 = vmatpush3.bf16.msra.mxu1 %v2437_v59 }
  0x2a   : > { %2304 = vmatprep.subr.bf16.mxu1 %v2438_v60 }
  0x2c   : > { %769 = vmatmul.mubr.bf16.vlgmr.msra.gmra.mxu0 %v2368_v22 }
  0x2d   : > { %776 = vmatprep.mubr.bf16.mxu0 %v2374_v25  ;;  %2305 = vmatpush3.bf16.msra.mxu1 %v2438_v60 }
  0x2e   : > { %2275 = vmatmul.mubr.msk.bf16.gmra.mxu1 %vm687_vm0, %v2397_v31  ;;  %2306 = vmatprep.subr.bf16.mxu1 %v2439_v63 }
  0x2f   : > { %2278 = vmatprep.mubr.msk.bf16.mxu1 %vm687_vm0, %v2404_v32 }
  0x31   : > { %2307 = vmatpush3.bf16.msra.mxu1 %v2439_v63 }
  0x32   : > { %2308 = vmatprep.subr.bf16.mxu1 %v2440_v0 }
  0x34   : > { %777 = vmatmul.mubr.bf16.gmra.mxu0 %v2376_v26 }
  0x35   : > { %784 = vmatprep.mubr.bf16.mxu0 %v2377_v29  ;;  %2309 = vmatpush3.bf16.msra.mxu1 %v2440_v0 }
  0x36   : > { %2279 = vmatmul.mubr.msk.bf16.gmra.mxu1 %vm687_vm0, %v2405_v35 }
  0x37   : > { %2282 = vmatprep.mubr.msk.bf16.mxu1 %vm687_vm0, %v2412_v36 }
  0x3c   : > { %785 = vmatmul.mubr.bf16.gmra.mxu0 %v2379_v30 }
  0x3d   : > { %792 = vmatprep.mubr.bf16.mxu0 %v2382_v33 }
  0x3e   : > { %2283 = vmatmul.mubr.msk.bf16.gmra.mxu1 %vm687_vm0, %v2413_v40 }
  0x3f   : > { %2286 = vmatprep.mubr.msk.bf16.mxu1 %vm687_vm0, %v2420_v42 }
  0x44   : > { %793 = vmatmul.mubr.bf16.gmra.mxu0 %v2384_v34 }
  0x45   : > { %800 = vmatprep.mubr.bf16.mxu0 %v2385_v37 }
  0x46   : > { %2287 = vmatmul.mubr.msk.bf16.gmra.mxu1 %vm687_vm0, %v2421_v44 }
  0x47   : > { %2290 = vmatprep.mubr.msk.bf16.mxu1 %vm687_vm0, %v2428_v46 }
  0x4c   : > { %801 = vmatmul.mubr.bf16.gmra.mxu0 %v2387_v41 }
  0x4d   : > { %808 = vmatprep.mubr.bf16.mxu0 %v2390_v43 }
  0x4e   : > { %2291 = vmatmul.mubr.msk.bf16.gmra.mxu1 %vm687_vm0, %v2429_v48 }
  0x54   : > { %809 = vmatmul.mubr.bf16.gmra.mxu0 %v2392_v45 }
  0x55   : > { %816 = vmatprep.mubr.bf16.mxu0 %v2393_v47 }
  0x5c   : > { %817 = vmatmul.mubr.bf16.gmra.mxu0 %v2395_v49 }
  0x5d   : > { %824 = vmatprep.mubr.bf16.mxu0 %v2398_v50 }
  0x64   : > { %825 = vmatmul.mubr.bf16.gmra.mxu0 %v2400_v51 }
  0x65   : > { %832 = vmatprep.mubr.bf16.mxu0 %v2401_v52 }
  0x6c   : > { %833 = vmatmul.mubr.bf16.gmra.mxu0 %v2403_v53 }
  0x6d   : > { %840 = vmatprep.mubr.bf16.mxu0 %v2406_v54 }
  0x74   : > { %841 = vmatmul.mubr.bf16.gmra.mxu0 %v2408_v57 }
  0x75   : > { %848 = vmatprep.mubr.bf16.mxu0 %v2409_v58 }
  0x7c   : > { %849 = vmatmul.mubr.bf16.gmra.mxu0 %v2411_v61 }
  0x7d   : > { %856 = vmatprep.mubr.bf16.mxu0 %v2414_v62 }
  0x84   : > { %857 = vmatmul.mubr.bf16.gmra.mxu0 %v2416_v1 }
  0x85   : > { %864 = vmatprep.mubr.bf16.mxu0 %v2417_v2 }
  0x8c   : > { %865 = vmatmul.mubr.bf16.gmra.mxu0 %v2419_v3 }
  0x8d   : > { %872 = vmatprep.mubr.bf16.mxu0 %v2422_v4 }
  0x94   : > { %873 = vmatmul.mubr.bf16.gmra.mxu0 %v2424_v5 }
  0x95   : > { %880 = vmatprep.mubr.bf16.mxu0 %v2425_v6 }
  0x9c   : > { %881 = vmatmul.mubr.bf16.gmra.mxu0 %v2427_v7 }
  0x9d   : > { %888 = vmatprep.mubr.bf16.mxu0 %v2430_v8 }
  0xa4   : > { %889 = vmatmul.mubr.bf16.gmra.mxu0 %v2432_v9 }
  0xd6   : > { %v2264_v10 = vpop.f32.mrf.mxu1 }
  0xd8   : > { %v931_v12 = vpop.f32.mrf.mxu1 }
  0xda   : > { %v2265_v17 = vpop.f32.mrf.mxu1 }
  0xdc   : > { %v934_v22 = vpop.f32.mrf.mxu1 }
  0xde   : > { %v2268_v29 = vpop.f32.mrf.mxu1 }
  0xe0   : > { %v947_v37 = vpop.f32.mrf.mxu1 }
  0xe2   : > { %v2269_v44 = vpop.f32.mrf.mxu1 }
  0xe4   : > { %v950_v52 = vpop.f32.mrf.mxu1 }
  0xe6   : > { %v2272_v59 = vpop.f32.mrf.mxu1 }
  0xe8   : > { %v963_v3 = vpop.f32.mrf.mxu1 }
  0xec   : > { %v2120_v11 = vpop.f32.mrf.mxu0 }
  0xee   : > { %v2121_v13 = vpop.f32.mrf.mxu0 }
  0xef   : > { %v2122_v15 = vadd.f32 %v2121_v13, %v2120_v11 }
  0xf0   : > { %v2123_v16 = vpop.f32.mrf.mxu0 }
  0xf1   : > { %v771_v18 = vadd.f32 %v2122_v15, %v2704_v14 }
  0xf2   : > { %v2124_v19 = vpop.f32.mrf.mxu0 }
  0xf3   : > { %v2125_v20 = vadd.f32 %v2124_v19, %v2123_v16  ;;  %v2707_v23 = vadd.f32 %v931_v12, %v771_v18 }
  0xf4   : > { %v2126_v21 = vpop.f32.mrf.mxu0 }
  0xf5   : > { %v774_v24 = vadd.f32 %v2125_v20, %v2704_v14  ;;  %v1058_v30 = vmul.f32 %v2707_v23, %v2707_v23 }
  0xf6   : > { %v2127_v25 = vpop.f32.mrf.mxu0 }
  0xf7   : > { %v2128_v26 = vadd.f32 %v2127_v25, %v2126_v21  ;;  %v2710_v27 = vadd.f32 %v934_v22, %v774_v24 }
  0xf8   : > { %v2129_v28 = vpop.f32.mrf.mxu0 }
  0xf9   : > { %v779_v31 = vadd.f32 %v2128_v26, %v2704_v14  ;;  %v1059_v32 = vmul.f32 %v2710_v27, %v2710_v27 }
  0xfa   : > { %v2130_v33 = vpop.f32.mrf.mxu0 }
  0xfb   : > { %v2131_v34 = vadd.f32 %v2130_v33, %v2129_v28  ;;  %v1090_v35 = vpack.c.bf16 %v1059_v32, %v1058_v30  ;;  %v2717_v38 = vadd.f32 %v2264_v10, %v779_v31  ;;  %v2273_v10 = vpop.f32.mrf.mxu1 }
  0xfc   : > { %v2132_v36 = vpop.f32.mrf.mxu0 }
  0xfd   : > { %v782_v39 = vadd.f32 %v2131_v34, %v2704_v14  ;;  %2310 = vmatprep.mubr.bf16.mxu1 %v1090_v35  ;;  %v1060_v45 = vmul.f32 %v2717_v38, %v2717_v38  ;;  %v966_v19 = vpop.f32.mrf.mxu1 }
  0xfe   : > { %v2133_v40 = vpop.f32.mrf.mxu0 }
  0xff   : > { %v2720_v41 = vadd.f32 %v2265_v17, %v782_v39  ;;  %v2134_v42 = vadd.f32 %v2133_v40, %v2132_v36  ;;  %v2276_v28 = vpop.f32.mrf.mxu1 }
 0x100   : > { %v2135_v43 = vpop.f32.mrf.mxu0 }
 0x101   : > { %v1061_v46 = vmul.f32 %v2720_v41, %v2720_v41  ;;  %v787_v47 = vadd.f32 %v2134_v42, %v2704_v14  ;;  %v979_v36 = vpop.f32.mrf.mxu1 }
 0x102   : > { %v2136_v48 = vpop.f32.mrf.mxu0 }
 0x103   : > { %v1091_v49 = vpack.c.bf16 %v1061_v46, %v1060_v45  ;;  %v2137_v50 = vadd.f32 %v2136_v48, %v2135_v43  ;;  %v2727_v53 = vadd.f32 %v947_v37, %v787_v47  ;;  %v2277_v45 = vpop.f32.mrf.mxu1 }
 0x104   : > { %v2138_v51 = vpop.f32.mrf.mxu0 }
 0x105   : > { %2311 = vmatmul.mubr.bf16.vlgmr.msra.gmra.mxu1 %v1091_v49  ;;  %v790_v54 = vadd.f32 %v2137_v50, %v2704_v14  ;;  %v1062_v60 = vmul.f32 %v2727_v53, %v2727_v53 }
 0x106   : > { %v2139_v55 = vpop.f32.mrf.mxu0 }
 0x107   : > { %v2140_v56 = vadd.f32 %v2139_v55, %v2138_v51  ;;  %v2730_v57 = vadd.f32 %v950_v52, %v790_v54  ;;  %v982_v54 = vpop.f32.mrf.mxu1 }
 0x108   : > { %v2141_v58 = vpop.f32.mrf.mxu0 }
 0x109   : > { %v795_v61 = vadd.f32 %v2140_v56, %v2704_v14  ;;  %v1063_v62 = vmul.f32 %v2730_v57, %v2730_v57 }
 0x10a   : > { %v2142_v63 = vpop.f32.mrf.mxu0 }
 0x10b   : > { %v2143_v0 = vadd.f32 %v2142_v63, %v2141_v58  ;;  %v1092_v1 = vpack.c.bf16 %v1063_v62, %v1062_v60  ;;  %v2737_v4 = vadd.f32 %v2268_v29, %v795_v61  ;;  %v2280_v62 = vpop.f32.mrf.mxu1 }
 0x10c   : > { %v2144_v2 = vpop.f32.mrf.mxu0 }
 0x10d   : > { %v798_v5 = vadd.f32 %v2143_v0, %v2704_v14  ;;  %2314 = vmatprep.mubr.bf16.mxu1 %v1092_v1  ;;  %v1064_v12 = vmul.f32 %v2737_v4, %v2737_v4 }
 0x10e   : > { %v2145_v6 = vpop.f32.mrf.mxu0 }
 0x10f   : > { %v2740_v7 = vadd.f32 %v2269_v44, %v798_v5  ;;  %v2146_v8 = vadd.f32 %v2145_v6, %v2144_v2 }
 0x110   : > { %v2147_v9 = vpop.f32.mrf.mxu0 }
 0x111   : > { %v803_v11 = vadd.f32 %v2146_v8, %v2704_v14  ;;  %v1065_v13 = vmul.f32 %v2740_v7, %v2740_v7  ;;  %v995_v8 = vpop.f32.mrf.mxu1 }
 0x112   : > { %v2148_v15 = vpop.f32.mrf.mxu0 }
 0x113   : > { %v2149_v16 = vadd.f32 %v2148_v15, %v2147_v9  ;;  %v1093_v17 = vpack.c.bf16 %v1065_v13, %v1064_v12  ;;  %v2747_v20 = vadd.f32 %v963_v3, %v803_v11 }
 0x114   : > { %v2150_v18 = vpop.f32.mrf.mxu0 }
 0x115   : > { %2315 = vmatmul.mubr.bf16.gmra.mxu1 %v1093_v17  ;;  %v806_v21 = vadd.f32 %v2149_v16, %v2704_v14  ;;  %v1066_v29 = vmul.f32 %v2747_v20, %v2747_v20  ;;  %v2281_v16 = vpop.f32.mrf.mxu1 }
 0x116   : > { %v2151_v22 = vpop.f32.mrf.mxu0 }
 0x117   : > { %v2152_v24 = vadd.f32 %v2151_v22, %v2150_v18  ;;  %v2750_v25 = vadd.f32 %v966_v19, %v806_v21 }
 0x118   : > { %v2153_v26 = vpop.f32.mrf.mxu0 }
 0x119   : > { %v811_v30 = vadd.f32 %v2152_v24, %v2704_v14  ;;  %v1067_v31 = vmul.f32 %v2750_v25, %v2750_v25 }
 0x11a   : > { %v2154_v32 = vpop.f32.mrf.mxu0 }
 0x11b   : > { %v2155_v33 = vadd.f32 %v2154_v32, %v2153_v26  ;;  %v1094_v34 = vpack.c.bf16 %v1067_v31, %v1066_v29  ;;  %v2757_v37 = vadd.f32 %v2272_v59, %v811_v30 }
 0x11c   : > { %v2156_v35 = vpop.f32.mrf.mxu0 }
 0x11d   : > { %v814_v39 = vadd.f32 %v2155_v33, %v2704_v14  ;;  %2318 = vmatprep.mubr.bf16.mxu1 %v1094_v34  ;;  %v1068_v47 = vmul.f32 %v2757_v37, %v2757_v37 }
 0x11e   : > { %v2157_v40 = vpop.f32.mrf.mxu0 }
 0x11f   : > { %v2760_v42 = vadd.f32 %v2273_v10, %v814_v39  ;;  %v2158_v43 = vadd.f32 %v2157_v40, %v2156_v35 }
 0x120   : > { %v2159_v44 = vpop.f32.mrf.mxu0 }
 0x121   : > { %v819_v46 = vadd.f32 %v2158_v43, %v2704_v14  ;;  %v1069_v48 = vmul.f32 %v2760_v42, %v2760_v42 }
 0x122   : > { %v2160_v49 = vpop.f32.mrf.mxu0 }
 0x123   : > { %v2161_v50 = vadd.f32 %v2160_v49, %v2159_v44  ;;  %v1095_v51 = vpack.c.bf16 %v1069_v48, %v1068_v47  ;;  %v2767_v55 = vadd.f32 %v979_v36, %v819_v46 }
 0x124   : > { %v2162_v52 = vpop.f32.mrf.mxu0 }
 0x125   : > { %2319 = vmatmul.mubr.bf16.gmra.mxu1 %v1095_v51  ;;  %v822_v56 = vadd.f32 %v2161_v50, %v2704_v14  ;;  %v1070_v63 = vmul.f32 %v2767_v55, %v2767_v55 }
 0x126   : > { %v2163_v58 = vpop.f32.mrf.mxu0 }
 0x127   : > { %v2164_v59 = vadd.f32 %v2163_v58, %v2162_v52  ;;  %v2770_v60 = vadd.f32 %v982_v54, %v822_v56 }
 0x128   : > { %v2165_v61 = vpop.f32.mrf.mxu0 }
 0x129   : > { %v827_v0 = vadd.f32 %v2164_v59, %v2704_v14  ;;  %v1071_v1 = vmul.f32 %v2770_v60, %v2770_v60 }
 0x12a   : > { %v2166_v2 = vpop.f32.mrf.mxu0 }
 0x12b   : > { %v2167_v3 = vadd.f32 %v2166_v2, %v2165_v61  ;;  %v1096_v5 = vpack.c.bf16 %v1071_v1, %v1070_v63  ;;  %v2777_v9 = vadd.f32 %v2276_v28, %v827_v0  ;;  %v998_v28 = vpop.f32.mrf.mxu1 }
 0x12c   : > { %v2168_v6 = vpop.f32.mrf.mxu0 }
 0x12d   : > { %v830_v10 = vadd.f32 %v2167_v3, %v2704_v14  ;;  %2322 = vmatprep.mubr.bf16.mxu1 %v1096_v5  ;;  %v1072_v18 = vmul.f32 %v2777_v9, %v2777_v9  ;;  %v2284_v35 = vpop.f32.mrf.mxu1 }
 0x12e   : > { %v2169_v11 = vpop.f32.mrf.mxu0 }
 0x12f   : > { %v2780_v12 = vadd.f32 %v2277_v45, %v830_v10  ;;  %v2170_v13 = vadd.f32 %v2169_v11, %v2168_v6  ;;  %v1011_v47 = vpop.f32.mrf.mxu1 }
 0x130   : > { %v2171_v15 = vpop.f32.mrf.mxu0 }
 0x131   : > { %v835_v17 = vadd.f32 %v2170_v13, %v2704_v14  ;;  %v1073_v19 = vmul.f32 %v2780_v12, %v2780_v12  ;;  %v2285_v56 = vpop.f32.mrf.mxu1 }
 0x132   : > { %v2172_v21 = vpop.f32.mrf.mxu0 }
 0x133   : > { %v2173_v22 = vadd.f32 %v2172_v21, %v2171_v15  ;;  %v1097_v24 = vpack.c.bf16 %v1073_v19, %v1072_v18  ;;  %v2787_v29 = vadd.f32 %v995_v8, %v835_v17  ;;  %v1014_v2 = vpop.f32.mrf.mxu1 }
 0x134   : > { %v2174_v26 = vpop.f32.mrf.mxu0 }
 0x135   : > { %2323 = vmatmul.mubr.bf16.gmra.mxu1 %v1097_v24  ;;  %v838_v30 = vadd.f32 %v2173_v22, %v2704_v14  ;;  %v1074_v36 = vmul.f32 %v2787_v29, %v2787_v29  ;;  %v2288_v13 = vpop.f32.mrf.mxu1 }
 0x136   : > { %v2175_v31 = vpop.f32.mrf.mxu0 }
 0x137   : > { %v2176_v32 = vadd.f32 %v2175_v31, %v2174_v26  ;;  %v2790_v33 = vadd.f32 %v998_v28, %v838_v30  ;;  %v1027_v24 = vpop.f32.mrf.mxu1 }
 0x138   : > { %v2177_v34 = vpop.f32.mrf.mxu0 }
 0x139   : > { %v843_v39 = vadd.f32 %v2176_v32, %v2704_v14  ;;  %v1075_v40 = vmul.f32 %v2790_v33, %v2790_v33 }
 0x13a   : > { %v2178_v43 = vpop.f32.mrf.mxu0 }
 0x13b   : > { %v2179_v44 = vadd.f32 %v2178_v43, %v2177_v34  ;;  %v1098_v45 = vpack.c.bf16 %v1075_v40, %v1074_v36  ;;  %v2797_v48 = vadd.f32 %v2280_v62, %v843_v39  ;;  %v2289_v36 = vpop.f32.mrf.mxu1 }
 0x13c   : > { %v2180_v46 = vpop.f32.mrf.mxu0 }
 0x13d   : > { %v846_v49 = vadd.f32 %v2179_v44, %v2704_v14  ;;  %2326 = vmatprep.mubr.bf16.mxu1 %v1098_v45  ;;  %v1076_v59 = vmul.f32 %v2797_v48, %v2797_v48 }
 0x13e   : > { %v2181_v50 = vpop.f32.mrf.mxu0 }
 0x13f   : > { %v2800_v51 = vadd.f32 %v2281_v16, %v846_v49  ;;  %v2182_v52 = vadd.f32 %v2181_v50, %v2180_v46 }
 0x140   : > { %v2183_v54 = vpop.f32.mrf.mxu0 }
 0x141   : > { %v851_v58 = vadd.f32 %v2182_v52, %v2704_v14  ;;  %v1077_v61 = vmul.f32 %v2800_v51, %v2800_v51 }
 0x142   : > { %v2184_v63 = vpop.f32.mrf.mxu0 }
 0x143   : > { %v2185_v62 = vadd.f32 %v2184_v63, %v2183_v54  ;;  %v1099_v0 = vpack.c.bf16 %v1077_v61, %v1076_v59  ;;  %v2807_v3 = vadd.f32 %v1011_v47, %v851_v58  ;;  %v1030_v47 = vpop.f32.mrf.mxu1 }
 0x144   : > { %v2186_v1 = vpop.f32.mrf.mxu0 }
 0x145   : > { %2327 = vmatmul.mubr.bf16.gmra.mxu1 %v1099_v0  ;;  %v854_v5 = vadd.f32 %v2185_v62, %v2704_v14  ;;  %v1078_v15 = vmul.f32 %v2807_v3, %v2807_v3  ;;  %v2292_v59 = vpop.f32.mrf.mxu1 }
 0x146   : > { %v2187_v6 = vpop.f32.mrf.mxu0 }
 0x147   : > { %v2188_v8 = vadd.f32 %v2187_v6, %v2186_v1  ;;  %v2810_v10 = vadd.f32 %v1014_v2, %v854_v5  ;;  %v1043_v6 = vpop.f32.mrf.mxu1 }
 0x148   : > { %v2189_v11 = vpop.f32.mrf.mxu0 }
 0x149   : > { %v859_v16 = vadd.f32 %v2188_v8, %v2704_v14  ;;  %v1079_v17 = vmul.f32 %v2810_v10, %v2810_v10 }
 0x14a   : > { %v2190_v18 = vpop.f32.mrf.mxu0 }
 0x14b   : > { %v2191_v19 = vadd.f32 %v2190_v18, %v2189_v11  ;;  %v1100_v21 = vpack.c.bf16 %v1079_v17, %v1078_v15  ;;  %v2817_v26 = vadd.f32 %v2284_v35, %v859_v16 }
 0x14c   : > { %v2192_v22 = vpop.f32.mrf.mxu0 }
 0x14d   : > { %v862_v28 = vadd.f32 %v2191_v19, %v2704_v14  ;;  %2330 = vmatprep.mubr.bf16.mxu1 %v1100_v21  ;;  %v1080_v40 = vmul.f32 %v2817_v26, %v2817_v26  ;;  %v2293_v19 = vpop.f32.mrf.mxu1 }
 0x14e   : > { %v2193_v30 = vpop.f32.mrf.mxu0 }
 0x14f   : > { %v2820_v31 = vadd.f32 %v2285_v56, %v862_v28  ;;  %v2194_v32 = vadd.f32 %v2193_v30, %v2192_v22 }
 0x150   : > { %v2195_v34 = vpop.f32.mrf.mxu0 }
 0x151   : > { %v867_v39 = vadd.f32 %v2194_v32, %v2704_v14  ;;  %v1081_v43 = vmul.f32 %v2820_v31, %v2820_v31 }
 0x152   : > { %v2196_v44 = vpop.f32.mrf.mxu0 }
 0x153   : > { %v2197_v35 = vadd.f32 %v2196_v44, %v2195_v34  ;;  %v1101_v45 = vpack.c.bf16 %v1081_v43, %v1080_v40  ;;  %v2827_v49 = vadd.f32 %v1027_v24, %v867_v39  ;;  %v1046_v34 = vpop.f32.mrf.mxu1 }
 0x154   : > { %v2198_v46 = vpop.f32.mrf.mxu0 }
 0x155   : > { %2331 = vmatmul.mubr.bf16.gmra.mxu1 %v1101_v45  ;;  %v870_v50 = vadd.f32 %v2197_v35, %v2704_v14  ;;  %v1082_v61 = vmul.f32 %v2827_v49, %v2827_v49 }
 0x156   : > { %v2199_v52 = vpop.f32.mrf.mxu0 }
 0x157   : > { %v2200_v54 = vadd.f32 %v2199_v52, %v2198_v46  ;;  %v2830_v56 = vadd.f32 %v1030_v47, %v870_v50 }
 0x158   : > { %v2201_v58 = vpop.f32.mrf.mxu0 }
 0x159   : > { %v875_v63 = vadd.f32 %v2200_v54, %v2704_v14  ;;  %v1083_v62 = vmul.f32 %v2830_v56, %v2830_v56 }
 0x15a   : > { %v2202_v0 = vpop.f32.mrf.mxu0 }
 0x15b   : > { %v2203_v1 = vadd.f32 %v2202_v0, %v2201_v58  ;;  %v1102_v2 = vpack.c.bf16 %v1083_v62, %v1082_v61  ;;  %v2837_v8 = vadd.f32 %v2288_v13, %v875_v63 }
 0x15c   : > { %v2204_v5 = vpop.f32.mrf.mxu0 }
 0x15d   : > { %v878_v11 = vadd.f32 %v2203_v1, %v2704_v14  ;;  %2334 = vmatprep.mubr.bf16.mxu1 %v1102_v2  ;;  %v1084_v22 = vmul.f32 %v2837_v8, %v2837_v8  ;;  %v2869_v2 = vld [vmem:[%s3190_s4] ss:$0 sm:$0xff] }
 0x15e   : > { %v2205_v15 = vpop.f32.mrf.mxu0 }
 0x15f   : > { %v2840_v16 = vadd.f32 %v2289_v36, %v878_v11  ;;  %v2206_v17 = vadd.f32 %v2205_v15, %v2204_v5 }
 0x160   : > { %v2207_v18 = vpop.f32.mrf.mxu0 }
 0x161   : > { %v883_v21 = vadd.f32 %v2206_v17, %v2704_v14  ;;  %v1085_v24 = vmul.f32 %v2840_v16, %v2840_v16 }
 0x162   : > { %v2208_v28 = vpop.f32.mrf.mxu0 }
 0x163   : > { %v2209_v13 = vadd.f32 %v2208_v28, %v2207_v18  ;;  %v1103_v30 = vpack.c.bf16 %v1085_v24, %v1084_v22  ;;  %v2847_v39 = vadd.f32 %v1043_v6, %v883_v21 }
 0x164   : > { %v2210_v32 = vpop.f32.mrf.mxu0 }
 0x165   : > { %2335 = vmatmul.mubr.bf16.gmra.mxu1 %v1103_v30  ;;  %v886_v36 = vadd.f32 %v2209_v13, %v2704_v14  ;;  %v1086_v45 = vmul.f32 %v2847_v39, %v2847_v39 }
 0x166   : > { %v2211_v40 = vpop.f32.mrf.mxu0 }
 0x167   : > { %v2212_v43 = vadd.f32 %v2211_v40, %v2210_v32  ;;  %v2850_v44 = vadd.f32 %v1046_v34, %v886_v36 }
 0x168   : > { %v2213_v35 = vpop.f32.mrf.mxu0 }
 0x169   : > { %v891_v46 = vadd.f32 %v2212_v43, %v2704_v14  ;;  %v1087_v47 = vmul.f32 %v2850_v44, %v2850_v44 }
 0x16a   : > { %v2214_v50 = vpop.f32.mrf.mxu0 }
 0x16b   : > { %v2215_v52 = vadd.f32 %v2214_v50, %v2213_v35  ;;  %v1104_v54 = vpack.c.bf16 %v1087_v47, %v1086_v45  ;;  %v2857_v58 = vadd.f32 %v2292_v59, %v891_v46 }
 0x16d   : > { %v894_v61 = vadd.f32 %v2215_v52, %v2704_v14  ;;  %2338 = vmatprep.mubr.bf16.mxu1 %v1104_v54  ;;  %v1088_v62 = vmul.f32 %v2857_v58, %v2857_v58 }
 0x16f   : > { %v2860_v63 = vadd.f32 %v2293_v19, %v894_v61 }
 0x171   : > { %v1089_v0 = vmul.f32 %v2860_v63, %v2860_v63 }
 0x173   : > { %v1105_v1 = vpack.c.bf16 %v1089_v0, %v1088_v62 }
 0x175   : > { %2339 = vmatmul.mubr.bf16.gmra.mxu1 %v1105_v1 }
 0x1c5   : > { %v2312_v59 = vpop.f32.mrf.mxu1 }
 0x1c6   : > { %v1220_v5 = vadd.f32 %v2312_v59, %v2869_v2 }
 0x1c7   : > { %v1211_v14 = vpop.f32.mrf.mxu1 }
 0x1c8   : > { %v1340_v6 = vmax.f32 %v1220_v5, 0.0  ;;  %v1212_v11 = vadd.f32 %v2869_v2, %v1211_v14 }
 0x1c9   : > { %v2313_v15 = vpop.f32.mrf.mxu1 }
 0x1ca   : > { %2441 = vrsqrt.f32 %v1340_v6  ;;  %v1338_v17 = vmax.f32 %v1212_v11, 0.0  ;;  %v1223_v18 = vadd.f32 %v2313_v15, %v2869_v2  ;;  %vm1386_vm1 = vcmp.eq.f32.partialorder %v1340_v6, inf }
 0x1cb   : > { %v1214_v19 = vpop.f32.mrf.mxu1  ;;  %vm1388_vm2 = vcmp.eq.f32.partialorder %v1340_v6, 0.0  ;;  %v1389_v45 = vand.u32 2147483648, %v1340_v6 }
 0x1cc   : > { %v1215_v21 = vadd.f32 %v2869_v2, %v1214_v19  ;;  %2443 = vrsqrt.f32 %v1338_v17  ;;  %v1341_v22 = vmax.f32 %v1223_v18, 0.0  ;;  %vm1372_vm3 = vcmp.eq.f32.partialorder %v1338_v17, inf }
 0x1cd   : > { %vm1374_vm4 = vcmp.eq.f32.partialorder %v1338_v17, 0.0  ;;  %v1375_v1 = vand.u32 2147483648, %v1338_v17 }
 0x1ce   : > { %v1339_v24 = vmax.f32 %v1215_v21, 0.0  ;;  %2445 = vrsqrt.f32 %v1341_v22  ;;  %vm1393_vm5 = vcmp.eq.f32.partialorder %v1341_v22, inf  ;;  %vm1395_vm6 = vcmp.eq.f32.partialorder %v1341_v22, 0.0 }
 0x1cf   : > { %v1396_v14 = vand.u32 2147483648, %v1341_v22 }
 0x1d0   : > { %2447 = vrsqrt.f32 %v1339_v24  ;;  %vm1379_vm7 = vcmp.eq.f32.partialorder %v1339_v24, inf  ;;  %vm1381_vm8 = vcmp.eq.f32.partialorder %v1339_v24, 0.0 }
 0x1d5   : > { %v2316_v28 = vpop.f32.mrf.mxu1 }
 0x1d6   : > { %v1236_v13 = vadd.f32 %v2316_v28, %v2869_v2 }
 0x1d7   : > { %v2442_v30 = vpop.eup %2441  ;;  %v1227_v32 = vpop.f32.mrf.mxu1 }
 0x1d8   : > { %v1385_v34 = vmul.f32 %v2442_v30, %v1340_v6  ;;  %v2876_v36 = vmax.f32 %v1236_v13, 0.0  ;;  %v1228_v40 = vadd.f32 %v2869_v2, %v1227_v32  ;;  %v1382_v13 = vand.u32 2147483648, %v1339_v24 }
 0x1d9   : > { %v2317_v43 = vpop.f32.mrf.mxu1  ;;  %v2444_v35 = vpop.eup %2443 }
 0x1da   : > { %2449 = vrsqrt.f32 %v2876_v36  ;;  %v1371_v46 = vmul.f32 %v2444_v35, %v1338_v17  ;;  %v2880_v47 = vmax.f32 %v1228_v40, 0.0  ;;  %v1387_v52 = vsel %vm1386_vm1, %v1340_v6, %v1385_v34 }
 0x1db   : > { %v1230_v50 = vpop.f32.mrf.mxu1  ;;  %v1239_v54 = vadd.f32 %v2317_v43, %v2869_v2  ;;  %v2446_v62 = vpop.eup %2445  ;;  %v1390_v15 = vsel %vm1388_vm2, %v1389_v45, %v1387_v52  ;;  %vm1414_vm9 = vcmp.eq.f32.partialorder %v2876_v36, inf  ;;  %vm1416_vm10 = vcmp.eq.f32.partialorder %v2876_v36, 0.0 }
 0x1dc   : > { %v1231_v61 = vadd.f32 %v2869_v2, %v1230_v50  ;;  %v1373_v0 = vsel %vm1372_vm3, %v1338_v17, %v1371_v46  ;;  %2451 = vrsqrt.f32 %v2880_v47  ;;  %v1392_v5 = vmul.f32 %v2446_v62, %v1341_v22 }
 0x1dd   : > { %v2448_v59 = vpop.eup %2447  ;;  %v2885_v11 = vmax.f32 %v1239_v54, 0.0  ;;  %v1376_v21 = vsel %vm1374_vm4, %v1375_v1, %v1373_v0  ;;  %v1596_v34 = vmul.f32 %v1390_v15, %v2717_v38  ;;  %vm1400_vm11 = vcmp.eq.f32.partialorder %v2880_v47, inf }
 0x1de   : > { %v1378_v18 = vmul.f32 %v2448_v59, %v1339_v24  ;;  %v2888_v19 = vmax.f32 %v1231_v61, 0.0  ;;  %v1394_v28 = vsel %vm1393_vm5, %v1341_v22, %v1392_v5  ;;  %v1594_v43 = vmul.f32 %v1376_v21, %v2707_v23 }
 0x1df   : > { %2453 = vrsqrt.f32 %v2885_v11  ;;  %v1397_v30 = vsel %vm1395_vm6, %v1396_v14, %v1394_v28  ;;  %vm1402_vm12 = vcmp.eq.f32.partialorder %v2880_v47, 0.0  ;;  %vm1421_vm13 = vcmp.eq.f32.partialorder %v2885_v11, inf }
 0x1e0   : > { %v1380_v32 = vsel %vm1379_vm7, %v1339_v24, %v1378_v18  ;;  %2455 = vrsqrt.f32 %v2888_v19  ;;  %v1597_v6 = vmul.f32 %v1397_v30, %v2720_v41  ;;  %v1403_v18 = vand.u32 2147483648, %v2880_v47 }
 0x1e1   : > { %v1383_v40 = vsel %vm1381_vm8, %v1382_v13, %v1380_v32  ;;  %vm1423_vm14 = vcmp.eq.f32.partialorder %v2885_v11, 0.0  ;;  %v1424_v13 = vand.u32 2147483648, %v2885_v11  ;;  %vm1407_vm15 = vcmp.eq.f32.partialorder %v2888_v19, inf }
 0x1e2   : > { %v1595_v17 = vmul.f32 %v1383_v40, %v2710_v27  ;;  %v2017_v22 = vpack.c.bf16 %v1597_v6, %v1596_v34  ;;  %v1417_v27 = vand.u32 2147483648, %v2876_v36  ;;  %vm1409_vm0 = vcmp.eq.f32.partialorder %v2888_v19, 0.0 }
 0x1e4   : > { %v2012_v24 = vpack.c.bf16 %v1595_v17, %v1594_v43  ;;  %2089 = vst [vmem:[%s2900_s22 + $0x8] sm:$0xff] %v2017_v22   ;;  %v1410_v17 = vand.u32 2147483648, %v2888_v19 }
 0x1e5   : > { %v2320_v35 = vpop.f32.mrf.mxu1 }
 0x1e6   : > { %v1252_v38 = vadd.f32 %v2320_v35, %v2869_v2  ;;  %2013 = vst [vmem:[%s2900_s22] sm:$0xff] %v2012_v24  }
 0x1e7   : > { %v2450_v45 = vpop.eup %2449  ;;  %v1243_v41 = vpop.f32.mrf.mxu1 }
 0x1e8   : > { %v1413_v23 = vmul.f32 %v2450_v45, %v2876_v36  ;;  %v2907_v46 = vmax.f32 %v1252_v38, 0.0  ;;  %v1244_v50 = vadd.f32 %v2869_v2, %v1243_v41 }
 0x1e9   : > { %v2321_v52 = vpop.f32.mrf.mxu1  ;;  %v2452_v54 = vpop.eup %2451 }
 0x1ea   : > { %2457 = vrsqrt.f32 %v2907_v46  ;;  %v1399_v61 = vmul.f32 %v2452_v54, %v2880_v47  ;;  %v2916_v62 = vmax.f32 %v1244_v50, 0.0  ;;  %v1415_v1 = vsel %vm1414_vm9, %v2876_v36, %v1413_v23 }
 0x1eb   : > { %v1246_v0 = vpop.f32.mrf.mxu1  ;;  %v1255_v59 = vadd.f32 %v2321_v52, %v2869_v2  ;;  %v1418_v32 = vsel %vm1416_vm10, %v1417_v27, %v1415_v1  ;;  %vm1442_vm1 = vcmp.eq.f32.partialorder %v2907_v46, inf  ;;  %vm1444_vm2 = vcmp.eq.f32.partialorder %v2907_v46, 0.0 }
 0x1ec   : > { %v1247_v5 = vadd.f32 %v2869_v2, %v1246_v0  ;;  %v2454_v14 = vpop.eup %2453  ;;  %v1401_v15 = vsel %vm1400_vm11, %v2880_v47, %v1399_v61  ;;  %2459 = vrsqrt.f32 %v2916_v62  ;;  %v1600_v24 = vmul.f32 %v1418_v32, %v2737_v4 }
 0x1ed   : > { %v2456_v21 = vpop.eup %2455  ;;  %v1420_v28 = vmul.f32 %v2454_v14, %v2885_v11  ;;  %v2929_v30 = vmax.f32 %v1255_v59, 0.0  ;;  %v1404_v40 = vsel %vm1402_vm12, %v1403_v18, %v1401_v15  ;;  %vm1428_vm3 = vcmp.eq.f32.partialorder %v2916_v62, inf }
 0x1ee   : > { %v1406_v34 = vmul.f32 %v2456_v21, %v2888_v19  ;;  %v2935_v6 = vmax.f32 %v1247_v5, 0.0  ;;  %v1598_v38 = vmul.f32 %v1404_v40, %v2727_v53  ;;  %v1445_v53 = vand.u32 2147483648, %v2907_v46 }
 0x1ef   : > { %v1422_v43 = vsel %vm1421_vm13, %v2885_v11, %v1420_v28  ;;  %2461 = vrsqrt.f32 %v2929_v30  ;;  %vm1430_vm4 = vcmp.eq.f32.partialorder %v2916_v62, 0.0  ;;  %v1431_v21 = vand.u32 2147483648, %v2916_v62 }
 0x1f0   : > { %v1425_v22 = vsel %vm1423_vm14, %v1424_v13, %v1422_v43  ;;  %v1408_v36 = vsel %vm1407_vm15, %v2888_v19, %v1406_v34  ;;  %2463 = vrsqrt.f32 %v2935_v6  ;;  %vm1449_vm5 = vcmp.eq.f32.partialorder %v2929_v30, inf }
 0x1f1   : > { %v1601_v47 = vmul.f32 %v1425_v22, %v2740_v7  ;;  %v1411_v35 = vsel %vm1409_vm0, %v1410_v17, %v1408_v36  ;;  %vm1451_vm6 = vcmp.eq.f32.partialorder %v2929_v30, 0.0  ;;  %v1452_v32 = vand.u32 2147483648, %v2929_v30 }
 0x1f2   : > { %v1599_v11 = vmul.f32 %v1411_v35, %v2730_v57  ;;  %vm1435_vm7 = vcmp.eq.f32.partialorder %v2935_v6, inf  ;;  %vm1437_vm8 = vcmp.eq.f32.partialorder %v2935_v6, 0.0 }
 0x1f3   : > { %v2027_v45 = vpack.c.bf16 %v1601_v47, %v1600_v24  ;;  %v1438_v24 = vand.u32 2147483648, %v2935_v6 }
 0x1f4   : > { %v2022_v41 = vpack.c.bf16 %v1599_v11, %v1598_v38 }
 0x1f5   : > { %v2324_v23 = vpop.f32.mrf.mxu1  ;;  %2091 = vst [vmem:[%s2900_s22 + $0x18] sm:$0xff] %v2027_v45  }
 0x1f6   : > { %v1268_v50 = vadd.f32 %v2324_v23, %v2869_v2  ;;  %2090 = vst [vmem:[%s2900_s22 + $0x10] sm:$0xff] %v2022_v41  }
 0x1f7   : > { %v2458_v52 = vpop.eup %2457  ;;  %v1259_v19 = vpop.f32.mrf.mxu1 }
 0x1f8   : > { %v1441_v54 = vmul.f32 %v2458_v52, %v2907_v46  ;;  %v2953_v27 = vmax.f32 %v1268_v50, 0.0  ;;  %v1260_v4 = vadd.f32 %v2869_v2, %v1259_v19 }
 0x1f9   : > { %v2325_v7 = vpop.f32.mrf.mxu1  ;;  %v2460_v61 = vpop.eup %2459 }
 0x1fa   : > { %2465 = vrsqrt.f32 %v2953_v27  ;;  %v1427_v57 = vmul.f32 %v2460_v61, %v2916_v62  ;;  %v2962_v0 = vmax.f32 %v1260_v4, 0.0  ;;  %v1443_v59 = vsel %vm1442_vm1, %v2907_v46, %v1441_v54 }
 0x1fb   : > { %v1262_v1 = vpop.f32.mrf.mxu1  ;;  %v1271_v5 = vadd.f32 %v2325_v7, %v2869_v2  ;;  %v1446_v40 = vsel %vm1444_vm2, %v1445_v53, %v1443_v59  ;;  %vm1470_vm9 = vcmp.eq.f32.partialorder %v2953_v27, inf  ;;  %vm1472_vm10 = vcmp.eq.f32.partialorder %v2953_v27, 0.0 }
 0x1fc   : > { %v1263_v14 = vadd.f32 %v2869_v2, %v1262_v1  ;;  %v2462_v15 = vpop.eup %2461  ;;  %v1429_v18 = vsel %vm1428_vm3, %v2916_v62, %v1427_v57  ;;  %2467 = vrsqrt.f32 %v2962_v0  ;;  %v1604_v35 = vmul.f32 %v1446_v40, %v2757_v37 }
 0x1fd   : > { %v2464_v28 = vpop.eup %2463  ;;  %v1448_v13 = vmul.f32 %v2462_v15, %v2929_v30  ;;  %v2975_v34 = vmax.f32 %v1271_v5, 0.0  ;;  %v1432_v22 = vsel %vm1430_vm4, %v1431_v21, %v1429_v18  ;;  %vm1456_vm11 = vcmp.eq.f32.partialorder %v2962_v0, inf }
 0x1fe   : > { %v1434_v43 = vmul.f32 %v2464_v28, %v2935_v6  ;;  %v2981_v17 = vmax.f32 %v1263_v14, 0.0  ;;  %v1602_v11 = vmul.f32 %v1432_v22, %v2747_v20  ;;  %v1473_v20 = vand.u32 2147483648, %v2953_v27 }
 0x1ff   : > { %v1450_v36 = vsel %vm1449_vm5, %v2929_v30, %v1448_v13  ;;  %2469 = vrsqrt.f32 %v2975_v34  ;;  %vm1458_vm12 = vcmp.eq.f32.partialorder %v2962_v0, 0.0  ;;  %v1459_v14 = vand.u32 2147483648, %v2962_v0 }
 0x200   : > { %v1453_v47 = vsel %vm1451_vm6, %v1452_v32, %v1450_v36  ;;  %v1436_v46 = vsel %vm1435_vm7, %v2935_v6, %v1434_v43  ;;  %2471 = vrsqrt.f32 %v2981_v17  ;;  %vm1477_vm13 = vcmp.eq.f32.partialorder %v2975_v34, inf }
 0x201   : > { %v1605_v62 = vmul.f32 %v1453_v47, %v2760_v42  ;;  %v1439_v38 = vsel %vm1437_vm8, %v1438_v24, %v1436_v46  ;;  %vm1479_vm14 = vcmp.eq.f32.partialorder %v2975_v34, 0.0  ;;  %v1480_v21 = vand.u32 2147483648, %v2975_v34 }
 0x202   : > { %v1603_v30 = vmul.f32 %v1439_v38, %v2750_v25  ;;  %vm1463_vm15 = vcmp.eq.f32.partialorder %v2981_v17, inf  ;;  %v1466_v36 = vand.u32 2147483648, %v2981_v17  ;;  %vm1465_vm0 = vcmp.eq.f32.partialorder %v2981_v17, 0.0 }
 0x203   : > { %v2037_v45 = vpack.c.bf16 %v1605_v62, %v1604_v35 }
 0x204   : > { %v2032_v41 = vpack.c.bf16 %v1603_v30, %v1602_v11 }
 0x205   : > { %v2328_v23 = vpop.f32.mrf.mxu1  ;;  %2093 = vst [vmem:[%s2900_s22 + $0x28] sm:$0xff] %v2037_v45  }
 0x206   : > { %v1284_v50 = vadd.f32 %v2328_v23, %v2869_v2  ;;  %2092 = vst [vmem:[%s2900_s22 + $0x20] sm:$0xff] %v2032_v41  }
 0x207   : > { %v2466_v52 = vpop.eup %2465  ;;  %v1275_v6 = vpop.f32.mrf.mxu1 }
 0x208   : > { %v1469_v19 = vmul.f32 %v2466_v52, %v2953_v27  ;;  %v2999_v54 = vmax.f32 %v1284_v50, 0.0  ;;  %v1276_v37 = vadd.f32 %v2869_v2, %v1275_v6 }
 0x209   : > { %v2329_v42 = vpop.f32.mrf.mxu1  ;;  %v2468_v4 = vpop.eup %2467 }
 0x20a   : > { %2473 = vrsqrt.f32 %v2999_v54  ;;  %v1455_v25 = vmul.f32 %v2468_v4, %v2962_v0  ;;  %v3008_v7 = vmax.f32 %v1276_v37, 0.0  ;;  %v1471_v53 = vsel %vm1470_vm9, %v2953_v27, %v1469_v19 }
 0x20b   : > { %v1278_v61 = vpop.f32.mrf.mxu1  ;;  %v1287_v57 = vadd.f32 %v2329_v42, %v2869_v2  ;;  %v1474_v13 = vsel %vm1472_vm10, %v1473_v20, %v1471_v53  ;;  %vm1498_vm1 = vcmp.eq.f32.partialorder %v2999_v54, inf  ;;  %vm1500_vm2 = vcmp.eq.f32.partialorder %v2999_v54, 0.0 }
 0x20c   : > { %v1279_v1 = vadd.f32 %v2869_v2, %v1278_v61  ;;  %v2470_v59 = vpop.eup %2469  ;;  %v1457_v5 = vsel %vm1456_vm11, %v2962_v0, %v1455_v25  ;;  %2475 = vrsqrt.f32 %v3008_v7  ;;  %v1608_v47 = vmul.f32 %v1474_v13, %v2777_v9 }
 0x20d   : > { %v2472_v15 = vpop.eup %2471  ;;  %v1476_v18 = vmul.f32 %v2470_v59, %v2975_v34  ;;  %v3021_v28 = vmax.f32 %v1287_v57, 0.0  ;;  %v1460_v43 = vsel %vm1458_vm12, %v1459_v14, %v1457_v5  ;;  %vm1484_vm3 = vcmp.eq.f32.partialorder %v3008_v7, inf }
 0x20e   : > { %v1462_v32 = vmul.f32 %v2472_v15, %v2981_v17  ;;  %v3027_v40 = vmax.f32 %v1279_v1, 0.0  ;;  %v1606_v35 = vmul.f32 %v1460_v43, %v2767_v55  ;;  %v1501_v55 = vand.u32 2147483648, %v2999_v54 }
 0x20f   : > { %v1478_v22 = vsel %vm1477_vm13, %v2975_v34, %v1476_v18  ;;  %2477 = vrsqrt.f32 %v3021_v28  ;;  %vm1486_vm4 = vcmp.eq.f32.partialorder %v3008_v7, 0.0  ;;  %v1487_v25 = vand.u32 2147483648, %v3008_v7 }
 0x210   : > { %v1481_v24 = vsel %vm1479_vm14, %v1480_v21, %v1478_v22  ;;  %v1464_v27 = vsel %vm1463_vm15, %v2981_v17, %v1462_v32  ;;  %2479 = vrsqrt.f32 %v3027_v40  ;;  %vm1505_vm5 = vcmp.eq.f32.partialorder %v3021_v28, inf }
 0x211   : > { %v1609_v0 = vmul.f32 %v1481_v24, %v2780_v12  ;;  %v1467_v46 = vsel %vm1465_vm0, %v1466_v36, %v1464_v27  ;;  %vm1507_vm6 = vcmp.eq.f32.partialorder %v3021_v28, 0.0  ;;  %v1508_v57 = vand.u32 2147483648, %v3021_v28 }
 0x212   : > { %v1607_v34 = vmul.f32 %v1467_v46, %v2770_v60  ;;  %vm1491_vm7 = vcmp.eq.f32.partialorder %v3027_v40, inf  ;;  %v1494_v21 = vand.u32 2147483648, %v3027_v40  ;;  %vm1493_vm8 = vcmp.eq.f32.partialorder %v3027_v40, 0.0 }
 0x213   : > { %v2047_v62 = vpack.c.bf16 %v1609_v0, %v1608_v47 }
 0x214   : > { %v2042_v38 = vpack.c.bf16 %v1607_v34, %v1606_v35 }
 0x215   : > { %v2332_v11 = vpop.f32.mrf.mxu1  ;;  %2095 = vst [vmem:[%s2900_s22 + $0x38] sm:$0xff] %v2047_v62  }
 0x216   : > { %v1300_v30 = vadd.f32 %v2332_v11, %v2869_v2  ;;  %2094 = vst [vmem:[%s2900_s22 + $0x30] sm:$0xff] %v2042_v38  }
 0x217   : > { %v2474_v45 = vpop.eup %2473  ;;  %v1291_v17 = vpop.f32.mrf.mxu1 }
 0x218   : > { %v1497_v41 = vmul.f32 %v2474_v45, %v2999_v54  ;;  %v3045_v23 = vmax.f32 %v1300_v30, 0.0  ;;  %v1292_v9 = vadd.f32 %v2869_v2, %v1291_v17 }
 0x219   : > { %v2333_v12 = vpop.f32.mrf.mxu1  ;;  %v2476_v50 = vpop.eup %2475 }
 0x21a   : > { %2481 = vrsqrt.f32 %v3045_v23  ;;  %v1483_v60 = vmul.f32 %v2476_v50, %v3008_v7  ;;  %v3054_v52 = vmax.f32 %v1292_v9, 0.0  ;;  %v1499_v19 = vsel %vm1498_vm1, %v2999_v54, %v1497_v41 }
 0x21b   : > { %v1294_v6 = vpop.f32.mrf.mxu1  ;;  %v1303_v37 = vadd.f32 %v2333_v12, %v2869_v2  ;;  %v1502_v59 = vsel %vm1500_vm2, %v1501_v55, %v1499_v19  ;;  %vm1526_vm9 = vcmp.eq.f32.partialorder %v3045_v23, inf  ;;  %vm1528_vm10 = vcmp.eq.f32.partialorder %v3045_v23, 0.0 }
 0x21c   : > { %v1295_v42 = vadd.f32 %v2869_v2, %v1294_v6  ;;  %v2478_v4 = vpop.eup %2477  ;;  %v1485_v20 = vsel %vm1484_vm3, %v3008_v7, %v1483_v60  ;;  %2483 = vrsqrt.f32 %v3054_v52  ;;  %v1612_v32 = vmul.f32 %v1502_v59, %v2797_v48 }
 0x21d   : > { %v2480_v61 = vpop.eup %2479  ;;  %v1504_v53 = vmul.f32 %v2478_v4, %v3021_v28  ;;  %v3067_v1 = vmax.f32 %v1303_v37, 0.0  ;;  %v1488_v15 = vsel %vm1486_vm4, %v1487_v25, %v1485_v20  ;;  %vm1512_vm11 = vcmp.eq.f32.partialorder %v3054_v52, inf }
 0x21e   : > { %v1490_v5 = vmul.f32 %v2480_v61, %v3027_v40  ;;  %v3073_v14 = vmax.f32 %v1295_v42, 0.0  ;;  %v1610_v22 = vmul.f32 %v1488_v15, %v2787_v29  ;;  %v1529_v29 = vand.u32 2147483648, %v3045_v23 }
 0x21f   : > { %v1506_v18 = vsel %vm1505_vm5, %v3021_v28, %v1504_v53  ;;  %2485 = vrsqrt.f32 %v3067_v1  ;;  %vm1514_vm12 = vcmp.eq.f32.partialorder %v3054_v52, 0.0  ;;  %v1515_v9 = vand.u32 2147483648, %v3054_v52 }
 0x220   : > { %v1509_v13 = vsel %vm1507_vm6, %v1508_v57, %v1506_v18  ;;  %v1492_v54 = vsel %vm1491_vm7, %v3027_v40, %v1490_v5  ;;  %2487 = vrsqrt.f32 %v3073_v14  ;;  %vm1533_vm13 = vcmp.eq.f32.partialorder %v3067_v1, inf }
 0x221   : > { %v1613_v7 = vmul.f32 %v1509_v13, %v2800_v51  ;;  %v1495_v43 = vsel %vm1493_vm8, %v1494_v21, %v1492_v54  ;;  %vm1535_vm14 = vcmp.eq.f32.partialorder %v3067_v1, 0.0  ;;  %v1536_v55 = vand.u32 2147483648, %v3067_v1 }
 0x222   : > { %v1611_v28 = vmul.f32 %v1495_v43, %v2790_v33  ;;  %vm1519_vm15 = vcmp.eq.f32.partialorder %v3073_v14, inf  ;;  %v1522_v20 = vand.u32 2147483648, %v3073_v14  ;;  %vm1521_vm0 = vcmp.eq.f32.partialorder %v3073_v14, 0.0 }
 0x223   : > { %v2057_v36 = vpack.c.bf16 %v1613_v7, %v1612_v32 }
 0x224   : > { %v2052_v24 = vpack.c.bf16 %v1611_v28, %v1610_v22 }
 0x225   : > { %v2336_v27 = vpop.f32.mrf.mxu1  ;;  %2097 = vst [vmem:[%s2900_s22 + $0x48] sm:$0xff] %v2057_v36  }
 0x226   : > { %v1316_v47 = vadd.f32 %v2336_v27, %v2869_v2  ;;  %2096 = vst [vmem:[%s2900_s22 + $0x40] sm:$0xff] %v2052_v24  }
 0x227   : > { %v2482_v0 = vpop.eup %2481  ;;  %v1307_v40 = vpop.f32.mrf.mxu1 }
 0x228   : > { %v1525_v46 = vmul.f32 %v2482_v0, %v3045_v23  ;;  %v3091_v35 = vmax.f32 %v1316_v47, 0.0  ;;  %v1308_v48 = vadd.f32 %v2869_v2, %v1307_v40 }
 0x229   : > { %v2337_v51 = vpop.f32.mrf.mxu1  ;;  %v2484_v34 = vpop.eup %2483 }
 0x22a   : > { %2489 = vrsqrt.f32 %v3091_v35  ;;  %v1511_v33 = vmul.f32 %v2484_v34, %v3054_v52  ;;  %v3100_v62 = vmax.f32 %v1308_v48, 0.0  ;;  %v1527_v11 = vsel %vm1526_vm9, %v3045_v23, %v1525_v46 }
 0x22b   : > { %v1310_v38 = vpop.f32.mrf.mxu1  ;;  %v1319_v30 = vadd.f32 %v2337_v51, %v2869_v2  ;;  %v1530_v6 = vsel %vm1528_vm10, %v1529_v29, %v1527_v11  ;;  %vm1554_vm1 = vcmp.eq.f32.partialorder %v3091_v35, inf  ;;  %vm1556_vm2 = vcmp.eq.f32.partialorder %v3091_v35, 0.0 }
 0x22c   : > { %v1311_v45 = vadd.f32 %v2869_v2, %v1310_v38  ;;  %v2486_v17 = vpop.eup %2485  ;;  %v1513_v41 = vsel %vm1512_vm11, %v3054_v52, %v1511_v33  ;;  %2491 = vrsqrt.f32 %v3100_v62  ;;  %v1616_v61 = vmul.f32 %v1530_v6, %v2817_v26 }
 0x22d   : > { %v2488_v12 = vpop.eup %2487  ;;  %v1532_v50 = vmul.f32 %v2486_v17, %v3067_v1  ;;  %v3113_v60 = vmax.f32 %v1319_v30, 0.0  ;;  %v1516_v42 = vsel %vm1514_vm12, %v1515_v9, %v1513_v41  ;;  %vm1540_vm3 = vcmp.eq.f32.partialorder %v3100_v62, inf }
 0x22e   : > { %v1518_v19 = vmul.f32 %v2488_v12, %v3073_v14  ;;  %v3119_v37 = vmax.f32 %v1311_v45, 0.0  ;;  %v1614_v57 = vmul.f32 %v1516_v42, %v2807_v3  ;;  %v1557_v3 = vand.u32 2147483648, %v3091_v35 }
 0x22f   : > { %v1534_v4 = vsel %vm1533_vm13, %v3067_v1, %v1532_v50  ;;  %2493 = vrsqrt.f32 %v3113_v60  ;;  %vm1542_vm4 = vcmp.eq.f32.partialorder %v3100_v62, 0.0  ;;  %v1543_v47 = vand.u32 2147483648, %v3100_v62 }
 0x230   : > { %v1537_v25 = vsel %vm1535_vm14, %v1536_v55, %v1534_v4  ;;  %v1520_v23 = vsel %vm1519_vm15, %v3073_v14, %v1518_v19  ;;  %2495 = vrsqrt.f32 %v3119_v37  ;;  %vm1561_vm5 = vcmp.eq.f32.partialorder %v3113_v60, inf }
 0x231   : > { %v1617_v52 = vmul.f32 %v1537_v25, %v2820_v31  ;;  %v1523_v53 = vsel %vm1521_vm0, %v1522_v20, %v1520_v23  ;;  %vm1563_vm6 = vcmp.eq.f32.partialorder %v3113_v60, 0.0  ;;  %v1564_v46 = vand.u32 2147483648, %v3113_v60 }
 0x232   : > { %v1615_v1 = vmul.f32 %v1523_v53, %v2810_v10  ;;  %vm1547_vm7 = vcmp.eq.f32.partialorder %v3119_v37, inf  ;;  %v1550_v38 = vand.u32 2147483648, %v3119_v37  ;;  %vm1549_vm8 = vcmp.eq.f32.partialorder %v3119_v37, 0.0 }
 0x233   : > { %v2067_v59 = vpack.c.bf16 %v1617_v52, %v1616_v61 }
 0x234   : > { %v2062_v5 = vpack.c.bf16 %v1615_v1, %v1614_v57 }
 0x235   : > { %v2340_v15 = vpop.f32.mrf.mxu1  ;;  %2099 = vst [vmem:[%s2900_s22 + $0x58] sm:$0xff] %v2067_v59  }
 0x236   : > { %v1332_v18 = vadd.f32 %v2340_v15, %v2869_v2  ;;  %2098 = vst [vmem:[%s2900_s22 + $0x50] sm:$0xff] %v2062_v5  }
 0x237   : > { %v2490_v21 = vpop.eup %2489  ;;  %v1323_v14 = vpop.f32.mrf.mxu1 }
 0x238   : > { %v1553_v13 = vmul.f32 %v2490_v21, %v3091_v35  ;;  %v3137_v54 = vmax.f32 %v1332_v18, 0.0  ;;  %v1324_v26 = vadd.f32 %v2869_v2, %v1323_v14 }
 0x239   : > { %v2341_v31 = vpop.f32.mrf.mxu1  ;;  %v2492_v32 = vpop.eup %2491 }
 0x23a   : > { %2497 = vrsqrt.f32 %v3137_v54  ;;  %v1539_v10 = vmul.f32 %v2492_v32, %v3100_v62  ;;  %v1366_v7 = vmax.f32 %v1324_v26, 0.0  ;;  %v1555_v22 = vsel %vm1554_vm1, %v3091_v35, %v1553_v13 }
 0x23b   : > { %v1326_v43 = vpop.f32.mrf.mxu1  ;;  %v1335_v28 = vadd.f32 %v2341_v31, %v2869_v2  ;;  %v1558_v51 = vsel %vm1556_vm2, %v1557_v3, %v1555_v22  ;;  %vm1582_vm9 = vcmp.eq.f32.partialorder %v3137_v54, inf  ;;  %vm1584_vm11 = vcmp.eq.f32.partialorder %v3137_v54, 0.0 }
 0x23c   : > { %v1327_v36 = vadd.f32 %v2869_v2, %v1326_v43  ;;  %v2494_v24 = vpop.eup %2493  ;;  %v1541_v27 = vsel %vm1540_vm3, %v3100_v62, %v1539_v10  ;;  %2499 = vrsqrt.f32 %v1366_v7  ;;  %v1620_v35 = vmul.f32 %v1558_v51, %v2837_v8 }
 0x23d   : > { %v2496_v0 = vpop.eup %2495  ;;  %v1560_v40 = vmul.f32 %v2494_v24, %v3113_v60  ;;  %v1369_v48 = vmax.f32 %v1335_v28, 0.0  ;;  %v1544_v29 = vsel %vm1542_vm4, %v1543_v47, %v1541_v27  ;;  %vm1568_vm10 = vcmp.eq.f32.partialorder %v1366_v7, inf }
 0x23e   : > { %v1546_v2 = vmul.f32 %v2496_v0, %v3119_v37  ;;  %v1367_v34 = vmax.f32 %v1327_v36, 0.0  ;;  %v1618_v62 = vmul.f32 %v1544_v29, %v2827_v49  ;;  %v1585_v49 = vand.u32 2147483648, %v3137_v54 }
 0x23f   : > { %v1562_v33 = vsel %vm1561_vm5, %v3113_v60, %v1560_v40  ;;  %2501 = vrsqrt.f32 %v1369_v48  ;;  %vm1570_vm12 = vcmp.eq.f32.partialorder %v1366_v7, 0.0  ;;  %vm1589_vm13 = vcmp.eq.f32.partialorder %v1369_v48, inf }
 0x240   : > { %v1565_v11 = vsel %vm1563_vm6, %v1564_v46, %v1562_v33  ;;  %v1548_v30 = vsel %vm1547_vm7, %v3119_v37, %v1546_v2  ;;  %2503 = vrsqrt.f32 %v1367_v34  ;;  %v1571_v37 = vand.u32 2147483648, %v1366_v7 }
 0x241   : > { %v1621_v45 = vmul.f32 %v1565_v11, %v2840_v16  ;;  %v1551_v17 = vsel %vm1549_vm8, %v1550_v38, %v1548_v30  ;;  %vm1591_vm14 = vcmp.eq.f32.partialorder %v1369_v48, 0.0  ;;  %v1592_v20 = vand.u32 2147483648, %v1369_v48 }
 0x242   : > { %v1619_v41 = vmul.f32 %v1551_v17, %v2830_v56  ;;  %vm1575_vm15 = vcmp.eq.f32.partialorder %v1367_v34, inf  ;;  %v1578_v52 = vand.u32 2147483648, %v1367_v34  ;;  %vm1577_vm0 = vcmp.eq.f32.partialorder %v1367_v34, 0.0 }
 0x243   : > { %v2077_v9 = vpack.c.bf16 %v1621_v45, %v1620_v35 }
 0x244   : > { %v2072_v12 = vpack.c.bf16 %v1619_v41, %v1618_v62 }
 0x245   : > { %2101 = vst [vmem:[%s2900_s22 + $0x68] sm:$0xff] %v2077_v9  }
 0x246   : > { %2100 = vst [vmem:[%s2900_s22 + $0x60] sm:$0xff] %v2072_v12  }
 0x247   : > { %v2498_v50 = vpop.eup %2497 }
 0x248   : > { %v1581_v55 = vmul.f32 %v2498_v50, %v3137_v54 }
 0x249   : > { %v2500_v60 = vpop.eup %2499 }
 0x24a   : > { %v1567_v6 = vmul.f32 %v2500_v60, %v1366_v7  ;;  %v1583_v8 = vsel %vm1582_vm9, %v3137_v54, %v1581_v55 }
 0x24b   : > { %v1586_v4 = vsel %vm1584_vm11, %v1585_v49, %v1583_v8 }
 0x24c   : > { %v2502_v16 = vpop.eup %2501  ;;  %v1569_v56 = vsel %vm1568_vm10, %v1366_v7, %v1567_v6  ;;  %v1624_v1 = vmul.f32 %v1586_v4, %v2857_v58 }
 0x24d   : > { %v2504_v19 = vpop.eup %2503  ;;  %v1588_v42 = vmul.f32 %v2502_v16, %v1369_v48  ;;  %v1572_v23 = vsel %vm1570_vm12, %v1571_v37, %v1569_v56 }
 0x24e   : > { %v1574_v25 = vmul.f32 %v2504_v19, %v1367_v34  ;;  %v1622_v15 = vmul.f32 %v1572_v23, %v2847_v39 }
 0x24f   : > { %v1590_v61 = vsel %vm1589_vm13, %v1369_v48, %v1588_v42 }
 0x250   : > { %v1593_v53 = vsel %vm1591_vm14, %v1592_v20, %v1590_v61  ;;  %v1576_v57 = vsel %vm1575_vm15, %v1367_v34, %v1574_v25 }
 0x251   : > { %v1625_v59 = vmul.f32 %v1593_v53, %v2860_v63  ;;  %v1579_v5 = vsel %vm1577_vm0, %v1578_v52, %v1576_v57 }
 0x252   : > { %v1623_v18 = vmul.f32 %v1579_v5, %v2850_v44 }
 0x253   : > { %v2087_v21 = vpack.c.bf16 %v1625_v59, %v1624_v1 }
 0x254   : > { %v2082_v14 = vpack.c.bf16 %v1623_v18, %v1622_v15 }
 0x255   : > { %2103 = vst [vmem:[%s2900_s22 + $0x78] sm:$0xff] %v2087_v21  }
 0x256   : > { %2102 = vst [vmem:[%s2900_s22 + $0x70] sm:$0xff] %v2082_v14  }
 0x257 PF: > { %s15_s18 = sadd.s32 1, %s2511_s18  }
 0x258   : > { %p12_p4 = scmp.ge.s32.totalorder %s15_s18, 4  }
 0x25a   :  { %14 = sbr.rel (!%p12_p4) target bundleno = 1 (0x1), region = 70 }

// kernel: synthesis_net_17_forward.5
= control target key start
LH: loop header
LB: loop body
LE: loop exit
PB: predicated region body
PF: predicated region fallthrough
CT: control target
= control target key end

     0   :  { %s2209_s12 = smov 0   ;;  %s2692_s0 = inlined_call_operand.vmem [shape: bf16[2048,288], index: 0, kind: input, shape index: {}]   ;;  %s2693_s1 = inlined_call_operand.vmem [shape: bf16[288,128], index: 1, kind: input, shape index: {}]   ;;  %s2694_s2 = inlined_call_operand.vmem [shape: f32[1,128], index: 2, kind: input, shape index: {}]   ;;  %s2695_s3 = inlined_call_operand.vmem [shape: f32[2048,128], index: 3, kind: output, shape index: {}]  }
   0x1 LB: > { %s1732_s13 = sadd.s32 4294967295, %s2186_s12   ;;  %p1736_p0 = scmp.ge.s32.totalorder %s2186_s12, 1  ;;  %s2186_s12 = sphi %s2209_s12, %s13_s12  }
   0x2   : > { %p139_p1 = scmp.lt.s32.totalorder %s2186_s12, 5 }
   0x4   : > { %p140_p2 = pnand %p1736_p0, %p139_p1 }
   0x5   : > { %s1737_s16 = sshll.u32 (!%p140_p2), %s1732_s13, 6 }
   0x6   : > { %143 = sbr.rel (%p140_p2) target bundleno = 462 (0x1ce), region = 32  ;;  %p165_p3 = scmp.lt.s32.totalorder (!%p140_p2), %s1737_s16, 255 }
   0xb   : > { %v2034_v0 = vld [vmem:[%s2693_s1 + $0x38] sm:$0xff]   ;;  %v2188_v1 = vmov 0   ;;  %v2035_v2 = vld [vmem:[%s2693_s1 + $0x30] sm:$0xff]   ;;  %v2036_v3 = vld [vmem:[%s2693_s1 + $0x28] sm:$0xff]   ;;  %s2697_s16 = smov (!%p165_p3, %s1737_s16), 255  ;;  %vm937_vm0 = vcmask 261120  }
   0xc   : > { %1034 = vmatprep.subr.bf16.mxu0 %v2188_v1  ;;  %1992 = vmatprep.subr.bf16.mxu1 %v2188_v1  ;;  %v2037_v4 = vld [vmem:[%s2693_s1 + $0x20] sm:$0xff]   ;;  %s2024_s23 = smul.u32 12, %s2697_s16  ;;  %v2038_v5 = vld [vmem:[%s2693_s1 + $0x18] sm:$0xff]   ;;  %v2039_v7 = vld [vmem:[%s2693_s1 + $0x10] sm:$0xff]  }
   0xd   : > { %1035 = vmatpush1.bf16.msra.mxu0 %v2034_v0  ;;  %2008 = vmatpush1.bf16.msra.mxu1 %v2034_v0  ;;  %v2040_v9 = vld [vmem:[%s2693_s1 + $0x8] sm:$0xff]   ;;  %v2041_v10 = vld [vmem:[%s2693_s1] sm:$0xff]   ;;  %v2042_v11 = vld [vmem:[%s2693_s1 + $0x78] sm:$0xff]  }
   0xe   : > { %1036 = vmatprep.subr.bf16.mxu0 %v2188_v1  ;;  %1993 = vmatprep.subr.bf16.mxu1 %v2188_v1  ;;  %s2246_s28 = scalar_lea.vmem %s2692_s0, %s2024_s23  ;;  %v2043_v12 = vld [vmem:[%s2693_s1 + $0x70] sm:$0xff]   ;;  %v2044_v13 = vld [vmem:[%s2693_s1 + $0x68] sm:$0xff]   ;;  %v2045_v14 = vld [vmem:[%s2693_s1 + $0x60] sm:$0xff]  }
   0xf   : > { %v2052_v6 = vld [vmem:[%s2246_s28 + $0x4] ss:$12 sps:$4 sm:$0xff]   ;;  %v2046_v15 = vld [vmem:[%s2693_s1 + $0x58] sm:$0xff]   ;;  %v2048_v17 = vld [vmem:[%s2693_s1 + $0x48] sm:$0xff]  }
  0x10   : > { %v2055_v8 = vld [vmem:[%s2246_s28 + $0x244] ss:$12 sps:$4 sm:$0xff]   ;;  %1066 = vmatprep.mubr.bf16.mxu0 %v2052_v6  ;;  %v2056_v19 = vld [vmem:[%s2693_s1 + $0x88] sm:$0xff]   ;;  %v2063_v27 = vld [vmem:[%s2246_s28 + $0x34] ss:$12 sps:$4 sm:$0xff]  }
  0x11   : > { %1037 = vmatpush1.bf16.msra.mxu0 %v2035_v2  ;;  %2009 = vmatpush1.bf16.msra.mxu1 %v2035_v2  ;;  %v2047_v16 = vld [vmem:[%s2693_s1 + $0x50] sm:$0xff]   ;;  %v2049_v18 = vld [vmem:[%s2693_s1 + $0x40] sm:$0xff]   ;;  %v2057_v22 = vld [vmem:[%s2246_s28 + $0x1c] ss:$12 sps:$4 sm:$0xff]  }
  0x12   : > { %1038 = vmatprep.subr.bf16.mxu0 %v2188_v1  ;;  %1994 = vmatprep.subr.bf16.mxu1 %v2188_v1  ;;  %v2050_v20 = vld [vmem:[%s2246_s28] ss:$12 sps:$4 sm:$0xff]   ;;  %v2059_v23 = vld [vmem:[%s2246_s28 + $0x25c] ss:$12 sps:$4 sm:$0xff]   ;;  %v2061_v25 = vld [vmem:[%s2246_s28 + $0x18] ss:$12 sps:$4 sm:$0xff]  }
  0x13   : > { %1258 = vmatprep.mubr.bf16.mxu1 %v2055_v8  ;;  %v2053_v21 = vld [vmem:[%s2246_s28 + $0x240] ss:$12 sps:$4 sm:$0xff]   ;;  %v2062_v26 = vld [vmem:[%s2246_s28 + $0x258] ss:$12 sps:$4 sm:$0xff]   ;;  %v2067_v29 = vld [vmem:[%s2246_s28 + $0x30] ss:$12 sps:$4 sm:$0xff]  }
  0x14   : > { %v2081_v24 = vld [vmem:[%s2693_s1 + $0x80] sm:$0xff]   ;;  %v2068_v30 = vld [vmem:[%s2246_s28 + $0x270] ss:$12 sps:$4 sm:$0xff]   ;;  %v2069_v31 = vld [vmem:[%s2246_s28 + $0x4c] ss:$12 sps:$4 sm:$0xff]  }
  0x15   : > { %1039 = vmatpush1.bf16.msra.mxu0 %v2036_v3  ;;  %2010 = vmatpush1.bf16.msra.mxu1 %v2036_v3  ;;  %v2065_v28 = vld [vmem:[%s2246_s28 + $0x274] ss:$12 sps:$4 sm:$0xff]   ;;  %v2071_v32 = vld [vmem:[%s2246_s28 + $0x28c] ss:$12 sps:$4 sm:$0xff]   ;;  %v2075_v35 = vld [vmem:[%s2246_s28 + $0x64] ss:$12 sps:$4 sm:$0xff]  }
  0x16   : > { %1040 = vmatprep.subr.bf16.mxu0 %v2188_v1  ;;  %1995 = vmatprep.subr.bf16.mxu1 %v2188_v1  ;;  %v2073_v33 = vld [vmem:[%s2246_s28 + $0x48] ss:$12 sps:$4 sm:$0xff]   ;;  %v2077_v36 = vld [vmem:[%s2246_s28 + $0x2a4] ss:$12 sps:$4 sm:$0xff]   ;;  %v2079_v37 = vld [vmem:[%s2246_s28 + $0x60] ss:$12 sps:$4 sm:$0xff]  }
  0x17   : > { %v2074_v34 = vld [vmem:[%s2246_s28 + $0x288] ss:$12 sps:$4 sm:$0xff]   ;;  %v2080_v38 = vld [vmem:[%s2246_s28 + $0x2a0] ss:$12 sps:$4 sm:$0xff]   ;;  %v2086_v41 = vld [vmem:[%s2246_s28 + $0x78] ss:$12 sps:$4 sm:$0xff]  }
  0x18   : > { %v2082_v39 = vld [vmem:[%s2246_s28 + $0x7c] ss:$12 sps:$4 sm:$0xff]   ;;  %v2087_v42 = vld [vmem:[%s2246_s28 + $0x2b8] ss:$12 sps:$4 sm:$0xff]   ;;  %v2088_v43 = vld [vmem:[%s2246_s28 + $0x94] ss:$12 sps:$4 sm:$0xff]  }
  0x19   : > { %1041 = vmatpush1.bf16.msra.mxu0 %v2037_v4  ;;  %2011 = vmatpush1.bf16.msra.mxu1 %v2037_v4  ;;  %v2084_v40 = vld [vmem:[%s2246_s28 + $0x2bc] ss:$12 sps:$4 sm:$0xff]   ;;  %v2090_v44 = vld [vmem:[%s2246_s28 + $0x2d4] ss:$12 sps:$4 sm:$0xff]   ;;  %v2094_v47 = vld [vmem:[%s2246_s28 + $0xac] ss:$12 sps:$4 sm:$0xff]  }
  0x1a   : > { %1042 = vmatprep.subr.bf16.mxu0 %v2188_v1  ;;  %1996 = vmatprep.subr.bf16.mxu1 %v2188_v1  ;;  %v2092_v45 = vld [vmem:[%s2246_s28 + $0x90] ss:$12 sps:$4 sm:$0xff]   ;;  %v2096_v48 = vld [vmem:[%s2246_s28 + $0x2ec] ss:$12 sps:$4 sm:$0xff]   ;;  %v2098_v49 = vld [vmem:[%s2246_s28 + $0xa8] ss:$12 sps:$4 sm:$0xff]  }
  0x1b   : > { %v2093_v46 = vld [vmem:[%s2246_s28 + $0x2d0] ss:$12 sps:$4 sm:$0xff]   ;;  %v2099_v50 = vld [vmem:[%s2246_s28 + $0x2e8] ss:$12 sps:$4 sm:$0xff]   ;;  %v2103_v53 = vld [vmem:[%s2246_s28 + $0xc0] ss:$12 sps:$4 sm:$0xff]  }
  0x1c   : > { %v2100_v51 = vld [vmem:[%s2246_s28 + $0xc4] ss:$12 sps:$4 sm:$0xff]   ;;  %v2102_v52 = vld [vmem:[%s2246_s28 + $0x8] ss:$12 sps:$4 sm:$0xff]   ;;  %v2104_v54 = vld [vmem:[%s2246_s28 + $0x20] ss:$12 sps:$4 sm:$0xff]  }
  0x1d   : > { %1043 = vmatpush1.bf16.msra.mxu0 %v2038_v5  ;;  %2012 = vmatpush1.bf16.msra.mxu1 %v2038_v5  ;;  %v2105_v55 = vld [vmem:[%s2246_s28 + $0xdc] ss:$12 sps:$4 sm:$0xff]   ;;  %v2107_v56 = vld [vmem:[%s2246_s28 + $0x38] ss:$12 sps:$4 sm:$0xff]   ;;  %v2110_v59 = vld [vmem:[%s2246_s28 + $0xf4] ss:$12 sps:$4 sm:$0xff]  }
  0x1e   : > { %1044 = vmatprep.subr.bf16.mxu0 %v2188_v1  ;;  %1997 = vmatprep.subr.bf16.mxu1 %v2188_v1  ;;  %v2108_v57 = vld [vmem:[%s2246_s28 + $0xd8] ss:$12 sps:$4 sm:$0xff]   ;;  %v2109_v58 = vld [vmem:[%s2246_s28 + $0x50] ss:$12 sps:$4 sm:$0xff]   ;;  %v2112_v60 = vld [vmem:[%s2246_s28 + $0x68] ss:$12 sps:$4 sm:$0xff]  }
  0x1f   : > { %v2113_v61 = vld [vmem:[%s2246_s28 + $0xf0] ss:$12 sps:$4 sm:$0xff]   ;;  %v2114_v62 = vld [vmem:[%s2246_s28 + $0x80] ss:$12 sps:$4 sm:$0xff]   ;;  %v2117_v0 = vld [vmem:[%s2246_s28 + $0x98] ss:$12 sps:$4 sm:$0xff]  }
  0x20   : > { %v2115_v63 = vld [vmem:[%s2246_s28 + $0x10c] ss:$12 sps:$4 sm:$0xff]   ;;  %v2119_v2 = vld [vmem:[%s2246_s28 + $0xb0] ss:$12 sps:$4 sm:$0xff]   ;;  %v2122_v4 = vld [vmem:[%s2246_s28 + $0xc8] ss:$12 sps:$4 sm:$0xff]  }
  0x21   : > { %1045 = vmatpush1.bf16.msra.mxu0 %v2039_v7  ;;  %2013 = vmatpush1.bf16.msra.mxu1 %v2039_v7  ;;  %v2120_v3 = vld [vmem:[%s2246_s28 + $0x124] ss:$12 sps:$4 sm:$0xff]   ;;  %v2123_v5 = vld [vmem:[%s2246_s28 + $0x120] ss:$12 sps:$4 sm:$0xff]   ;;  %v2125_v7 = vld [vmem:[%s2246_s28 + $0x13c] ss:$12 sps:$4 sm:$0xff]  }
  0x22   : > { %1046 = vmatprep.subr.bf16.mxu0 %v2188_v1  ;;  %1998 = vmatprep.subr.bf16.mxu1 %v2188_v1  ;;  %v2124_v6 = vld [vmem:[%s2246_s28 + $0xe0] ss:$12 sps:$4 sm:$0xff]   ;;  %v2127_v8 = vld [vmem:[%s2246_s28 + $0xf8] ss:$12 sps:$4 sm:$0xff]  }
  0x25   : > { %1047 = vmatpush1.bf16.msra.mxu0 %v2040_v9  ;;  %2014 = vmatpush1.bf16.msra.mxu1 %v2040_v9  ;;  %v2128_v9 = vld [vmem:[%s2246_s28 + $0x138] ss:$12 sps:$4 sm:$0xff]  }
  0x26   : > { %1048 = vmatprep.subr.bf16.mxu0 %v2188_v1  ;;  %1999 = vmatprep.subr.bf16.mxu1 %v2188_v1 }
  0x29   : > { %1049 = vmatpush1.bf16.msra.mxu0 %v2041_v10  ;;  %2015 = vmatpush1.bf16.msra.mxu1 %v2041_v10  ;;  %v2129_v10 = vld [vmem:[%s2246_s28 + $0x110] ss:$12 sps:$4 sm:$0xff]  }
  0x2a   : > { %1050 = vmatprep.subr.bf16.mxu0 %v2188_v1  ;;  %2000 = vmatprep.subr.bf16.mxu1 %v2188_v1 }
  0x2d   : > { %1051 = vmatpush2.bf16.msra.mxu0 %v2042_v11  ;;  %2016 = vmatpush2.bf16.msra.mxu1 %v2042_v11  ;;  %v2130_v11 = vld [vmem:[%s2246_s28 + $0x154] ss:$12 sps:$4 sm:$0xff]  }
  0x2e   : > { %1052 = vmatprep.subr.bf16.mxu0 %v2188_v1  ;;  %2001 = vmatprep.subr.bf16.mxu1 %v2188_v1 }
  0x31   : > { %1053 = vmatpush2.bf16.msra.mxu0 %v2043_v12  ;;  %2017 = vmatpush2.bf16.msra.mxu1 %v2043_v12  ;;  %v2132_v12 = vld [vmem:[%s2246_s28 + $0x128] ss:$12 sps:$4 sm:$0xff]  }
  0x32   : > { %1054 = vmatprep.subr.bf16.mxu0 %v2188_v1  ;;  %2002 = vmatprep.subr.bf16.mxu1 %v2188_v1 }
  0x35   : > { %1055 = vmatpush2.bf16.msra.mxu0 %v2044_v13  ;;  %2018 = vmatpush2.bf16.msra.mxu1 %v2044_v13  ;;  %v2133_v13 = vld [vmem:[%s2246_s28 + $0x150] ss:$12 sps:$4 sm:$0xff]  }
  0x36   : > { %1056 = vmatprep.subr.bf16.mxu0 %v2188_v1  ;;  %2003 = vmatprep.subr.bf16.mxu1 %v2188_v1 }
  0x39   : > { %1057 = vmatpush2.bf16.msra.mxu0 %v2045_v14  ;;  %2019 = vmatpush2.bf16.msra.mxu1 %v2045_v14  ;;  %v2134_v14 = vld [vmem:[%s2246_s28 + $0x140] ss:$12 sps:$4 sm:$0xff]  }
  0x3a   : > { %1058 = vmatprep.subr.bf16.mxu0 %v2188_v1  ;;  %2004 = vmatprep.subr.bf16.mxu1 %v2188_v1 }
  0x3d   : > { %1059 = vmatpush2.bf16.msra.mxu0 %v2046_v15  ;;  %2020 = vmatpush2.bf16.msra.mxu1 %v2046_v15  ;;  %v2135_v15 = vld [vmem:[%s2246_s28 + $0x16c] ss:$12 sps:$4 sm:$0xff]  }
  0x3e   : > { %1060 = vmatprep.subr.bf16.mxu0 %v2188_v1  ;;  %2005 = vmatprep.subr.bf16.mxu1 %v2188_v1 }
  0x41   : > { %1061 = vmatpush2.bf16.msra.mxu0 %v2047_v16  ;;  %2021 = vmatpush2.bf16.msra.mxu1 %v2047_v16  ;;  %v2137_v16 = vld [vmem:[%s2246_s28 + $0x158] ss:$12 sps:$4 sm:$0xff]  }
  0x42   : > { %1062 = vmatprep.subr.bf16.mxu0 %v2188_v1  ;;  %2006 = vmatprep.subr.bf16.mxu1 %v2188_v1 }
  0x45   : > { %1063 = vmatpush2.bf16.msra.mxu0 %v2048_v17  ;;  %2022 = vmatpush2.bf16.msra.mxu1 %v2048_v17  ;;  %v2138_v17 = vld [vmem:[%s2246_s28 + $0x168] ss:$12 sps:$4 sm:$0xff]  }
  0x46   : > { %1064 = vmatprep.subr.bf16.mxu0 %v2188_v1  ;;  %2007 = vmatprep.subr.bf16.mxu1 %v2188_v1  ;;  %v2118_v1 = vld [vmem:[%s2246_s28 + $0x108] ss:$12 sps:$4 sm:$0xff]  }
  0x49   : > { %1065 = vmatpush2.bf16.msra.mxu0 %v2049_v18  ;;  %2023 = vmatpush2.bf16.msra.mxu1 %v2049_v18  ;;  %v2139_v18 = vld [vmem:[%s2246_s28 + $0x170] ss:$12 sps:$4 sm:$0xff]  }
  0x4a   : > { %1924 = vmatprep.subr.bf16.mxu1 %v2056_v19 }
  0x4c   : > { %1067 = vmatmul.mubr.bf16.vlgmr.msra.gmra.mxu0 %v2050_v20  ;;  %1259 = vmatmul.mubr.bf16.vlgmr.msra.gmra.mxu1 %v2053_v21  ;;  %v2142_v20 = vld [vmem:[%s2246_s28 + $0x188] ss:$12 sps:$4 sm:$0xff]   ;;  %v2143_v21 = vld [vmem:[%s2246_s28 + $0x180] ss:$12 sps:$4 sm:$0xff]  }
  0x4d   : > { %1925 = vmatpush3.bf16.msra.mxu1 %v2056_v19  ;;  %1074 = vmatprep.mubr.bf16.mxu0 %v2057_v22  ;;  %v2140_v19 = vld [vmem:[%s2246_s28 + $0x184] ss:$12 sps:$4 sm:$0xff]   ;;  %v2144_v22 = vld [vmem:[%s2246_s28 + $0x1a0] ss:$12 sps:$4 sm:$0xff]  }
  0x4e   : > { %1266 = vmatprep.mubr.bf16.mxu1 %v2059_v23  ;;  %1926 = vmatprep.subr.bf16.mxu1 %v2081_v24  ;;  %v2145_v23 = vld [vmem:[%s2246_s28 + $0x19c] ss:$12 sps:$4 sm:$0xff]  }
  0x51   : > { %1927 = vmatpush3.bf16.msra.mxu1 %v2081_v24  ;;  %v2147_v24 = vld [vmem:[%s2246_s28 + $0x1b8] ss:$12 sps:$4 sm:$0xff]  }
  0x54   : > { %1075 = vmatmul.mubr.bf16.gmra.mxu0 %v2061_v25  ;;  %1267 = vmatmul.mubr.bf16.gmra.mxu1 %v2062_v26  ;;  %v2148_v25 = vld [vmem:[%s2246_s28 + $0x198] ss:$12 sps:$4 sm:$0xff]   ;;  %v2149_v26 = vld [vmem:[%s2246_s28 + $0x1d0] ss:$12 sps:$4 sm:$0xff]  }
  0x55   : > { %1082 = vmatprep.mubr.bf16.mxu0 %v2063_v27  ;;  %1274 = vmatprep.mubr.bf16.mxu1 %v2065_v28  ;;  %v2150_v27 = vld [vmem:[%s2246_s28 + $0x1b4] ss:$12 sps:$4 sm:$0xff]  }
  0x56   : > { %v2152_v28 = vld [vmem:[%s2246_s28 + $0x1e8] ss:$12 sps:$4 sm:$0xff]  }
  0x5c   : > { %1083 = vmatmul.mubr.bf16.gmra.mxu0 %v2067_v29  ;;  %1275 = vmatmul.mubr.bf16.gmra.mxu1 %v2068_v30  ;;  %v2153_v29 = vld [vmem:[%s2246_s28 + $0x1b0] ss:$12 sps:$4 sm:$0xff]   ;;  %v2154_v30 = vld [vmem:[%s2246_s28 + $0x200] ss:$12 sps:$4 sm:$0xff]  }
  0x5d   : > { %1090 = vmatprep.mubr.bf16.mxu0 %v2069_v31  ;;  %1282 = vmatprep.mubr.bf16.mxu1 %v2071_v32  ;;  %v2155_v31 = vld [vmem:[%s2246_s28 + $0x1cc] ss:$12 sps:$4 sm:$0xff]  }
  0x5e   : > { %v2157_v32 = vld [vmem:[%s2246_s28 + $0x218] ss:$12 sps:$4 sm:$0xff]  }
  0x64   : > { %1091 = vmatmul.mubr.bf16.gmra.mxu0 %v2073_v33  ;;  %1283 = vmatmul.mubr.bf16.gmra.mxu1 %v2074_v34  ;;  %v2158_v33 = vld [vmem:[%s2246_s28 + $0x1c8] ss:$12 sps:$4 sm:$0xff]   ;;  %v2159_v34 = vld [vmem:[%s2246_s28 + $0x230] ss:$12 sps:$4 sm:$0xff]  }
  0x65   : > { %1098 = vmatprep.mubr.bf16.mxu0 %v2075_v35  ;;  %1290 = vmatprep.mubr.bf16.mxu1 %v2077_v36  ;;  %v2160_v35 = vld [vmem:[%s2246_s28 + $0x1e4] ss:$12 sps:$4 sm:$0xff]   ;;  %v2162_v36 = vld [vmem:[%s2246_s28 + $0x248] ss:$12 sps:$4 sm:$0xff]  }
  0x6c   : > { %1099 = vmatmul.mubr.bf16.gmra.mxu0 %v2079_v37  ;;  %1291 = vmatmul.mubr.bf16.gmra.mxu1 %v2080_v38  ;;  %v2163_v37 = vld [vmem:[%s2246_s28 + $0x1e0] ss:$12 sps:$4 sm:$0xff]  }
  0x6d   : > { %1106 = vmatprep.mubr.bf16.mxu0 %v2082_v39  ;;  %1298 = vmatprep.mubr.bf16.mxu1 %v2084_v40  ;;  %v2164_v38 = vld [vmem:[%s2246_s28 + $0x260] ss:$12 sps:$4 sm:$0xff]   ;;  %v2165_v39 = vld [vmem:[%s2246_s28 + $0x1fc] ss:$12 sps:$4 sm:$0xff]   ;;  %v2167_v40 = vld [vmem:[%s2246_s28 + $0x278] ss:$12 sps:$4 sm:$0xff]  }
  0x74   : > { %1107 = vmatmul.mubr.bf16.gmra.mxu0 %v2086_v41  ;;  %1299 = vmatmul.mubr.bf16.gmra.mxu1 %v2087_v42  ;;  %v2168_v41 = vld [vmem:[%s2246_s28 + $0x1f8] ss:$12 sps:$4 sm:$0xff]   ;;  %v2169_v42 = vld [vmem:[%s2246_s28 + $0x290] ss:$12 sps:$4 sm:$0xff]  }
  0x75   : > { %1114 = vmatprep.mubr.bf16.mxu0 %v2088_v43  ;;  %1306 = vmatprep.mubr.bf16.mxu1 %v2090_v44  ;;  %v2170_v43 = vld [vmem:[%s2246_s28 + $0x214] ss:$12 sps:$4 sm:$0xff]  }
  0x76   : > { %v2172_v44 = vld [vmem:[%s2246_s28 + $0x2a8] ss:$12 sps:$4 sm:$0xff]  }
  0x7c   : > { %1115 = vmatmul.mubr.bf16.gmra.mxu0 %v2092_v45  ;;  %1307 = vmatmul.mubr.bf16.gmra.mxu1 %v2093_v46  ;;  %v2173_v45 = vld [vmem:[%s2246_s28 + $0x210] ss:$12 sps:$4 sm:$0xff]   ;;  %v2174_v46 = vld [vmem:[%s2246_s28 + $0x2c0] ss:$12 sps:$4 sm:$0xff]  }
  0x7d   : > { %1122 = vmatprep.mubr.bf16.mxu0 %v2094_v47  ;;  %1314 = vmatprep.mubr.bf16.mxu1 %v2096_v48  ;;  %v2175_v47 = vld [vmem:[%s2246_s28 + $0x22c] ss:$12 sps:$4 sm:$0xff]  }
  0x7e   : > { %v2177_v48 = vld [vmem:[%s2246_s28 + $0x2d8] ss:$12 sps:$4 sm:$0xff]  }
  0x84   : > { %1123 = vmatmul.mubr.bf16.gmra.mxu0 %v2098_v49  ;;  %1315 = vmatmul.mubr.bf16.gmra.mxu1 %v2099_v50  ;;  %v2178_v49 = vld [vmem:[%s2246_s28 + $0x228] ss:$12 sps:$4 sm:$0xff]   ;;  %v2179_v50 = vld [vmem:[%s2246_s28 + $0x2f0] ss:$12 sps:$4 sm:$0xff]   ;;  %s1740_s28 = sshll.u32 %s2697_s16, 3 }
  0x85   : > { %1130 = vmatprep.mubr.bf16.mxu0 %v2100_v51  ;;  %1928 = vmatprep.mubr.msk.bf16.mxu1 %vm937_vm0, %v2102_v52  ;;  %s2509_s8 = scalar_lea.vmem %s2695_s3, %s1740_s28 }
  0x8c   : > { %1131 = vmatmul.mubr.bf16.gmra.mxu0 %v2103_v53  ;;  %1929 = vmatmul.mubr.msk.bf16.vlgmr.msra.gmra.mxu1 %vm937_vm0, %v2104_v54 }
  0x8d   : > { %1138 = vmatprep.mubr.bf16.mxu0 %v2105_v55  ;;  %1932 = vmatprep.mubr.msk.bf16.mxu1 %vm937_vm0, %v2107_v56 }
  0x94   : > { %1139 = vmatmul.mubr.bf16.gmra.mxu0 %v2108_v57  ;;  %1933 = vmatmul.mubr.msk.bf16.gmra.mxu1 %vm937_vm0, %v2109_v58 }
  0x95   : > { %1146 = vmatprep.mubr.bf16.mxu0 %v2110_v59  ;;  %1936 = vmatprep.mubr.msk.bf16.mxu1 %vm937_vm0, %v2112_v60 }
  0x9c   : > { %1147 = vmatmul.mubr.bf16.gmra.mxu0 %v2113_v61  ;;  %1937 = vmatmul.mubr.msk.bf16.gmra.mxu1 %vm937_vm0, %v2114_v62 }
  0x9d   : > { %1154 = vmatprep.mubr.bf16.mxu0 %v2115_v63  ;;  %1940 = vmatprep.mubr.msk.bf16.mxu1 %vm937_vm0, %v2117_v0 }
  0xa4   : > { %1155 = vmatmul.mubr.bf16.gmra.mxu0 %v2118_v1  ;;  %1941 = vmatmul.mubr.msk.bf16.gmra.mxu1 %vm937_vm0, %v2119_v2 }
  0xa5   : > { %1162 = vmatprep.mubr.bf16.mxu0 %v2120_v3  ;;  %1944 = vmatprep.mubr.msk.bf16.mxu1 %vm937_vm0, %v2122_v4 }
  0xac   : > { %1163 = vmatmul.mubr.bf16.gmra.mxu0 %v2123_v5  ;;  %1945 = vmatmul.mubr.msk.bf16.gmra.mxu1 %vm937_vm0, %v2124_v6 }
  0xad   : > { %1170 = vmatprep.mubr.bf16.mxu0 %v2125_v7  ;;  %1948 = vmatprep.mubr.msk.bf16.mxu1 %vm937_vm0, %v2127_v8 }
  0xb4   : > { %1171 = vmatmul.mubr.bf16.gmra.mxu0 %v2128_v9  ;;  %1949 = vmatmul.mubr.msk.bf16.gmra.mxu1 %vm937_vm0, %v2129_v10 }
  0xb5   : > { %1178 = vmatprep.mubr.bf16.mxu0 %v2130_v11  ;;  %1952 = vmatprep.mubr.msk.bf16.mxu1 %vm937_vm0, %v2132_v12 }
  0xbc   : > { %1179 = vmatmul.mubr.bf16.gmra.mxu0 %v2133_v13  ;;  %1953 = vmatmul.mubr.msk.bf16.gmra.mxu1 %vm937_vm0, %v2134_v14 }
  0xbd   : > { %1186 = vmatprep.mubr.bf16.mxu0 %v2135_v15  ;;  %1956 = vmatprep.mubr.msk.bf16.mxu1 %vm937_vm0, %v2137_v16 }
  0xc4   : > { %1187 = vmatmul.mubr.bf16.gmra.mxu0 %v2138_v17  ;;  %1957 = vmatmul.mubr.msk.bf16.gmra.mxu1 %vm937_vm0, %v2139_v18 }
  0xc5   : > { %1194 = vmatprep.mubr.bf16.mxu0 %v2140_v19  ;;  %1960 = vmatprep.mubr.msk.bf16.mxu1 %vm937_vm0, %v2142_v20 }
  0xcc   : > { %1195 = vmatmul.mubr.bf16.gmra.mxu0 %v2143_v21  ;;  %1961 = vmatmul.mubr.msk.bf16.gmra.mxu1 %vm937_vm0, %v2144_v22 }
  0xcd   : > { %1202 = vmatprep.mubr.bf16.mxu0 %v2145_v23  ;;  %1964 = vmatprep.mubr.msk.bf16.mxu1 %vm937_vm0, %v2147_v24 }
  0xd4   : > { %1203 = vmatmul.mubr.bf16.gmra.mxu0 %v2148_v25  ;;  %1965 = vmatmul.mubr.msk.bf16.gmra.mxu1 %vm937_vm0, %v2149_v26 }
  0xd5   : > { %1210 = vmatprep.mubr.bf16.mxu0 %v2150_v27  ;;  %1968 = vmatprep.mubr.msk.bf16.mxu1 %vm937_vm0, %v2152_v28 }
  0xdc   : > { %1211 = vmatmul.mubr.bf16.gmra.mxu0 %v2153_v29  ;;  %1969 = vmatmul.mubr.msk.bf16.gmra.mxu1 %vm937_vm0, %v2154_v30 }
  0xdd   : > { %1218 = vmatprep.mubr.bf16.mxu0 %v2155_v31  ;;  %1972 = vmatprep.mubr.msk.bf16.mxu1 %vm937_vm0, %v2157_v32 }
  0xe4   : > { %1219 = vmatmul.mubr.bf16.gmra.mxu0 %v2158_v33  ;;  %1973 = vmatmul.mubr.msk.bf16.gmra.mxu1 %vm937_vm0, %v2159_v34 }
  0xe5   : > { %1226 = vmatprep.mubr.bf16.mxu0 %v2160_v35  ;;  %1976 = vmatprep.mubr.msk.bf16.mxu1 %vm937_vm0, %v2162_v36 }
  0xec   : > { %1227 = vmatmul.mubr.bf16.gmra.mxu0 %v2163_v37  ;;  %1977 = vmatmul.mubr.msk.bf16.gmra.mxu1 %vm937_vm0, %v2164_v38 }
  0xed   : > { %1234 = vmatprep.mubr.bf16.mxu0 %v2165_v39  ;;  %1980 = vmatprep.mubr.msk.bf16.mxu1 %vm937_vm0, %v2167_v40 }
  0xf4   : > { %1235 = vmatmul.mubr.bf16.gmra.mxu0 %v2168_v41  ;;  %1981 = vmatmul.mubr.msk.bf16.gmra.mxu1 %vm937_vm0, %v2169_v42 }
  0xf5   : > { %1242 = vmatprep.mubr.bf16.mxu0 %v2170_v43  ;;  %1984 = vmatprep.mubr.msk.bf16.mxu1 %vm937_vm0, %v2172_v44 }
  0xfc   : > { %1243 = vmatmul.mubr.bf16.gmra.mxu0 %v2173_v45  ;;  %1985 = vmatmul.mubr.msk.bf16.gmra.mxu1 %vm937_vm0, %v2174_v46 }
  0xfd   : > { %1250 = vmatprep.mubr.bf16.mxu0 %v2175_v47  ;;  %1988 = vmatprep.mubr.msk.bf16.mxu1 %vm937_vm0, %v2177_v48 }
 0x104   : > { %1251 = vmatmul.mubr.bf16.gmra.mxu0 %v2178_v49  ;;  %1989 = vmatmul.mubr.msk.bf16.gmra.mxu1 %vm937_vm0, %v2179_v50  ;;  %v2501_v49 = vld [vmem:[%s2694_s2] ss:$0 sm:$0xff] }
 0x10c   : > { %v2439_v51 = vpop.f32.mrf.mxu0  ;;  %v2441_v52 = vpop.f32.mrf.mxu1 }
 0x10e   : > { %v1070_v53 = vpop.f32.mrf.mxu0  ;;  %v1262_v54 = vpop.f32.mrf.mxu1 }
 0x110   : > { %v2443_v55 = vpop.f32.mrf.mxu0  ;;  %v2445_v56 = vpop.f32.mrf.mxu1 }
 0x112   : > { %v1073_v57 = vpop.f32.mrf.mxu0  ;;  %v1265_v58 = vpop.f32.mrf.mxu1 }
 0x114   : > { %v1076_v59 = vpop.f32.mrf.mxu0  ;;  %v2447_v60 = vpop.f32.mrf.mxu1 }
 0x115   : > { %v1077_v54 = vadd.f32 %v2501_v49, %v1076_v59 }
 0x116   : > { %v1078_v61 = vpop.f32.mrf.mxu0  ;;  %v1270_v62 = vpop.f32.mrf.mxu1 }
 0x117   : > { %v1069_v61 = vadd.f32 %v2501_v49, %v2439_v51 }
 0x118   : > { %v1079_v63 = vpop.f32.mrf.mxu0  ;;  %v2449_v0 = vpop.f32.mrf.mxu1 }
 0x11a   : > { %v1081_v1 = vpop.f32.mrf.mxu0  ;;  %v1273_v2 = vpop.f32.mrf.mxu1 }
 0x11c   : > { %v2451_v3 = vpop.f32.mrf.mxu0  ;;  %v2453_v4 = vpop.f32.mrf.mxu1 }
 0x11e   : > { %v1086_v5 = vpop.f32.mrf.mxu0  ;;  %v1278_v6 = vpop.f32.mrf.mxu1 }
 0x11f   : > { %v1080_v5 = vadd.f32 %v2501_v49, %v1079_v63 }
 0x120   : > { %v2455_v7 = vpop.f32.mrf.mxu0  ;;  %v2457_v8 = vpop.f32.mrf.mxu1 }
 0x122   : > { %v1089_v9 = vpop.f32.mrf.mxu0  ;;  %v1281_v10 = vpop.f32.mrf.mxu1 }
 0x123   : > { %v1072_v10 = vadd.f32 %v2501_v49, %v2443_v55 }
 0x124   : > { %v1092_v11 = vpop.f32.mrf.mxu0  ;;  %v2459_v12 = vpop.f32.mrf.mxu1 }
 0x125   : > { %v1093_v51 = vadd.f32 %v2501_v49, %v1092_v11 }
 0x126   : > { %v1094_v13 = vpop.f32.mrf.mxu0  ;;  %v1286_v14 = vpop.f32.mrf.mxu1 }
 0x128   : > { %v2461_v15 = vpop.f32.mrf.mxu0  ;;  %v2463_v16 = vpop.f32.mrf.mxu1 }
 0x12a   : > { %v1097_v17 = vpop.f32.mrf.mxu0  ;;  %v1289_v18 = vpop.f32.mrf.mxu1 }
 0x12c   : > { %v2465_v19 = vpop.f32.mrf.mxu0  ;;  %v2467_v20 = vpop.f32.mrf.mxu1 }
 0x12e   : > { %v1102_v21 = vpop.f32.mrf.mxu0  ;;  %v1294_v22 = vpop.f32.mrf.mxu1 }
 0x12f   : > { %v1085_v22 = vadd.f32 %v2501_v49, %v2451_v3 }
 0x130   : > { %v2469_v23 = vpop.f32.mrf.mxu0  ;;  %v2471_v24 = vpop.f32.mrf.mxu1 }
 0x132   : > { %v1105_v25 = vpop.f32.mrf.mxu0  ;;  %v1297_v26 = vpop.f32.mrf.mxu1 }
 0x134   : > { %v2473_v27 = vpop.f32.mrf.mxu0  ;;  %v2475_v28 = vpop.f32.mrf.mxu1 }
 0x136   : > { %v1110_v29 = vpop.f32.mrf.mxu0  ;;  %v1302_v30 = vpop.f32.mrf.mxu1 }
 0x137   : > { %v1096_v29 = vadd.f32 %v2501_v49, %v2461_v15 }
 0x138   : > { %v2477_v31 = vpop.f32.mrf.mxu0  ;;  %v2479_v32 = vpop.f32.mrf.mxu1 }
 0x13a   : > { %v1113_v33 = vpop.f32.mrf.mxu0  ;;  %v1305_v34 = vpop.f32.mrf.mxu1 }
 0x13b   : > { %v1088_v34 = vadd.f32 %v2501_v49, %v2455_v7 }
 0x13c   : > { %v2481_v35 = vpop.f32.mrf.mxu0  ;;  %v2483_v36 = vpop.f32.mrf.mxu1 }
 0x13e   : > { %v1118_v37 = vpop.f32.mrf.mxu0  ;;  %v1310_v38 = vpop.f32.mrf.mxu1 }
 0x140   : > { %v2485_v39 = vpop.f32.mrf.mxu0  ;;  %v2487_v40 = vpop.f32.mrf.mxu1 }
 0x142   : > { %v1121_v41 = vpop.f32.mrf.mxu0  ;;  %v1313_v42 = vpop.f32.mrf.mxu1 }
 0x143   : > { %v1109_v41 = vadd.f32 %v2501_v49, %v2473_v27 }
 0x144   : > { %v2489_v43 = vpop.f32.mrf.mxu0  ;;  %v2491_v44 = vpop.f32.mrf.mxu1 }
 0x146   : > { %v1126_v45 = vpop.f32.mrf.mxu0  ;;  %v1318_v46 = vpop.f32.mrf.mxu1 }
 0x147   : > { %v1101_v46 = vadd.f32 %v2501_v49, %v2465_v19 }
 0x148   : > { %v2493_v47 = vpop.f32.mrf.mxu0  ;;  %v2495_v48 = vpop.f32.mrf.mxu1 }
 0x14a   : > { %v1129_v50 = vpop.f32.mrf.mxu0  ;;  %v1321_v53 = vpop.f32.mrf.mxu1 }
 0x14c   : > { %v2504_v57 = vpop.f32.mrf.mxu0  ;;  %v1930_v58 = vpop.f32.mrf.mxu1 }
 0x14d   : > { %v1366_v62 = vadd.f32 %v1930_v58, %v1077_v54  ;;  %v1112_v54 = vadd.f32 %v2501_v49, %v2477_v31 }
 0x14e   : > { %v1134_v1 = vpop.f32.mrf.mxu0  ;;  %v1357_v2 = vpop.f32.mrf.mxu1 }
 0x14f   : > { %1614 = vst [vmem:[%s2509_s8 + $0x10] sm:$0xff] %v1366_v62  ;;  %v1358_v59 = vadd.f32 %v1357_v2, %v1069_v61  ;;  %v1104_v62 = vadd.f32 %v2501_v49, %v2469_v23 }
 0x150   : > { %v2515_v6 = vpop.f32.mrf.mxu0  ;;  %v1931_v9 = vpop.f32.mrf.mxu1 }
 0x151   : > { %1612 = vst [vmem:[%s2509_s8] sm:$0xff] %v1358_v59  ;;  %v1369_v13 = vadd.f32 %v1931_v9, %v1080_v5  ;;  %v1125_v5 = vadd.f32 %v2501_v49, %v2489_v43 }
 0x152   : > { %v1137_v14 = vpop.f32.mrf.mxu0  ;;  %v1360_v17 = vpop.f32.mrf.mxu1 }
 0x153   : > { %1615 = vst [vmem:[%s2509_s8 + $0x18] sm:$0xff] %v1369_v13  ;;  %v1361_v18 = vadd.f32 %v1360_v17, %v1072_v10  ;;  %v1117_v10 = vadd.f32 %v2501_v49, %v2481_v35  ;;  %v1128_v17 = vadd.f32 %v2501_v49, %v2493_v47 }
 0x154   : > { %v1140_v63 = vpop.f32.mrf.mxu0  ;;  %v1934_v21 = vpop.f32.mrf.mxu1 }
 0x155   : > { %1613 = vst [vmem:[%s2509_s8 + $0x8] sm:$0xff] %v1361_v18  ;;  %v1382_v25 = vadd.f32 %v1934_v21, %v1093_v51  ;;  %v1120_v21 = vadd.f32 %v2501_v49, %v2485_v39 }
 0x156   : > { %v1142_v26 = vpop.f32.mrf.mxu0  ;;  %v1373_v55 = vpop.f32.mrf.mxu1 }
 0x157   : > { %1618 = vst [vmem:[%s2509_s8 + $0x30] sm:$0xff] %v1382_v25  ;;  %v1374_v30 = vadd.f32 %v1373_v55, %v1085_v22  ;;  %v1141_v26 = vadd.f32 %v2501_v49, %v1140_v63 }
 0x158   : > { %v1143_v11 = vpop.f32.mrf.mxu0  ;;  %v1935_v33 = vpop.f32.mrf.mxu1 }
 0x159   : > { %1616 = vst [vmem:[%s2509_s8 + $0x20] sm:$0xff] %v1374_v30  ;;  %v1385_v37 = vadd.f32 %v1935_v33, %v1096_v29  ;;  %v1133_v30 = vadd.f32 %v2501_v49, %v2504_v57 }
 0x15a   : > { %v1145_v3 = vpop.f32.mrf.mxu0  ;;  %v1376_v38 = vpop.f32.mrf.mxu1 }
 0x15b   : > { %1619 = vst [vmem:[%s2509_s8 + $0x38] sm:$0xff] %v1385_v37  ;;  %v1377_v42 = vadd.f32 %v1376_v38, %v1088_v34  ;;  %v1144_v37 = vadd.f32 %v2501_v49, %v1143_v11 }
 0x15c   : > { %v1148_v15 = vpop.f32.mrf.mxu0  ;;  %v1938_v45 = vpop.f32.mrf.mxu1 }
 0x15d   : > { %1617 = vst [vmem:[%s2509_s8 + $0x28] sm:$0xff] %v1377_v42  ;;  %v1398_v50 = vadd.f32 %v1938_v45, %v1109_v41  ;;  %v1136_v41 = vadd.f32 %v2501_v49, %v2515_v6 }
 0x15e   : > { %v1150_v7 = vpop.f32.mrf.mxu0  ;;  %v1389_v53 = vpop.f32.mrf.mxu1 }
 0x15f   : > { %1622 = vst [vmem:[%s2509_s8 + $0x50] sm:$0xff] %v1398_v50  ;;  %v1390_v58 = vadd.f32 %v1389_v53, %v1101_v46  ;;  %v1149_v53 = vadd.f32 %v2501_v49, %v1148_v15 }
 0x160   : > { %v1151_v27 = vpop.f32.mrf.mxu0  ;;  %v1939_v61 = vpop.f32.mrf.mxu1 }
 0x161   : > { %1620 = vst [vmem:[%s2509_s8 + $0x40] sm:$0xff] %v1390_v58  ;;  %v1401_v1 = vadd.f32 %v1939_v61, %v1112_v54 }
 0x162   : > { %v1153_v19 = vpop.f32.mrf.mxu0  ;;  %v1392_v2 = vpop.f32.mrf.mxu1 }
 0x163   : > { %1623 = vst [vmem:[%s2509_s8 + $0x58] sm:$0xff] %v1401_v1  ;;  %v1393_v59 = vadd.f32 %v1392_v2, %v1104_v62  ;;  %v1152_v2 = vadd.f32 %v2501_v49, %v1151_v27 }
 0x164   : > { %v1156_v31 = vpop.f32.mrf.mxu0  ;;  %v1942_v9 = vpop.f32.mrf.mxu1 }
 0x165   : > { %1621 = vst [vmem:[%s2509_s8 + $0x48] sm:$0xff] %v1393_v59  ;;  %v1414_v13 = vadd.f32 %v1942_v9, %v1125_v5  ;;  %v1157_v46 = vadd.f32 %v2501_v49, %v1156_v31 }
 0x166   : > { %v1158_v23 = vpop.f32.mrf.mxu0  ;;  %v1405_v14 = vpop.f32.mrf.mxu1 }
 0x167   : > { %1626 = vst [vmem:[%s2509_s8 + $0x70] sm:$0xff] %v1414_v13  ;;  %v1406_v51 = vadd.f32 %v1405_v14, %v1117_v10 }
 0x168   : > { %v1159_v43 = vpop.f32.mrf.mxu0  ;;  %v1943_v18 = vpop.f32.mrf.mxu1 }
 0x169   : > { %1624 = vst [vmem:[%s2509_s8 + $0x60] sm:$0xff] %v1406_v51  ;;  %v1417_v22 = vadd.f32 %v1943_v18, %v1128_v17  ;;  %v1160_v6 = vadd.f32 %v2501_v49, %v1159_v43 }
 0x16a   : > { %v1161_v35 = vpop.f32.mrf.mxu0  ;;  %v1408_v25 = vpop.f32.mrf.mxu1 }
 0x16b   : > { %1627 = vst [vmem:[%s2509_s8 + $0x78] sm:$0xff] %v1417_v22  ;;  %v1409_v55 = vadd.f32 %v1408_v25, %v1120_v21 }
 0x16c   : > { %v1164_v29 = vpop.f32.mrf.mxu0  ;;  %v1946_v47 = vpop.f32.mrf.mxu1 }
 0x16d   : > { %1625 = vst [vmem:[%s2509_s8 + $0x68] sm:$0xff] %v1409_v55  ;;  %v1430_v33 = vadd.f32 %v1946_v47, %v1141_v26  ;;  %v1165_v23 = vadd.f32 %v2501_v49, %v1164_v29 }
 0x16e   : > { %v1166_v34 = vpop.f32.mrf.mxu0  ;;  %v1421_v39 = vpop.f32.mrf.mxu1 }
 0x16f   : > { %1630 = vst [vmem:[%s2509_s8 + $0x90] sm:$0xff] %v1430_v33  ;;  %v1422_v3 = vadd.f32 %v1421_v39, %v1133_v30 }
 0x170   : > { %v1167_v38 = vpop.f32.mrf.mxu0  ;;  %v1947_v63 = vpop.f32.mrf.mxu1 }
 0x171   : > { %1628 = vst [vmem:[%s2509_s8 + $0x80] sm:$0xff] %v1422_v3  ;;  %v1433_v42 = vadd.f32 %v1947_v63, %v1144_v37  ;;  %v1168_v22 = vadd.f32 %v2501_v49, %v1167_v38 }
 0x172   : > { %v1169_v45 = vpop.f32.mrf.mxu0  ;;  %v1424_v57 = vpop.f32.mrf.mxu1 }
 0x173   : > { %1631 = vst [vmem:[%s2509_s8 + $0x98] sm:$0xff] %v1433_v42  ;;  %v1425_v50 = vadd.f32 %v1424_v57, %v1136_v41 }
 0x174   : > { %v1172_v7 = vpop.f32.mrf.mxu0  ;;  %v1950_v11 = vpop.f32.mrf.mxu1 }
 0x175   : > { %1629 = vst [vmem:[%s2509_s8 + $0x88] sm:$0xff] %v1425_v50  ;;  %v1446_v54 = vadd.f32 %v1950_v11, %v1157_v46  ;;  %v1173_v15 = vadd.f32 %v2501_v49, %v1172_v7 }
 0x176   : > { %v1174_v58 = vpop.f32.mrf.mxu0  ;;  %v1437_v61 = vpop.f32.mrf.mxu1 }
 0x177   : > { %1634 = vst [vmem:[%s2509_s8 + $0xb0] sm:$0xff] %v1446_v54  ;;  %v1438_v62 = vadd.f32 %v1437_v61, %v1149_v53 }
 0x178   : > { %v1175_v1 = vpop.f32.mrf.mxu0  ;;  %v1951_v19 = vpop.f32.mrf.mxu1 }
 0x179   : > { %1632 = vst [vmem:[%s2509_s8 + $0xa0] sm:$0xff] %v1438_v62  ;;  %v1449_v5 = vadd.f32 %v1951_v19, %v1160_v6  ;;  %v1176_v27 = vadd.f32 %v2501_v49, %v1175_v1 }
 0x17a   : > { %v1177_v59 = vpop.f32.mrf.mxu0  ;;  %v1440_v31 = vpop.f32.mrf.mxu1 }
 0x17b   : > { %1635 = vst [vmem:[%s2509_s8 + $0xb8] sm:$0xff] %v1449_v5  ;;  %v1441_v9 = vadd.f32 %v1440_v31, %v1152_v2 }
 0x17c   : > { %v1180_v10 = vpop.f32.mrf.mxu0  ;;  %v1954_v13 = vpop.f32.mrf.mxu1 }
 0x17d   : > { %1633 = vst [vmem:[%s2509_s8 + $0xa8] sm:$0xff] %v1441_v9  ;;  %v1462_v14 = vadd.f32 %v1954_v13, %v1173_v15  ;;  %v1181_v30 = vadd.f32 %v2501_v49, %v1180_v10 }
 0x17e   : > { %v1182_v17 = vpop.f32.mrf.mxu0  ;;  %v1453_v51 = vpop.f32.mrf.mxu1 }
 0x17f   : > { %1638 = vst [vmem:[%s2509_s8 + $0xd0] sm:$0xff] %v1462_v14  ;;  %v1454_v43 = vadd.f32 %v1453_v51, %v1165_v23 }
 0x180   : > { %v1183_v18 = vpop.f32.mrf.mxu0  ;;  %v1955_v21 = vpop.f32.mrf.mxu1 }
 0x181   : > { %1636 = vst [vmem:[%s2509_s8 + $0xc0] sm:$0xff] %v1454_v43  ;;  %v1465_v35 = vadd.f32 %v1955_v21, %v1176_v27  ;;  %v1184_v41 = vadd.f32 %v2501_v49, %v1183_v18 }
 0x182   : > { %v1185_v25 = vpop.f32.mrf.mxu0  ;;  %v1456_v26 = vpop.f32.mrf.mxu1 }
 0x183   : > { %1639 = vst [vmem:[%s2509_s8 + $0xd8] sm:$0xff] %v1465_v35  ;;  %v1457_v55 = vadd.f32 %v1456_v26, %v1168_v22 }
 0x184   : > { %v1188_v29 = vpop.f32.mrf.mxu0  ;;  %v1958_v47 = vpop.f32.mrf.mxu1 }
 0x185   : > { %1637 = vst [vmem:[%s2509_s8 + $0xc8] sm:$0xff] %v1457_v55  ;;  %v1189_v33 = vadd.f32 %v2501_v49, %v1188_v29 }
 0x186   : > { %v1190_v34 = vpop.f32.mrf.mxu0  ;;  %v1469_v39 = vpop.f32.mrf.mxu1 }
 0x187   : > { %v1478_v37 = vadd.f32 %v1958_v47, %v1189_v33  ;;  %v1470_v3 = vadd.f32 %v1469_v39, %v1181_v30 }
 0x188   : > { %v1191_v38 = vpop.f32.mrf.mxu0  ;;  %v1959_v63 = vpop.f32.mrf.mxu1 }
 0x189   : > { %1642 = vst [vmem:[%s2509_s8 + $0xf0] sm:$0xff] %v1478_v37  ;;  %1640 = vst [vmem:[%s2509_s8 + $0xe0] sm:$0xff] %v1470_v3  ;;  %v1192_v42 = vadd.f32 %v2501_v49, %v1191_v38 }
 0x18a   : > { %v1193_v45 = vpop.f32.mrf.mxu0  ;;  %v1472_v57 = vpop.f32.mrf.mxu1 }
 0x18b   : > { %v1481_v46 = vadd.f32 %v1959_v63, %v1192_v42  ;;  %v1473_v50 = vadd.f32 %v1472_v57, %v1184_v41 }
 0x18c   : > { %v1196_v7 = vpop.f32.mrf.mxu0  ;;  %v1962_v11 = vpop.f32.mrf.mxu1 }
 0x18d   : > { %1643 = vst [vmem:[%s2509_s8 + $0xf8] sm:$0xff] %v1481_v46  ;;  %1641 = vst [vmem:[%s2509_s8 + $0xe8] sm:$0xff] %v1473_v50  ;;  %v1197_v53 = vadd.f32 %v2501_v49, %v1196_v7  ;;  %v1269_v7 = vadd.f32 %v2501_v49, %v2447_v60 }
 0x18e   : > { %v1198_v54 = vpop.f32.mrf.mxu0  ;;  %v1485_v58 = vpop.f32.mrf.mxu1 }
 0x18f   : > { %v1486_v61 = vadd.f32 %v1485_v58, %v1197_v53  ;;  %v1261_v58 = vadd.f32 %v2501_v49, %v2441_v52  ;;  %v1264_v52 = vadd.f32 %v2501_v49, %v2445_v56  ;;  %v1277_v56 = vadd.f32 %v2501_v49, %v2453_v4 }
 0x190   : > { %v1199_v6 = vpop.f32.mrf.mxu0  ;;  %v1963_v62 = vpop.f32.mrf.mxu1  ;;  %v1280_v4 = vadd.f32 %v2501_v49, %v2457_v8  ;;  %v1293_v8 = vadd.f32 %v2501_v49, %v2467_v20  ;;  %v1296_v20 = vadd.f32 %v2501_v49, %v2471_v24  ;;  %v1309_v24 = vadd.f32 %v2501_v49, %v2483_v36 }
 0x191   : > { %1644 = vst [vmem:[%s2509_s8 + $0x100] sm:$0xff] %v1486_v61  ;;  %v1200_v1 = vadd.f32 %v2501_v49, %v1199_v6  ;;  %v1312_v36 = vadd.f32 %v2501_v49, %v2487_v40 }
 0x192   : > { %v1201_v19 = vpop.f32.mrf.mxu0  ;;  %v1488_v2 = vpop.f32.mrf.mxu1 }
 0x193   : > { %v1489_v5 = vadd.f32 %v1488_v2, %v1200_v1  ;;  %v1272_v19 = vadd.f32 %v2501_v49, %v2449_v0  ;;  %v1285_v0 = vadd.f32 %v2501_v49, %v2459_v12  ;;  %v1288_v12 = vadd.f32 %v2501_v49, %v2463_v16 }
 0x194   : > { %v1204_v59 = vpop.f32.mrf.mxu0  ;;  %v1966_v31 = vpop.f32.mrf.mxu1  ;;  %v1301_v16 = vadd.f32 %v2501_v49, %v2475_v28  ;;  %v1304_v28 = vadd.f32 %v2501_v49, %v2479_v32  ;;  %v1317_v32 = vadd.f32 %v2501_v49, %v2491_v44  ;;  %v1320_v44 = vadd.f32 %v2501_v49, %v2495_v48 }
 0x195   : > { %1645 = vst [vmem:[%s2509_s8 + $0x108] sm:$0xff] %v1489_v5  ;;  %v1205_v15 = vadd.f32 %v2501_v49, %v1204_v59 }
 0x196   : > { %v1206_v9 = vpop.f32.mrf.mxu0  ;;  %v1501_v10 = vpop.f32.mrf.mxu1 }
 0x197   : > { %v1494_v13 = vadd.f32 %v1962_v11, %v1205_v15 }
 0x198   : > { %v1207_v23 = vpop.f32.mrf.mxu0  ;;  %v1967_v14 = vpop.f32.mrf.mxu1 }
 0x199   : > { %1646 = vst [vmem:[%s2509_s8 + $0x110] sm:$0xff] %v1494_v13  ;;  %v1208_v17 = vadd.f32 %v2501_v49, %v1207_v23 }
 0x19a   : > { %v1209_v51 = vpop.f32.mrf.mxu0  ;;  %v1504_v27 = vpop.f32.mrf.mxu1 }
 0x19b   : > { %v1497_v43 = vadd.f32 %v1963_v62, %v1208_v17 }
 0x19c   : > { %v1212_v18 = vpop.f32.mrf.mxu0  ;;  %v2598_v21 = vpop.f32.mrf.mxu1 }
 0x19d   : > { %1647 = vst [vmem:[%s2509_s8 + $0x118] sm:$0xff] %v1497_v43  ;;  %v1213_v22 = vadd.f32 %v2501_v49, %v1212_v18 }
 0x19e   : > { %v1214_v35 = vpop.f32.mrf.mxu0  ;;  %v1517_v25 = vpop.f32.mrf.mxu1 }
 0x19f   : > { %v1502_v26 = vadd.f32 %v1501_v10, %v1213_v22 }
 0x1a0   : > { %v1215_v55 = vpop.f32.mrf.mxu0  ;;  %v2602_v29 = vpop.f32.mrf.mxu1 }
 0x1a1   : > { %1648 = vst [vmem:[%s2509_s8 + $0x120] sm:$0xff] %v1502_v26  ;;  %v1216_v47 = vadd.f32 %v2501_v49, %v1215_v55 }
 0x1a2   : > { %v1217_v30 = vpop.f32.mrf.mxu0  ;;  %v1520_v33 = vpop.f32.mrf.mxu1 }
 0x1a3   : > { %v1505_v34 = vadd.f32 %v1504_v27, %v1216_v47 }
 0x1a4   : > { %v1220_v39 = vpop.f32.mrf.mxu0  ;;  %v2606_v37 = vpop.f32.mrf.mxu1 }
 0x1a5   : > { %1649 = vst [vmem:[%s2509_s8 + $0x128] sm:$0xff] %v1505_v34  ;;  %v1221_v3 = vadd.f32 %v2501_v49, %v1220_v39 }
 0x1a6   : > { %v1222_v38 = vpop.f32.mrf.mxu0  ;;  %v2610_v63 = vpop.f32.mrf.mxu1 }
 0x1a7   : > { %v1510_v41 = vadd.f32 %v1966_v31, %v1221_v3 }
 0x1a8   : > { %v1223_v42 = vpop.f32.mrf.mxu0  ;;  %v2612_v45 = vpop.f32.mrf.mxu1 }
 0x1a9   : > { %1650 = vst [vmem:[%s2509_s8 + $0x130] sm:$0xff] %v1510_v41  ;;  %v1224_v57 = vadd.f32 %v2501_v49, %v1223_v42 }
 0x1aa   : > { %v1225_v46 = vpop.f32.mrf.mxu0  ;;  %v2616_v50 = vpop.f32.mrf.mxu1 }
 0x1ab   : > { %v1513_v11 = vadd.f32 %v1967_v14, %v1224_v57 }
 0x1ac   : > { %v1228_v53 = vpop.f32.mrf.mxu0  ;;  %v1978_v54 = vpop.f32.mrf.mxu1 }
 0x1ad   : > { %1651 = vst [vmem:[%s2509_s8 + $0x138] sm:$0xff] %v1513_v11  ;;  %v1229_v61 = vadd.f32 %v2501_v49, %v1228_v53  ;;  %v1558_v6 = vadd.f32 %v1978_v54, %v1269_v7 }
 0x1ae   : > { %v1230_v62 = vpop.f32.mrf.mxu0  ;;  %v1549_v1 = vpop.f32.mrf.mxu1 }
 0x1af   : > { %v1518_v2 = vadd.f32 %v1517_v25, %v1229_v61  ;;  %1662 = vst [vmem:[%s2509_s8 + $0x190] sm:$0xff] %v1558_v6  ;;  %v1550_v60 = vadd.f32 %v1549_v1, %v1261_v58 }
 0x1b0   : > { %v1231_v5 = vpop.f32.mrf.mxu0  ;;  %v1979_v59 = vpop.f32.mrf.mxu1 }
 0x1b1   : > { %1652 = vst [vmem:[%s2509_s8 + $0x140] sm:$0xff] %v1518_v2  ;;  %1660 = vst [vmem:[%s2509_s8 + $0x180] sm:$0xff] %v1550_v60  ;;  %v1232_v31 = vadd.f32 %v2501_v49, %v1231_v5  ;;  %v1561_v15 = vadd.f32 %v1979_v59, %v1272_v19 }
 0x1b2   : > { %v1233_v9 = vpop.f32.mrf.mxu0  ;;  %v1552_v10 = vpop.f32.mrf.mxu1 }
 0x1b3   : > { %v1521_v13 = vadd.f32 %v1520_v33, %v1232_v31  ;;  %1663 = vst [vmem:[%s2509_s8 + $0x198] sm:$0xff] %v1561_v15  ;;  %v1553_v23 = vadd.f32 %v1552_v10, %v1264_v52 }
 0x1b4   : > { %v1236_v14 = vpop.f32.mrf.mxu0  ;;  %v1982_v17 = vpop.f32.mrf.mxu1 }
 0x1b5   : > { %1653 = vst [vmem:[%s2509_s8 + $0x148] sm:$0xff] %v1521_v13  ;;  %1661 = vst [vmem:[%s2509_s8 + $0x188] sm:$0xff] %v1553_v23  ;;  %v1237_v51 = vadd.f32 %v2501_v49, %v1236_v14  ;;  %v1574_v27 = vadd.f32 %v1982_v17, %v1285_v0 }
 0x1b6   : > { %v1238_v43 = vpop.f32.mrf.mxu0  ;;  %v1565_v18 = vpop.f32.mrf.mxu1 }
 0x1b7   : > { %v1526_v22 = vadd.f32 %v2598_v21, %v1237_v51  ;;  %1666 = vst [vmem:[%s2509_s8 + $0x1b0] sm:$0xff] %v1574_v27  ;;  %v1566_v35 = vadd.f32 %v1565_v18, %v1277_v56 }
 0x1b8   : > { %v1239_v25 = vpop.f32.mrf.mxu0  ;;  %v1983_v26 = vpop.f32.mrf.mxu1 }
 0x1b9   : > { %1654 = vst [vmem:[%s2509_s8 + $0x150] sm:$0xff] %v1526_v22  ;;  %1664 = vst [vmem:[%s2509_s8 + $0x1a0] sm:$0xff] %v1566_v35  ;;  %v1240_v55 = vadd.f32 %v2501_v49, %v1239_v25  ;;  %v1577_v47 = vadd.f32 %v1983_v26, %v1288_v12 }
 0x1ba   : > { %v1241_v30 = vpop.f32.mrf.mxu0  ;;  %v1568_v33 = vpop.f32.mrf.mxu1 }
 0x1bb   : > { %v1529_v21 = vadd.f32 %v2602_v29, %v1240_v55  ;;  %1667 = vst [vmem:[%s2509_s8 + $0x1b8] sm:$0xff] %v1577_v47  ;;  %v1569_v34 = vadd.f32 %v1568_v33, %v1280_v4 }
 0x1bc   : > { %v1244_v39 = vpop.f32.mrf.mxu0  ;;  %v1986_v3 = vpop.f32.mrf.mxu1 }
 0x1bd   : > { %1655 = vst [vmem:[%s2509_s8 + $0x158] sm:$0xff] %v1529_v21  ;;  %1665 = vst [vmem:[%s2509_s8 + $0x1a8] sm:$0xff] %v1569_v34  ;;  %v1245_v38 = vadd.f32 %v2501_v49, %v1244_v39  ;;  %v1590_v41 = vadd.f32 %v1986_v3, %v1301_v16 }
 0x1be   : > { %v1246_v42 = vpop.f32.mrf.mxu0  ;;  %v1581_v57 = vpop.f32.mrf.mxu1 }
 0x1bf   : > { %v1534_v29 = vadd.f32 %v2610_v63, %v1245_v38  ;;  %1670 = vst [vmem:[%s2509_s8 + $0x1d0] sm:$0xff] %v1590_v41  ;;  %v1582_v46 = vadd.f32 %v1581_v57, %v1293_v8 }
 0x1c0   : > { %v1247_v7 = vpop.f32.mrf.mxu0  ;;  %v1987_v11 = vpop.f32.mrf.mxu1 }
 0x1c1   : > { %1656 = vst [vmem:[%s2509_s8 + $0x160] sm:$0xff] %v1534_v29  ;;  %1668 = vst [vmem:[%s2509_s8 + $0x1c0] sm:$0xff] %v1582_v46  ;;  %v1248_v53 = vadd.f32 %v2501_v49, %v1247_v7  ;;  %v1593_v54 = vadd.f32 %v1987_v11, %v1304_v28 }
 0x1c2   : > { %v1249_v58 = vpop.f32.mrf.mxu0  ;;  %v1584_v61 = vpop.f32.mrf.mxu1 }
 0x1c3   : > { %v1537_v63 = vadd.f32 %v2616_v50, %v1248_v53  ;;  %1671 = vst [vmem:[%s2509_s8 + $0x1d8] sm:$0xff] %v1593_v54  ;;  %v1585_v6 = vadd.f32 %v1584_v61, %v1296_v20 }
 0x1c4   : > { %v1252_v62 = vpop.f32.mrf.mxu0  ;;  %v1990_v1 = vpop.f32.mrf.mxu1 }
 0x1c5   : > { %1657 = vst [vmem:[%s2509_s8 + $0x168] sm:$0xff] %v1537_v63  ;;  %1669 = vst [vmem:[%s2509_s8 + $0x1c8] sm:$0xff] %v1585_v6  ;;  %v1253_v19 = vadd.f32 %v2501_v49, %v1252_v62  ;;  %v1606_v2 = vadd.f32 %v1990_v1, %v1317_v32 }
 0x1c6   : > { %v1254_v60 = vpop.f32.mrf.mxu0  ;;  %v1597_v5 = vpop.f32.mrf.mxu1 }
 0x1c7   : > { %v1542_v50 = vadd.f32 %v2606_v37, %v1253_v19  ;;  %1674 = vst [vmem:[%s2509_s8 + $0x1f0] sm:$0xff] %v1606_v2  ;;  %v1598_v59 = vadd.f32 %v1597_v5, %v1309_v24 }
 0x1c8   : > { %v1255_v52 = vpop.f32.mrf.mxu0  ;;  %v1991_v31 = vpop.f32.mrf.mxu1 }
 0x1c9   : > { %1658 = vst [vmem:[%s2509_s8 + $0x170] sm:$0xff] %v1542_v50  ;;  %1672 = vst [vmem:[%s2509_s8 + $0x1e0] sm:$0xff] %v1598_v59  ;;  %v1256_v15 = vadd.f32 %v2501_v49, %v1255_v52  ;;  %v1609_v9 = vadd.f32 %v1991_v31, %v1320_v44 }
 0x1ca   : > { %v1257_v10 = vpop.f32.mrf.mxu0  ;;  %v1600_v0 = vpop.f32.mrf.mxu1 }
 0x1cb   : > { %v1545_v48 = vadd.f32 %v2612_v45, %v1256_v15  ;;  %1675 = vst [vmem:[%s2509_s8 + $0x1f8] sm:$0xff] %v1609_v9  ;;  %v1601_v13 = vadd.f32 %v1600_v0, %v1312_v36 }
 0x1cd   : > { %1659 = vst [vmem:[%s2509_s8 + $0x178] sm:$0xff] %v1545_v48  ;;  %1673 = vst [vmem:[%s2509_s8 + $0x1e8] sm:$0xff] %v1601_v13 }
 0x1ce PF: > { %s13_s12 = sadd.s32 1, %s2186_s12  }
 0x1cf   : > { %p10_p4 = scmp.ge.s32.totalorder %s13_s12, 6  }
 0x1d1   :  { %12 = sbr.rel (!%p10_p4) target bundleno = 1 (0x1), region = 62 }

</bundles_post_ra>
